<compile_context>
chip_gen: v5e
topology: v5e:2x2
jax: 0.10.0
libtpu: 0.0.40
codegen_flags: <defaults>
</compile_context>

<pallas_src>
import jax
import jax.numpy as jnp
from jax.experimental import pallas as pl
from jax.experimental.pallas import tpu as pltpu


# ---------------------------------------------------------------------------
# Kernel
# ---------------------------------------------------------------------------
def _sigmoid_mul_kernel(g_ref, x_ref, o_ref):
    # g_ref: (tile_c, 1) per-channel gate logits
    # x_ref: (tile_c, tile_hw) feature-map tile
    # Compute in f32 (EUP sigmoid; exact for f32, avoids bf16 precision loss),
    # broadcast the (tile_c, 1) gate column along the lane axis, cast on store.
    gate = jax.nn.sigmoid(g_ref[...].astype(jnp.float32))
    o_ref[...] = (x_ref[...].astype(jnp.float32) * gate).astype(o_ref.dtype)


# ---------------------------------------------------------------------------
# Tile selection helpers
# ---------------------------------------------------------------------------
def _sublane_multiple(dtype):
    itemsize = jnp.dtype(dtype).itemsize
    return {4: 8, 2: 16, 1: 32}.get(itemsize, 8)


def _divisors(n):
    ds = set()
    d = 1
    while d * d <= n:
        if n % d == 0:
            ds.add(d)
            ds.add(n // d)
        d += 1
    return sorted(ds)


def _choose_tiles(NC, HW, dtype, tile_byte_cap):
    """Pick (tile_c, tile_hw) that exactly divide (NC, HW), respect the
    (sublane, 128) layout rules, fit a per-block byte budget, and expose at
    least two parallel grid steps when possible (v7x dual TensorCore)."""
    itemsize = jnp.dtype(dtype).itemsize
    sub = _sublane_multiple(dtype)
    cap_elems = max(tile_byte_cap // itemsize, sub * 128)

    hw_divs = _divisors(HW)
    nc_divs = _divisors(NC)

    # --- lane (last-dim) tile: full HW, or a multiple-of-128 divisor of HW ---
    if HW * sub <= cap_elems:
        tile_hw = HW                              # full extent (always legal)
    else:
        cands = [d for d in hw_divs if d % 128 == 0 and d * sub <= cap_elems]
        if cands:
            tile_hw = max(cands)                  # biggest lane-dense tile in budget
        else:
            c128 = [d for d in hw_divs if d % 128 == 0]
            tile_hw = min(c128) if c128 else HW   # best effort

    # --- sublane (second-last) tile: divisor of NC, multiple of `sub` ---
    rows_cap = max(sub, cap_elems // tile_hw)
    cands = [d for d in nc_divs if d % sub == 0 and d <= rows_cap]
    if cands:
        tile_c = max(cands)
    elif NC <= rows_cap:
        tile_c = NC                               # full extent (always legal)
    else:
        csub = [d for d in nc_divs if d % sub == 0]
        tile_c = min(csub) if csub else NC

    # --- ensure >= 2 parallel grid steps when the shape allows (v7x: 2 TCs) ---
    if (NC // tile_c) * (HW // tile_hw) < 2:
        half = [d for d in nc_divs if d % sub == 0 and d <= NC // 2]
        if half:
            tile_c = max(half)

    return tile_c, tile_hw


# ---------------------------------------------------------------------------
# Wrapper
# ---------------------------------------------------------------------------
def sigmoid_mul(x601, x597, *, tile_byte_cap=2 * 1024 * 1024):
    """x601: (N, C, 1, 1) gate logits; x597: (N, C, H, W) -> (N, C, H, W)."""
    N, C, H, W = x597.shape
    assert x601.shape == (N, C, 1, 1)

    NC, HW = N * C, H * W
    out_dtype = jnp.promote_types(x597.dtype, x601.dtype)

    x2 = x597.reshape(NC, HW)      # free reshape, HW stays on the lane axis
    g2 = x601.reshape(NC, 1)       # (NC, 1) column, broadcast in-kernel

    tile_c, tile_hw = _choose_tiles(NC, HW, out_dtype, tile_byte_cap)
    grid = (NC // tile_c, HW // tile_hw)

    out2 = pl.pallas_call(
        _sigmoid_mul_kernel,
        out_shape=jax.ShapeDtypeStruct((NC, HW), out_dtype),
        grid_spec=pltpu.PrefetchScalarGridSpec(
            num_scalar_prefetch=0,
            grid=grid,
            in_specs=[
                pl.BlockSpec((tile_c, 1), lambda i, j: (i, 0)),        # gate
                pl.BlockSpec((tile_c, tile_hw), lambda i, j: (i, j)),  # features
            ],
            out_specs=pl.BlockSpec((tile_c, tile_hw), lambda i, j: (i, j)),
        ),
        compiler_params=pltpu.CompilerParams(
            dimension_semantics=("parallel", "parallel"),
            vmem_limit_bytes=32 * 1024 * 1024,
        ),
    )(g2, x2)

    return out2.reshape(N, C, H, W)


# ---------------------------------------------------------------------------
# Self-test
# ---------------------------------------------------------------------------
if __name__ == "__main__":
    # Shapes from the module: (1, 2064, 7, 7) features, (1, 2064, 1, 1) gate
    # (~400 KiB total - small enough to run directly).
    N, C, H, W = 1, 2064, 7, 7
    key = jax.random.PRNGKey(0)
    k1, k2 = jax.random.split(key)
    x597 = jax.random.normal(k1, (N, C, H, W), dtype=jnp.float32)
    x601 = jax.random.normal(k2, (N, C, 1, 1), dtype=jnp.float32)

    # f32 path
    out = jax.block_until_ready(sigmoid_mul(x601, x597))
    ref = x597 * jax.nn.sigmoid(x601)
    assert out.shape == ref.shape and out.dtype == ref.dtype
    assert jnp.allclose(out, ref, atol=1e-6, rtol=1e-6)

    # bf16 path (sigmoid/multiply computed in f32 inside the kernel)
    xb = x597.astype(jnp.bfloat16)
    gb = x601.astype(jnp.bfloat16)
    outb = jax.block_until_ready(sigmoid_mul(gb, xb))
    refb = (xb.astype(jnp.float32) * jax.nn.sigmoid(gb.astype(jnp.float32))
            ).astype(jnp.bfloat16)
    assert outb.dtype == jnp.bfloat16
    assert jnp.allclose(outb.astype(jnp.float32), refb.astype(jnp.float32),
                        atol=1e-2, rtol=1e-2)

    print("KERNEL_OK")
</pallas_src>

<mosaic_0001>
module attributes {stable_mosaic.version = 11 : i64} {
  func.func @_sigmoid_mul_kernel(%arg0: i32, %arg1: i32, %arg2: memref<1032x1xf32, #tpu.memory_space<vmem>>, %arg3: memref<1032x49xf32, #tpu.memory_space<vmem>>, %arg4: memref<1032x49xf32, #tpu.memory_space<vmem>>) attributes {dimension_semantics = [#tpu.dimension_semantics<parallel>, #tpu.dimension_semantics<parallel>], iteration_bounds = array<i64: 2, 1>, scalar_prefetch = 0 : i64, scratch_operands = 0 : i64, tpu.core_type = #tpu.core_type<tc>, window_params = [{transform_indices = @transform_0, window_bounds = array<i64: 1032, 1>}, {transform_indices = @transform_1, window_bounds = array<i64: 1032, 49>}, {transform_indices = @transform_2, window_bounds = array<i64: 1032, 49>}]} {
    %c0 = arith.constant 0 : index
    %c0_0 = arith.constant 0 : index
    %0 = vector.load %arg2[%c0, %c0_0] : memref<1032x1xf32, #tpu.memory_space<vmem>>, vector<1032x1xf32>
    %1 = arith.negf %0 : vector<1032x1xf32>
    %2 = math.exp %1 : vector<1032x1xf32>
    %cst = arith.constant 1.000000e+00 : f32
    %3 = vector.broadcast %cst : f32 to vector<1032x1xf32>
    %4 = arith.addf %3, %2 : vector<1032x1xf32>
    %5 = arith.divf %3, %4 : vector<1032x1xf32>
    %c0_1 = arith.constant 0 : index
    %c0_2 = arith.constant 0 : index
    %6 = vector.load %arg3[%c0_1, %c0_2] : memref<1032x49xf32, #tpu.memory_space<vmem>>, vector<1032x49xf32>
    %7 = vector.broadcast %5 : vector<1032x1xf32> to vector<1032x49xf32>
    %8 = arith.mulf %6, %7 : vector<1032x49xf32>
    %c0_3 = arith.constant 0 : index
    %c0_4 = arith.constant 0 : index
    %9 = vector.load %arg4[%c0_3, %c0_4] : memref<1032x49xf32, #tpu.memory_space<vmem>>, vector<1032x49xf32>
    tpu.vector_store %arg4[%c0_3, %c0_4], %8 {strides = array<i32>} : memref<1032x49xf32, #tpu.memory_space<vmem>>, vector<1032x49xf32>,
    return
  }
  func.func @transform_0(%arg0: i32, %arg1: i32) -> (i32, i32) {
    %c0_i32 = arith.constant 0 : i32
    %c0_i32_0 = arith.constant 0 : i32
    return %arg0, %c0_i32 : i32, i32
  }
  func.func @transform_1(%arg0: i32, %arg1: i32) -> (i32, i32) {
    %c0_i32 = arith.constant 0 : i32
    return %arg0, %arg1 : i32, i32
  }
  func.func @transform_2(%arg0: i32, %arg1: i32) -> (i32, i32) {
    %c0_i32 = arith.constant 0 : i32
    return %arg0, %arg1 : i32, i32
  }
}

</mosaic_0001>

<bundles_post_ra>
// kernel: tpu_custom_call.1
= control target key start
LH: loop header
LB: loop body
LE: loop exit
PB: predicated region body
PF: predicated region fallthrough
CT: control target
= control target key end

     0   :  { %s4626_s9 = smov 0   ;;  %s4628_s10 = smov 0   ;;  %s8350_s0 = inlined_call_operand.vmem [shape: f32[2064,1], index: 0, kind: input, shape index: {}]   ;;  %s8351_s1 = inlined_call_operand.vmem [shape: f32[2064,49], index: 1, kind: input, shape index: {}]   ;;  %s8352_s2 = inlined_call_operand.vmem [shape: f32[2064,49], index: 2, kind: output, shape index: {}]  }
   0x1   :  { %s4630_s11 = smov 0  }
   0x2 LB: > { %s24_s12 = sadd.s32 1, %s4604_s10  ;;  %p3907_p0 = scmp.ge.s32.totalorder %s4608_s11, 1  ;;  %s4608_s11 = sphi %s4630_s11, %s12_s11   ;;  %s4604_s10 = sphi %s4628_s10, %s8854_s10   ;;  %s4600_s9 = sphi %s4626_s9, %s8853_s9  }
   0x3   : > { %p26_p1 = scmp.ge.s32.totalorder %s24_s12, 2  ;;  %p143_p2 = scmp.lt.s32.totalorder %s4608_s11, 3 }
   0x5   : > { %s8856_s12 = smov (%p26_p1, %s24_s12), 0  ;;  %p144_p3 = pnand %p3907_p0, %p143_p2 }
   0x6   : > { %s176_s13 = smul.u32 (!%p144_p3), 129, %s4600_s9 }
   0x7   : > { %147 = sbr.rel (%p144_p3) target bundleno = 690 (0x2b2), region = 28 }
   0x8   : > { %p177_p4 = scmp.lt.s32.totalorder (!%p144_p3), %s176_s13, 257 }
   0xc   : > { %v4610_v0 = vmov 0   ;;  %s8858_s13 = smov (!%p177_p4, %s176_s13), 257 }
   0xd   : > { %4069 = vset.pattern.permute.xlu2 %v4610_v0  ;;  %4068 = vset.pattern.permute.xlu1 %v4610_v0  ;;  %s4644_s14 = sshll.u32 %s8858_s13, 3 }
   0xe   : > { %4067 = vset.pattern.permute.xlu0 %v4610_v0  ;;  %s4650_s17 = scalar_lea.vmem %s8350_s0, %s4644_s14  ;;  %s5383_s20 = scalar_lea.vmem %s8351_s1, %s4644_s14 }
   0xf   : > { %v204_v1 = vld [vmem:[%s4650_s17 + $0x20] sm:$0xff]  ;;  %v202_v2 = vld [vmem:[%s4650_s17 + $0x10] sm:$0xff]  ;;  %v205_v7 = vld [vmem:[%s4650_s17 + $0x28] sm:$0xff]  ;;  %s5432_s23 = scalar_lea.vmem %s8352_s2, %s4644_s14 }
  0x10   : > { %v200_v3 = vld [vmem:[%s4650_s17] sm:$0xff]  ;;  %v3915_v4 = vmul.f32 -1.442695, %v204_v1  ;;  %v3913_v5 = vmul.f32 -1.442695, %v202_v2  ;;  %v203_v8 = vld [vmem:[%s4650_s17 + $0x18] sm:$0xff] }
  0x11   : > { %v3911_v6 = vmul.f32 -1.442695, %v200_v3  ;;  %v201_v9 = vld [vmem:[%s4650_s17 + $0x8] sm:$0xff]  ;;  %v3916_v10 = vmul.f32 -1.442695, %v205_v7  ;;  %v208_v13 = vld [vmem:[%s4650_s17 + $0x40] sm:$0xff] }
  0x12   : > { %4070 = vpow2.f32 %v3915_v4  ;;  %v3914_v11 = vmul.f32 -1.442695, %v203_v8  ;;  %v3912_v12 = vmul.f32 -1.442695, %v201_v9  ;;  %v207_v14 = vld [vmem:[%s4650_s17 + $0x38] sm:$0xff]  ;;  %v206_v17 = vld [vmem:[%s4650_s17 + $0x30] sm:$0xff] }
  0x13   : > { %4072 = vpow2.f32 %v3913_v5  ;;  %v3919_v15 = vmul.f32 -1.442695, %v208_v13  ;;  %v3918_v16 = vmul.f32 -1.442695, %v207_v14  ;;  %v3917_v23 = vmul.f32 -1.442695, %v206_v17 }
  0x14   : > { %4074 = vpow2.f32 %v3911_v6  ;;  %v211_v25 = vld [vmem:[%s4650_s17 + $0x58] sm:$0xff] }
  0x15   : > { %4076 = vpow2.f32 %v3916_v10  ;;  %v4678_v35 = vmul.f32 -1.442695, %v211_v25 }
  0x16   : > { %4078 = vpow2.f32 %v3914_v11 }
  0x17   : > { %4080 = vpow2.f32 %v3912_v12 }
  0x18   : > { %v4071_v18 = vpop.eup %4070  ;;  %4082 = vpow2.f32 %v3919_v15 }
  0x19   : > { %v4073_v19 = vpop.eup %4072  ;;  %v4661_v20 = vadd.f32 1.0, %v4071_v18  ;;  %4084 = vpow2.f32 %v3918_v16 }
  0x1a   : > { %v4075_v21 = vpop.eup %4074  ;;  %v4663_v22 = vadd.f32 1.0, %v4073_v19 }
  0x1b   : > { %v4077_v24 = vpop.eup %4076  ;;  %4086 = vrcp.f32 %v4661_v20  ;;  %v914_v27 = vand.u32 2147483647, %v4661_v20  ;;  %v916_v28 = vand.u32 2147483648, %v4661_v20  ;;  %v4672_v32 = vadd.f32 1.0, %v4075_v21 }
  0x1c   : > { %v4079_v26 = vpop.eup %4078  ;;  %4088 = vrcp.f32 %v4663_v22  ;;  %v884_v30 = vand.u32 2147483647, %v4663_v22  ;;  %v886_v31 = vand.u32 2147483648, %v4663_v22  ;;  %v4674_v33 = vadd.f32 1.0, %v4077_v24 }
  0x1d   : > { %v4081_v29 = vpop.eup %4080  ;;  %v4676_v34 = vadd.f32 1.0, %v4079_v26  ;;  %4090 = vpow2.f32 %v3917_v23  ;;  %vm910_vm0 = vweird.f32 %v4661_v20  ;;  %vm880_vm1 = vweird.f32 %v4663_v22 }
  0x1e   : > { %v4083_v36 = vpop.eup %4082  ;;  %4092 = vrcp.f32 %v4672_v32  ;;  %v856_v37 = vand.u32 2147483648, %v4672_v32  ;;  %vm4684_vm2 = vcmp.eq.f32.partialorder %v914_v27, 8.507059e+37  ;;  %v917_v40 = vor.u32 1.1754944e-38, %v916_v28 }
  0x1f   : > { %v4085_v38 = vpop.eup %4084  ;;  %v854_v41 = vand.u32 2147483647, %v4672_v32  ;;  %4094 = vrcp.f32 %v4674_v33  ;;  %v4690_v42 = vadd.f32 1.0, %v4081_v29  ;;  %vm4692_vm3 = vcmp.eq.f32.partialorder %v884_v30, 8.507059e+37 }
  0x20   : > { %v887_v45 = vor.u32 1.1754944e-38, %v886_v31  ;;  %v931_v46 = vand.u32 2147483648, %v4674_v33  ;;  %4096 = vrcp.f32 %v4676_v34  ;;  %vm850_vm4 = vweird.f32 %v4672_v32 }
  0x21   : > { %v4087_v43 = vpop.eup %4086  ;;  %vm925_vm5 = vweird.f32 %v4674_v33  ;;  %v929_v49 = vand.u32 2147483647, %v4674_v33  ;;  %v4703_v51 = vor.u32 1.1754944e-38, %v856_v37  ;;  %v899_v52 = vand.u32 2147483647, %v4676_v34 }
  0x22   : > { %v4089_v47 = vpop.eup %4088  ;;  %v906_v48 = vmul.f32 %v4087_v43, %v4661_v20  ;;  %v901_v53 = vand.u32 2147483648, %v4676_v34  ;;  %vm911_vm6 = vweird.f32 %v4087_v43  ;;  %vm4707_vm7 = vcmp.eq.f32.partialorder %v854_v41, 8.507059e+37 }
  0x23   : > { %v876_v50 = vmul.f32 %v4089_v47, %v4663_v22  ;;  %v4091_v54 = vpop.eup %4090  ;;  %vm895_vm8 = vweird.f32 %v4676_v34  ;;  %4098 = vrcp.f32 %v4690_v42  ;;  %vm881_vm9 = vweird.f32 %v4089_v47  ;;  %vm4723_vm12 = vmor %vm910_vm0, %vm911_vm6  ;;  %v215_v22 = vld [vmem:[%s4650_s17 + $0x78] sm:$0xff] }
  0x24   : > { %v907_v55 = vsub.f32 1.0, %v906_v48  ;;  %v4093_v57 = vpop.eup %4092  ;;  %v932_v59 = vor.u32 1.1754944e-38, %v931_v46  ;;  %vm865_vm10 = vweird.f32 %v4690_v42  ;;  %vm4715_vm11 = vcmp.eq.f32.partialorder %v929_v49, 8.507059e+37  ;;  %vm4736_vm15 = vmor %vm880_vm1, %vm881_vm9 }
  0x25   : > { %v877_v58 = vsub.f32 1.0, %v876_v50  ;;  %v4095_v60 = vpop.eup %4094  ;;  %v846_v62 = vmul.f32 %v4093_v57, %v4672_v32  ;;  %v902_v0 = vor.u32 1.1754944e-38, %v901_v53  ;;  %v869_v1 = vand.u32 2147483647, %v4690_v42 }
  0x26   : > { %v908_v61 = vmul.f32 %v4087_v43, %v907_v55  ;;  %v4097_v2 = vpop.eup %4096  ;;  %vm851_vm13 = vweird.f32 %v4093_v57  ;;  %v921_v5 = vmul.f32 %v4095_v60, %v4674_v33  ;;  %vm4728_vm14 = vcmp.eq.f32.partialorder %v899_v52, 8.507059e+37  ;;  %v210_v33 = vld [vmem:[%s4650_s17 + $0x50] sm:$0xff] }
  0x27   : > { %v878_v4 = vmul.f32 %v4089_v47, %v877_v58  ;;  %v871_v7 = vand.u32 2147483648, %v4690_v42  ;;  %v847_v10 = vsub.f32 1.0, %v846_v62  ;;  %vm926_vm0 = vweird.f32 %v4095_v60  ;;  %vm4754_vm1 = vmor %vm850_vm4, %vm851_vm13 }
  0x28   : > { %v909_v8 = vadd.f32 %v4087_v43, %v908_v61  ;;  %v891_v11 = vmul.f32 %v4097_v2, %v4676_v34  ;;  %v922_v13 = vsub.f32 1.0, %v921_v5  ;;  %vm896_vm6 = vweird.f32 %v4097_v2  ;;  %v212_v61 = vld [vmem:[%s4650_s17 + $0x60] sm:$0xff] }
  0x29   : > { %v879_v12 = vadd.f32 %v4089_v47, %v878_v4  ;;  %v4741_v14 = vadd.f32 1.0, %v4083_v36  ;;  %v4099_v15 = vpop.eup %4098  ;;  %v848_v17 = vmul.f32 %v4093_v57, %v847_v10  ;;  %v4745_v19 = vadd.f32 1.0, %v4085_v38  ;;  %vm4773_vm4 = vmor %vm895_vm8, %vm896_vm6 }
  0x2a   : > { %v913_v16 = vsel %vm4723_vm12, %v4087_v43, %v909_v8  ;;  %v892_v18 = vsub.f32 1.0, %v891_v11  ;;  %v923_v23 = vmul.f32 %v4095_v60, %v922_v13  ;;  %v861_v24 = vmul.f32 %v4099_v15, %v4690_v42  ;;  %v214_v42 = vld [vmem:[%s4650_s17 + $0x70] sm:$0xff] }
  0x2b   : > { %v918_v20 = vsel %vm4684_vm2, %v917_v40, %v913_v16  ;;  %v883_v21 = vsel %vm4736_vm15, %v4089_v47, %v879_v12  ;;  %v849_v26 = vadd.f32 %v4093_v57, %v848_v17  ;;  %vm4764_vm2 = vmor %vm925_vm5, %vm926_vm0  ;;  %v4768_v29 = vadd.f32 1.0, %v4091_v54  ;;  %v209_v40 = vld [vmem:[%s4650_s17 + $0x48] sm:$0xff] }
  0x2c   : > { %2931 = vperm.xlu2 %4069, %v918_v20   ;;  %v888_v25 = vsel %vm4692_vm3, %v887_v45, %v883_v21  ;;  %v893_v28 = vmul.f32 %v4097_v2, %v892_v18  ;;  %v924_v30 = vadd.f32 %v4095_v60, %v923_v23  ;;  %v862_v32 = vsub.f32 1.0, %v861_v24  ;;  %v216_v21 = vld [vmem:[%s4650_s17 + $0x80] sm:$0xff] }
  0x2d   : > { %2921 = vperm.xlu1 %4068, %v888_v25   ;;  %vm866_vm3 = vweird.f32 %v4099_v15  ;;  %4100 = vrcp.f32 %v4741_v14  ;;  %v853_v36 = vsel %vm4754_vm1, %v4093_v57, %v849_v26  ;;  %v974_v38 = vand.u32 2147483647, %v4741_v14 }
  0x2e   : > { %v894_v37 = vadd.f32 %v4097_v2, %v893_v28  ;;  %v976_v39 = vand.u32 2147483648, %v4741_v14  ;;  %v858_v34 = vsel %vm4707_vm7, %v4703_v51, %v853_v36  ;;  %v928_v41 = vsel %vm4764_vm2, %v4095_v60, %v924_v30  ;;  %vm4794_vm5 = vmor %vm865_vm10, %vm866_vm3  ;;  %v213_v60 = vld [vmem:[%s4650_s17 + $0x68] sm:$0xff] }
  0x2f   : > { %v863_v43 = vmul.f32 %v4099_v15, %v862_v32  ;;  %4102 = vrcp.f32 %v4745_v19  ;;  %2911 = vperm.xlu0 %4067, %v858_v34   ;;  %v3921_v46 = vmul.f32 -1.442695, %v210_v33  ;;  %v933_v47 = vsel %vm4715_vm11, %v932_v59, %v928_v41 }
  0x30   : > { %v898_v44 = vsel %vm4773_vm4, %v4097_v2, %v894_v37  ;;  %v872_v49 = vor.u32 1.1754944e-38, %v871_v7  ;;  %v3920_v50 = vmul.f32 -1.442695, %v209_v40  ;;  %vm4802_vm7 = vcmp.eq.f32.partialorder %v869_v1, 8.507059e+37  ;;  %v217_v2 = vld [vmem:[%s4650_s17 + $0x88] sm:$0xff]  ;;  %v220_v37 = vld [vmem:[%s4650_s17 + $0xa0] sm:$0xff] }
  0x31   : > { %v864_v48 = vadd.f32 %v4099_v15, %v863_v43  ;;  %v903_v51 = vsel %vm4728_vm14, %v902_v0, %v898_v44  ;;  %vm970_vm8 = vweird.f32 %v4741_v14  ;;  %4104 = vrcp.f32 %v4768_v29  ;;  %v218_v43 = vld [vmem:[%s4650_s17 + $0x90] sm:$0xff] }
  0x32   : > { %vm4811_vm9 = vcmp.eq.f32.partialorder %v974_v38, 8.507059e+37  ;;  %v977_v56 = vor.u32 1.1754944e-38, %v976_v39  ;;  %4106 = vpow2.f32 %v4678_v35  ;;  %vm955_vm10 = vweird.f32 %v4745_v19  ;;  %v219_v38 = vld [vmem:[%s4650_s17 + $0x98] sm:$0xff] }
  0x33   : > { %v4101_v53 = vpop.eup %4100  ;;  %v868_v54 = vsel %vm4794_vm5, %v4099_v15, %v864_v48  ;;  %v959_v58 = vand.u32 2147483647, %v4745_v19  ;;  %v961_v59 = vand.u32 2147483648, %v4745_v19  ;;  %vm940_vm11 = vweird.f32 %v4768_v29 }
  0x34   : > { %2936 = vperm.xlu2 %4069, %v933_v47   ;;  %v966_v57 = vmul.f32 %v4101_v53, %v4741_v14  ;;  %v873_v63 = vsel %vm4802_vm7, %v872_v49, %v868_v54  ;;  %4108 = vpow2.f32 %v3921_v46  ;;  %v3925_v35 = vmul.f32 -1.442695, %v214_v42 }
  0x35   : > { %v4103_v62 = vpop.eup %4102  ;;  %2926 = vperm.xlu1 %4068, %v903_v51   ;;  %vm971_vm12 = vweird.f32 %v4101_v53  ;;  %4110 = vpow2.f32 %v3920_v50  ;;  %v944_v3 = vand.u32 2147483647, %v4768_v29  ;;  %v3924_v4 = vmul.f32 -1.442695, %v213_v60 }
  0x36   : > { %v967_v0 = vsub.f32 1.0, %v966_v57  ;;  %v951_v1 = vmul.f32 %v4103_v62, %v4745_v19  ;;  %4112 = vpow2.f32 %v3925_v35  ;;  %v3923_v5 = vmul.f32 -1.442695, %v212_v61  ;;  %vm4832_vm14 = vmor %vm970_vm8, %vm971_vm12 }
  0x37   : > { %v4105_v6 = vpop.eup %4104  ;;  %2916 = vperm.xlu0 %4067, %v873_v63   ;;  %vm956_vm13 = vweird.f32 %v4103_v62  ;;  %v946_v9 = vand.u32 2147483648, %v4768_v29  ;;  %vm4836_vm15 = vcmp.eq.f32.partialorder %v959_v58, 8.507059e+37  ;;  %v962_v13 = vor.u32 1.1754944e-38, %v961_v59 }
  0x38   : > { %v968_v7 = vmul.f32 %v4101_v53, %v967_v0  ;;  %v952_v8 = vsub.f32 1.0, %v951_v1  ;;  %v4107_v10 = vpop.eup %4106  ;;  %v936_v15 = vmul.f32 %v4105_v6, %v4768_v29  ;;  %v3928_v16 = vmul.f32 -1.442695, %v217_v2  ;;  %vm4848_vm0 = vmor %vm955_vm10, %vm956_vm13 }
  0x39   : > { %v4841_v20 = vadd.f32 1.0, %v4107_v10  ;;  %4114 = vpow2.f32 %v3924_v4  ;;  %vm941_vm6 = vweird.f32 %v4105_v6  ;;  %vm4852_vm1 = vcmp.eq.f32.partialorder %v944_v3, 8.507059e+37 }
  0x3a   : > { %v969_v17 = vadd.f32 %v4101_v53, %v968_v7  ;;  %v953_v18 = vmul.f32 %v4103_v62, %v952_v8  ;;  %v4109_v14 = vpop.eup %4108  ;;  %v937_v24 = vsub.f32 1.0, %v936_v15  ;;  %4116 = vpow2.f32 %v3923_v5  ;;  %vm4870_vm2 = vmor %vm940_vm11, %vm941_vm6 }
  0x3b   : > { %v4111_v26 = vpop.eup %4110  ;;  %v947_v19 = vor.u32 1.1754944e-38, %v946_v9  ;;  %4118 = vrcp.f32 %v4841_v20  ;;  %v3927_v33 = vmul.f32 -1.442695, %v216_v21  ;;  %v4861_v36 = vmul.f32 -1.442695, %v215_v22 }
  0x3c   : > { %v973_v27 = vsel %vm4832_vm14, %v4101_v53, %v969_v17  ;;  %v954_v28 = vadd.f32 %v4103_v62, %v953_v18  ;;  %v4113_v30 = vpop.eup %4112  ;;  %v938_v32 = vmul.f32 %v4105_v6, %v937_v24  ;;  %v4874_v34 = vadd.f32 1.0, %v4109_v14  ;;  %v223_v14 = vld [vmem:[%s4650_s17 + $0xb8] sm:$0xff] }
  0x3d   : > { %v978_v31 = vsel %vm4811_vm9, %v977_v56, %v973_v27  ;;  %v4876_v41 = vadd.f32 1.0, %v4111_v26  ;;  %4120 = vpow2.f32 %v3928_v16  ;;  %v1019_v46 = vand.u32 2147483647, %v4841_v20 }
  0x3e   : > { %2951 = vperm.xlu2 %4069, %v978_v31   ;;  %v958_v39 = vsel %vm4848_vm0, %v4103_v62, %v954_v28  ;;  %v939_v45 = vadd.f32 %v4105_v6, %v938_v32  ;;  %v4882_v47 = vadd.f32 1.0, %v4113_v30  ;;  %v1021_v29 = vand.u32 2147483648, %v4841_v20  ;;  %v225_v28 = vld [vmem:[%s4650_s17 + $0xc8] sm:$0xff] }
  0x3f   : > { %v963_v44 = vsel %vm4836_vm15, %v962_v13, %v958_v39  ;;  %v4115_v48 = vpop.eup %4114  ;;  %4122 = vrcp.f32 %v4874_v34  ;;  %v4886_v49 = vmul.f32 -1.442695, %v220_v37  ;;  %v4888_v50 = vmul.f32 -1.442695, %v219_v38 }
  0x40   : > { %2946 = vperm.xlu1 %4068, %v963_v44   ;;  %v4117_v51 = vpop.eup %4116  ;;  %v943_v52 = vsel %vm4870_vm2, %v4105_v6, %v939_v45  ;;  %v1004_v42 = vand.u32 2147483647, %v4874_v34  ;;  %4124 = vrcp.f32 %v4876_v41  ;;  %v4894_v53 = vmul.f32 -1.442695, %v218_v43 }
  0x41   : > { %v4119_v54 = vpop.eup %4118  ;;  %v948_v55 = vsel %vm4852_vm1, %v947_v19, %v943_v52  ;;  %v1006_v56 = vand.u32 2147483648, %v4874_v34  ;;  %v989_v57 = vand.u32 2147483647, %v4876_v41  ;;  %v991_v58 = vand.u32 2147483648, %v4876_v41 }
  0x42   : > { %2941 = vperm.xlu0 %4067, %v948_v55   ;;  %v1011_v59 = vmul.f32 %v4119_v54, %v4841_v20  ;;  %vm1015_vm4 = vweird.f32 %v4841_v20  ;;  %vm4903_vm3 = vcmp.eq.f32.partialorder %v1019_v46, 8.507059e+37  ;;  %4126 = vrcp.f32 %v4882_v47 }
  0x43   : > { %v4121_v61 = vpop.eup %4120  ;;  %v1022_v62 = vor.u32 1.1754944e-38, %v1021_v29  ;;  %vm1000_vm5 = vweird.f32 %v4874_v34  ;;  %vm985_vm7 = vweird.f32 %v4876_v41  ;;  %v1064_v63 = vand.u32 2147483647, %v4882_v47 }
  0x44   : > { %v1012_v35 = vsub.f32 1.0, %v1011_v59  ;;  %vm1016_vm8 = vweird.f32 %v4119_v54  ;;  %vm4911_vm9 = vcmp.eq.f32.partialorder %v1004_v42, 8.507059e+37  ;;  %v4915_v1 = vadd.f32 1.0, %v4115_v48 }
  0x45   : > { %v4917_v2 = vadd.f32 1.0, %v4117_v51  ;;  %v4123_v3 = vpop.eup %4122  ;;  %v1007_v4 = vor.u32 1.1754944e-38, %v1006_v56  ;;  %vm4919_vm10 = vcmp.eq.f32.partialorder %v989_v57, 8.507059e+37  ;;  %v992_v6 = vor.u32 1.1754944e-38, %v991_v58  ;;  %vm4929_vm12 = vmor %vm1015_vm4, %vm1016_vm8 }
  0x46   : > { %vm1060_vm11 = vweird.f32 %v4882_v47  ;;  %v4125_v7 = vpop.eup %4124  ;;  %v1013_v8 = vmul.f32 %v4119_v54, %v1012_v35  ;;  %v996_v9 = vmul.f32 %v4123_v3, %v4874_v34  ;;  %v1066_v10 = vand.u32 2147483648, %v4882_v47 }
  0x47   : > { %4128 = vrcp.f32 %v4915_v1  ;;  %v981_v12 = vmul.f32 %v4125_v7, %v4876_v41  ;;  %vm4934_vm13 = vcmp.eq.f32.partialorder %v1064_v63, 8.507059e+37  ;;  %v4938_v15 = vadd.f32 1.0, %v4121_v61 }
  0x48   : > { %4130 = vpow2.f32 %v3927_v33  ;;  %v4127_v16 = vpop.eup %4126  ;;  %v1014_v17 = vadd.f32 %v4119_v54, %v1013_v8  ;;  %v997_v18 = vsub.f32 1.0, %v996_v9  ;;  %vm1001_vm14 = vweird.f32 %v4123_v3  ;;  %v221_v9 = vld [vmem:[%s4650_s17 + $0xa8] sm:$0xff]  ;;  %v224_v33 = vld [vmem:[%s4650_s17 + $0xc0] sm:$0xff] }
  0x49   : > { %4132 = vrcp.f32 %v4917_v2  ;;  %v982_v20 = vsub.f32 1.0, %v981_v12  ;;  %vm986_vm15 = vweird.f32 %v4125_v7  ;;  %v1056_v21 = vmul.f32 %v4127_v16, %v4882_v47  ;;  %vm4951_vm0 = vmor %vm1000_vm5, %vm1001_vm14 }
  0x4a   : > { %v1049_v22 = vand.u32 2147483647, %v4915_v1  ;;  %v1018_v23 = vsel %vm4929_vm12, %v4119_v54, %v1014_v17  ;;  %v998_v24 = vmul.f32 %v4123_v3, %v997_v18  ;;  %v1067_v25 = vor.u32 1.1754944e-38, %v1066_v10  ;;  %vm4958_vm1 = vmor %vm985_vm7, %vm986_vm15 }
  0x4b   : > { %v1051_v26 = vand.u32 2147483648, %v4915_v1  ;;  %v1023_v27 = vsel %vm4903_vm3, %v1022_v62, %v1018_v23  ;;  %v983_v19 = vmul.f32 %v4125_v7, %v982_v20  ;;  %v1057_v30 = vsub.f32 1.0, %v1056_v21 }
  0x4c   : > { %vm1061_vm6 = vweird.f32 %v4127_v16  ;;  %2966 = vperm.xlu2 %4069, %v1023_v27   ;;  %v999_v32 = vadd.f32 %v4123_v3, %v998_v24  ;;  %vm1045_vm2 = vweird.f32 %v4915_v1  ;;  %4134 = vrcp.f32 %v4938_v15 }
  0x4d   : > { %v4129_v31 = vpop.eup %4128  ;;  %v4964_v37 = vmul.f32 -1.442695, %v223_v14  ;;  %v984_v39 = vadd.f32 %v4125_v7, %v983_v19  ;;  %v1058_v40 = vmul.f32 %v4127_v16, %v1057_v30  ;;  %vm4967_vm4 = vcmp.eq.f32.partialorder %v1049_v22, 8.507059e+37  ;;  %vm4976_vm3 = vmor %vm1060_vm11, %vm1061_vm6 }
  0x4e   : > { %v4131_v38 = vpop.eup %4130  ;;  %v1041_v34 = vmul.f32 %v4129_v31, %v4915_v1  ;;  %v1003_v44 = vsel %vm4951_vm0, %v4123_v3, %v999_v32  ;;  %vm1046_vm5 = vweird.f32 %v4129_v31  ;;  %v1052_v46 = vor.u32 1.1754944e-38, %v1051_v26 }
  0x4f   : > { %v4133_v41 = vpop.eup %4132  ;;  %v1034_v48 = vand.u32 2147483647, %v4917_v2  ;;  %v1008_v29 = vsel %vm4911_vm9, %v1007_v4, %v1003_v44  ;;  %v988_v51 = vsel %vm4958_vm1, %v4125_v7, %v984_v39  ;;  %v1059_v52 = vadd.f32 %v4127_v16, %v1058_v40  ;;  %vm5000_vm9 = vmor %vm1045_vm2, %vm1046_vm5  ;;  %v222_v4 = vld [vmem:[%s4650_s17 + $0xb0] sm:$0xff] }
  0x50   : > { %v1042_v42 = vsub.f32 1.0, %v1041_v34  ;;  %2961 = vperm.xlu1 %4068, %v1008_v29   ;;  %v993_v47 = vsel %vm4919_vm10, %v992_v6, %v988_v51  ;;  %v1026_v54 = vmul.f32 %v4133_v41, %v4917_v2  ;;  %vm1030_vm7 = vweird.f32 %v4917_v2 }
  0x51   : > { %v1036_v55 = vand.u32 2147483648, %v4917_v2  ;;  %2956 = vperm.xlu0 %4067, %v993_v47   ;;  %v1063_v56 = vsel %vm4976_vm3, %v4127_v16, %v1059_v52  ;;  %vm1105_vm8 = vweird.f32 %v4938_v15  ;;  %v4993_v58 = vadd.f32 1.0, %v4131_v38  ;;  %v226_v2 = vld [vmem:[%s4650_s17 + $0xd0] sm:$0xff]  ;;  %v232_v16 = vld [vmem:[%s4650_s17 + $0x100] sm:$0xff] }
  0x52   : > { %v1043_v57 = vmul.f32 %v4129_v31, %v1042_v42  ;;  %v4135_v59 = vpop.eup %4134  ;;  %v1068_v60 = vsel %vm4934_vm13, %v1067_v25, %v1063_v56  ;;  %v1027_v62 = vsub.f32 1.0, %v1026_v54  ;;  %vm1031_vm10 = vweird.f32 %v4133_v41 }
  0x53   : > { %4136 = vpow2.f32 %v4861_v36  ;;  %vm5005_vm11 = vcmp.eq.f32.partialorder %v1034_v48, 8.507059e+37  ;;  %v1101_v0 = vmul.f32 %v4135_v59, %v4938_v15  ;;  %v1109_v3 = vand.u32 2147483647, %v4938_v15  ;;  %vm5018_vm12 = vmor %vm1030_vm7, %vm1031_vm10 }
  0x54   : > { %v1044_v63 = vadd.f32 %v4129_v31, %v1043_v57  ;;  %2981 = vperm.xlu2 %4069, %v1068_v60   ;;  %v1028_v1 = vmul.f32 %v4133_v41, %v1027_v62  ;;  %v1037_v5 = vor.u32 1.1754944e-38, %v1036_v55  ;;  %v1111_v6 = vand.u32 2147483648, %v4938_v15 }
  0x55   : > { %4138 = vrcp.f32 %v4993_v58  ;;  %v1102_v8 = vsub.f32 1.0, %v1101_v0  ;;  %vm1106_vm13 = vweird.f32 %v4135_v59  ;;  %v3933_v12 = vmul.f32 -1.442695, %v222_v4 }
  0x56   : > { %v1048_v36 = vsel %vm5000_vm9, %v4129_v31, %v1044_v63  ;;  %4140 = vpow2.f32 %v4886_v49  ;;  %v1029_v11 = vadd.f32 %v4133_v41, %v1028_v1  ;;  %vm5027_vm14 = vcmp.eq.f32.partialorder %v1109_v3, 8.507059e+37  ;;  %vm5037_vm15 = vmor %vm1105_vm8, %vm1106_vm13 }
  0x57   : > { %v1053_v10 = vsel %vm4967_vm4, %v1052_v46, %v1048_v36  ;;  %4142 = vpow2.f32 %v4888_v50  ;;  %v1103_v13 = vmul.f32 %v4135_v59, %v1102_v8  ;;  %v1112_v50 = vor.u32 1.1754944e-38, %v1111_v6 }
  0x58   : > { %4144 = vpow2.f32 %v4894_v53  ;;  %2976 = vperm.xlu1 %4068, %v1053_v10   ;;  %v1033_v49 = vsel %vm5018_vm12, %v4133_v41, %v1029_v11  ;;  %v1094_v20 = vand.u32 2147483647, %v4993_v58  ;;  %v3932_v21 = vmul.f32 -1.442695, %v221_v9 }
  0x59   : > { %v4137_v17 = vpop.eup %4136  ;;  %v1038_v53 = vsel %vm5005_vm11, %v1037_v5, %v1033_v49  ;;  %v1104_v22 = vadd.f32 %v4135_v59, %v1103_v13  ;;  %4146 = vpow2.f32 %v4964_v37  ;;  %vm1090_vm0 = vweird.f32 %v4993_v58 }
  0x5a   : > { %v5044_v14 = vadd.f32 1.0, %v4137_v17  ;;  %2971 = vperm.xlu0 %4067, %v1038_v53   ;;  %4148 = vpow2.f32 %v3933_v12  ;;  %v3937_v15 = vmul.f32 -1.442695, %v226_v2  ;;  %v1096_v27 = vand.u32 2147483648, %v4993_v58 }
  0x5b   : > { %v4139_v23 = vpop.eup %4138  ;;  %v1108_v25 = vsel %vm5037_vm15, %v4135_v59, %v1104_v22  ;;  %vm5056_vm6 = vcmp.eq.f32.partialorder %v1094_v20, 8.507059e+37  ;;  %v3936_v41 = vmul.f32 -1.442695, %v225_v28  ;;  %v5070_v48 = vmul.f32 -1.442695, %v224_v33 }
  0x5c   : > { %v4141_v24 = vpop.eup %4140  ;;  %v1086_v26 = vmul.f32 %v4139_v23, %v4993_v58  ;;  %4150 = vrcp.f32 %v5044_v14  ;;  %v1113_v30 = vsel %vm5027_vm14, %v1112_v50, %v1108_v25  ;;  %v1079_v32 = vand.u32 2147483647, %v5044_v14 }
  0x5d   : > { %v4143_v19 = vpop.eup %4142  ;;  %4152 = vpow2.f32 %v3932_v21  ;;  %2996 = vperm.xlu2 %4069, %v1113_v30   ;;  %vm1091_vm1 = vweird.f32 %v4139_v23  ;;  %v5062_v39 = vadd.f32 1.0, %v4141_v24  ;;  %v1081_v34 = vand.u32 2147483648, %v5044_v14 }
  0x5e   : > { %v4145_v37 = vpop.eup %4144  ;;  %v1087_v38 = vsub.f32 1.0, %v1086_v26  ;;  %v5064_v40 = vadd.f32 1.0, %v4143_v19  ;;  %4154 = vpow2.f32 %v3937_v15  ;;  %v1097_v46 = vor.u32 1.1754944e-38, %v1096_v27  ;;  %vm5074_vm2 = vmor %vm1090_vm0, %vm1091_vm1 }
  0x5f   : > { %v5067_v43 = vadd.f32 1.0, %v4145_v37  ;;  %v4147_v44 = vpop.eup %4146  ;;  %4156 = vrcp.f32 %v5062_v39  ;;  %vm1075_vm4 = vweird.f32 %v5044_v14  ;;  %vm5079_vm3 = vcmp.eq.f32.partialorder %v1079_v32, 8.507059e+37 }
  0x60   : > { %v1088_v45 = vmul.f32 %v4139_v23, %v1087_v38  ;;  %v4149_v29 = vpop.eup %4148  ;;  %v1154_v42 = vand.u32 2147483647, %v5062_v39  ;;  %4158 = vrcp.f32 %v5064_v40  ;;  %v1156_v55 = vand.u32 2147483648, %v5062_v39 }
  0x61   : > { %v1139_v56 = vand.u32 2147483647, %v5064_v40  ;;  %4160 = vrcp.f32 %v5067_v43  ;;  %v1082_v59 = vor.u32 1.1754944e-38, %v1081_v34  ;;  %v1141_v60 = vand.u32 2147483648, %v5064_v40 }
  0x62   : > { %v4151_v47 = vpop.eup %4150  ;;  %v1089_v54 = vadd.f32 %v4139_v23, %v1088_v45  ;;  %4162 = vpow2.f32 %v3936_v41  ;;  %vm1150_vm5 = vweird.f32 %v5062_v39  ;;  %vm1135_vm7 = vweird.f32 %v5064_v40 }
  0x63   : > { %v4153_v57 = vpop.eup %4152  ;;  %v1071_v58 = vmul.f32 %v4151_v47, %v5044_v14  ;;  %v1124_v62 = vand.u32 2147483647, %v5067_v43  ;;  %vm1076_vm8 = vweird.f32 %v4151_v47  ;;  %v5097_v3 = vadd.f32 1.0, %v4147_v44 }
  0x64   : > { %v1093_v61 = vsel %vm5074_vm2, %v4139_v23, %v1089_v54  ;;  %v4155_v63 = vpop.eup %4154  ;;  %vm5099_vm9 = vcmp.eq.f32.partialorder %v1154_v42, 8.507059e+37  ;;  %v1157_v5 = vor.u32 1.1754944e-38, %v1156_v55  ;;  %vm5103_vm10 = vcmp.eq.f32.partialorder %v1139_v56, 8.507059e+37  ;;  %vm5113_vm12 = vmor %vm1075_vm4, %vm1076_vm8 }
  0x65   : > { %v1098_v35 = vsel %vm5056_vm6, %v1097_v46, %v1093_v61  ;;  %v1072_v0 = vsub.f32 1.0, %v1071_v58  ;;  %v4157_v4 = vpop.eup %4156  ;;  %v5107_v36 = vadd.f32 1.0, %v4149_v29  ;;  %v1142_v10 = vor.u32 1.1754944e-38, %v1141_v60 }
  0x66   : > { %2991 = vperm.xlu1 %4068, %v1098_v35   ;;  %v4159_v7 = vpop.eup %4158  ;;  %v1146_v9 = vmul.f32 %v4157_v4, %v5062_v39  ;;  %vm1120_vm11 = vweird.f32 %v5067_v43  ;;  %vm5118_vm13 = vcmp.eq.f32.partialorder %v1124_v62, 8.507059e+37  ;;  %v1126_v2 = vand.u32 2147483648, %v5067_v43 }
  0x67   : > { %v1073_v8 = vmul.f32 %v4151_v47, %v1072_v0  ;;  %v4161_v11 = vpop.eup %4160  ;;  %v1131_v13 = vmul.f32 %v4159_v7, %v5064_v40  ;;  %4164 = vrcp.f32 %v5097_v3  ;;  %vm1151_vm14 = vweird.f32 %v4157_v4 }
  0x68   : > { %v4163_v17 = vpop.eup %4162  ;;  %v1147_v18 = vsub.f32 1.0, %v1146_v9  ;;  %v1116_v50 = vmul.f32 %v4161_v11, %v5067_v43  ;;  %vm1136_vm15 = vweird.f32 %v4159_v7  ;;  %4166 = vrcp.f32 %v5107_v36  ;;  %vm5134_vm6 = vmor %vm1150_vm5, %vm1151_vm14 }
  0x69   : > { %v1074_v49 = vadd.f32 %v4151_v47, %v1073_v8  ;;  %v1132_v20 = vsub.f32 1.0, %v1131_v13  ;;  %v5126_v21 = vadd.f32 1.0, %v4153_v57  ;;  %vm1121_vm0 = vweird.f32 %v4161_v11  ;;  %vm5142_vm1 = vmor %vm1135_vm7, %vm1136_vm15  ;;  %v227_v13 = vld [vmem:[%s4650_s17 + $0xd8] sm:$0xff] }
  0x6a   : > { %v1148_v22 = vmul.f32 %v4157_v4, %v1147_v18  ;;  %v1117_v14 = vsub.f32 1.0, %v1116_v50  ;;  %v1127_v25 = vor.u32 1.1754944e-38, %v1126_v2  ;;  %v5138_v26 = vadd.f32 1.0, %v4155_v63  ;;  %vm5150_vm4 = vmor %vm1120_vm11, %vm1121_vm0 }
  0x6b   : > { %v1078_v53 = vsel %vm5113_vm12, %v4151_v47, %v1074_v49  ;;  %v1133_v24 = vmul.f32 %v4159_v7, %v1132_v20  ;;  %vm1195_vm2 = vweird.f32 %v5097_v3  ;;  %v1199_v30 = vand.u32 2147483647, %v5097_v3  ;;  %v231_v20 = vld [vmem:[%s4650_s17 + $0xf8] sm:$0xff] }
  0x6c   : > { %v1083_v23 = vsel %vm5079_vm3, %v1082_v59, %v1078_v53  ;;  %v1149_v27 = vadd.f32 %v4157_v4, %v1148_v22  ;;  %v1118_v19 = vmul.f32 %v4161_v11, %v1117_v14  ;;  %v1201_v37 = vand.u32 2147483648, %v5097_v3 }
  0x6d   : > { %2986 = vperm.xlu0 %4067, %v1083_v23   ;;  %v4165_v31 = vpop.eup %4164  ;;  %v1134_v32 = vadd.f32 %v4159_v7, %v1133_v24  ;;  %vm1180_vm3 = vweird.f32 %v5107_v36  ;;  %4168 = vrcp.f32 %v5126_v21  ;;  %v1184_v34 = vand.u32 2147483647, %v5107_v36 }
  0x6e   : > { %v1153_v38 = vsel %vm5134_vm6, %v4157_v4, %v1149_v27  ;;  %v1119_v39 = vadd.f32 %v4161_v11, %v1118_v19  ;;  %v1191_v40 = vmul.f32 %v4165_v31, %v5097_v3  ;;  %v4167_v41 = vpop.eup %4166  ;;  %vm1196_vm5 = vweird.f32 %v4165_v31  ;;  %v229_v4 = vld [vmem:[%s4650_s17 + $0xe8] sm:$0xff] }
  0x6f   : > { %v1158_v43 = vsel %vm5099_vm9, %v1157_v5, %v1153_v38  ;;  %v1138_v44 = vsel %vm5142_vm1, %v4159_v7, %v1134_v32  ;;  %v1186_v45 = vand.u32 2147483648, %v5107_v36  ;;  %v1176_v52 = vmul.f32 %v4167_v41, %v5107_v36  ;;  %vm5182_vm9 = vmor %vm1195_vm2, %vm1196_vm5  ;;  %v228_v7 = vld [vmem:[%s4650_s17 + $0xe0] sm:$0xff] }
  0x70   : > { %3011 = vperm.xlu2 %4069, %v1158_v43   ;;  %v1143_v46 = vsel %vm5103_vm10, %v1142_v10, %v1138_v44  ;;  %v1123_v29 = vsel %vm5150_vm4, %v4161_v11, %v1119_v39  ;;  %v1192_v51 = vsub.f32 1.0, %v1191_v40  ;;  %vm5173_vm7 = vcmp.eq.f32.partialorder %v1199_v30, 8.507059e+37  ;;  %v235_v43 = vld [vmem:[%s4650_s17 + $0x118] sm:$0xff] }
  0x71   : > { %3006 = vperm.xlu1 %4068, %v1143_v46   ;;  %v1128_v42 = vsel %vm5118_vm13, %v1127_v25, %v1123_v29  ;;  %v1202_v54 = vor.u32 1.1754944e-38, %v1201_v37  ;;  %v1169_v55 = vand.u32 2147483647, %v5126_v21  ;;  %v1177_v57 = vsub.f32 1.0, %v1176_v52  ;;  %v234_v52 = vld [vmem:[%s4650_s17 + $0x110] sm:$0xff] }
  0x72   : > { %v1193_v56 = vmul.f32 %v4165_v31, %v1192_v51  ;;  %vm1181_vm8 = vweird.f32 %v4167_v41  ;;  %4170 = vrcp.f32 %v5138_v26  ;;  %vm5186_vm10 = vcmp.eq.f32.partialorder %v1184_v34, 8.507059e+37 }
  0x73   : > { %v4169_v58 = vpop.eup %4168  ;;  %vm1165_vm11 = vweird.f32 %v5126_v21  ;;  %v1171_v61 = vand.u32 2147483648, %v5126_v21  ;;  %v5192_v62 = vadd.f32 1.0, %v4163_v17  ;;  %v1178_v35 = vmul.f32 %v4167_v41, %v1177_v57  ;;  %vm5198_vm12 = vmor %vm1180_vm3, %vm1181_vm8 }
  0x74   : > { %v1194_v63 = vadd.f32 %v4165_v31, %v1193_v56  ;;  %v1187_v0 = vor.u32 1.1754944e-38, %v1186_v45  ;;  %v1161_v3 = vmul.f32 %v4169_v58, %v5126_v21  ;;  %vm5202_vm13 = vcmp.eq.f32.partialorder %v1169_v55, 8.507059e+37  ;;  %v230_v21 = vld [vmem:[%s4650_s17 + $0xf0] sm:$0xff] }
  0x75   : > { %3001 = vperm.xlu0 %4067, %v1128_v42   ;;  %vm1240_vm14 = vweird.f32 %v5138_v26  ;;  %v1246_v6 = vand.u32 2147483648, %v5138_v26  ;;  %4172 = vrcp.f32 %v5192_v62  ;;  %v1179_v36 = vadd.f32 %v4167_v41, %v1178_v35  ;;  %v233_v42 = vld [vmem:[%s4650_s17 + $0x108] sm:$0xff] }
  0x76   : > { %v1198_v8 = vsel %vm5182_vm9, %v4165_v31, %v1194_v63  ;;  %v1162_v9 = vsub.f32 1.0, %v1161_v3  ;;  %vm1166_vm15 = vweird.f32 %v4169_v58  ;;  %v1172_v11 = vor.u32 1.1754944e-38, %v1171_v61 }
  0x77   : > { %v1203_v10 = vsel %vm5173_vm7, %v1202_v54, %v1198_v8  ;;  %4174 = vpow2.f32 %v5070_v48  ;;  %v3940_v12 = vmul.f32 -1.442695, %v229_v4  ;;  %v1183_v17 = vsel %vm5198_vm12, %v4167_v41, %v1179_v36  ;;  %vm5226_vm0 = vmor %vm1165_vm11, %vm1166_vm15 }
  0x78   : > { %v4171_v2 = vpop.eup %4170  ;;  %3026 = vperm.xlu2 %4069, %v1203_v10   ;;  %v1163_v49 = vmul.f32 %v4169_v58, %v1162_v9  ;;  %v1244_v18 = vand.u32 2147483647, %v5138_v26  ;;  %v3939_v50 = vmul.f32 -1.442695, %v228_v7  ;;  %v1188_v53 = vsel %vm5186_vm10, %v1187_v0, %v1183_v17  ;;  %v2784_v17 = vld [vmem:[%s5383_s20 + $0x20] sm:$0xff] }
  0x79   : > { %v1236_v22 = vmul.f32 %v4171_v2, %v5138_v26  ;;  %v1247_v14 = vor.u32 1.1754944e-38, %v1246_v6  ;;  %v1229_v23 = vand.u32 2147483647, %v5192_v62  ;;  %3021 = vperm.xlu1 %4068, %v1188_v53   ;;  %4176 = vpow2.f32 %v3940_v12 }
  0x7a   : > { %v1164_v15 = vadd.f32 %v4169_v58, %v1163_v49  ;;  %v3938_v24 = vmul.f32 -1.442695, %v227_v13  ;;  %v3943_v25 = vmul.f32 -1.442695, %v232_v16  ;;  %vm1241_vm6 = vweird.f32 %v4171_v2 }
  0x7b   : > { %v4173_v27 = vpop.eup %4172  ;;  %v1237_v28 = vsub.f32 1.0, %v1236_v22  ;;  %4178 = vpow2.f32 %v3939_v50  ;;  %v3942_v19 = vmul.f32 -1.442695, %v231_v20  ;;  %v1231_v32 = vand.u32 2147483648, %v5192_v62  ;;  %vm5242_vm2 = vmor %vm1240_vm14, %vm1241_vm6 }
  0x7c   : > { %v1168_v30 = vsel %vm5226_vm0, %v4169_v58, %v1164_v15  ;;  %v1221_v31 = vmul.f32 %v4173_v27, %v5192_v62  ;;  %4180 = vpow2.f32 %v3938_v24  ;;  %vm1225_vm1 = vweird.f32 %v5192_v62 }
  0x7d   : > { %v4175_v33 = vpop.eup %4174  ;;  %v1173_v37 = vsel %vm5202_vm13, %v1172_v11, %v1168_v30  ;;  %v1238_v38 = vmul.f32 %v4171_v2, %v1237_v28  ;;  %4182 = vpow2.f32 %v3943_v25  ;;  %vm1226_vm4 = vweird.f32 %v4173_v27 }
  0x7e   : > { %3016 = vperm.xlu0 %4067, %v1173_v37   ;;  %v1222_v40 = vsub.f32 1.0, %v1221_v31  ;;  %v5246_v34 = vadd.f32 1.0, %v4175_v33  ;;  %v3941_v41 = vmul.f32 -1.442695, %v230_v21  ;;  %vm5249_vm3 = vcmp.eq.f32.partialorder %v1244_v18, 8.507059e+37  ;;  %vm5265_vm7 = vmor %vm1225_vm1, %vm1226_vm4 }
  0x7f   : > { %v1239_v44 = vadd.f32 %v4171_v2, %v1238_v38  ;;  %4184 = vpow2.f32 %v3942_v19  ;;  %v4177_v46 = vpop.eup %4176  ;;  %vm5253_vm5 = vcmp.eq.f32.partialorder %v1229_v23, 8.507059e+37  ;;  %v1232_v51 = vor.u32 1.1754944e-38, %v1231_v32 }
  0x80   : > { %v1223_v29 = vmul.f32 %v4173_v27, %v1222_v40  ;;  %4186 = vrcp.f32 %v5246_v34  ;;  %v1214_v56 = vand.u32 2147483647, %v5246_v34  ;;  %v5270_v57 = vadd.f32 1.0, %v4177_v46 }
  0x81   : > { %v4179_v47 = vpop.eup %4178  ;;  %v1243_v54 = vsel %vm5242_vm2, %v4171_v2, %v1239_v44  ;;  %v3946_v58 = vmul.f32 -1.442695, %v235_v43  ;;  %4188 = vpow2.f32 %v3941_v41  ;;  %v1216_v62 = vand.u32 2147483648, %v5246_v34 }
  0x82   : > { %v4181_v59 = vpop.eup %4180  ;;  %v1248_v60 = vsel %vm5249_vm3, %v1247_v14, %v1243_v54  ;;  %v1224_v61 = vadd.f32 %v4173_v27, %v1223_v29  ;;  %v5274_v63 = vadd.f32 1.0, %v4179_v47  ;;  %4190 = vrcp.f32 %v5270_v57 }
  0x83   : > { %v4183_v35 = vpop.eup %4182  ;;  %3041 = vperm.xlu2 %4069, %v1248_v60   ;;  %v5278_v0 = vmul.f32 -1.442695, %v234_v52  ;;  %v5280_v3 = vmul.f32 -1.442695, %v233_v42  ;;  %vm1210_vm8 = vweird.f32 %v5246_v34  ;;  %v1289_v1 = vand.u32 2147483647, %v5270_v57 }
  0x84   : > { %v1228_v4 = vsel %vm5265_vm7, %v4173_v27, %v1224_v61  ;;  %4192 = vrcp.f32 %v5274_v63  ;;  %vm5289_vm9 = vcmp.eq.f32.partialorder %v1214_v56, 8.507059e+37  ;;  %v1291_v8 = vand.u32 2147483648, %v5270_v57 }
  0x85   : > { %v4185_v5 = vpop.eup %4184  ;;  %v1233_v6 = vsel %vm5253_vm5, %v1232_v51, %v1228_v4  ;;  %4194 = vpow2.f32 %v3946_v58  ;;  %v1274_v9 = vand.u32 2147483647, %v5274_v63  ;;  %v1276_v10 = vand.u32 2147483648, %v5274_v63 }
  0x86   : > { %v4187_v36 = vpop.eup %4186  ;;  %3036 = vperm.xlu1 %4068, %v1233_v6   ;;  %v5296_v11 = vadd.f32 1.0, %v4181_v59  ;;  %v5298_v12 = vadd.f32 1.0, %v4183_v35  ;;  %v1217_v16 = vor.u32 1.1754944e-38, %v1216_v62  ;;  %vm1285_vm10 = vweird.f32 %v5270_v57  ;;  %v242_v62 = vld [vmem:[%s4650_s17 + $0x150] sm:$0xff] }
  0x87   : > { %v1206_v13 = vmul.f32 %v4187_v36, %v5246_v34  ;;  %vm1270_vm11 = vweird.f32 %v5274_v63  ;;  %v4189_v2 = vpop.eup %4188  ;;  %vm1211_vm12 = vweird.f32 %v4187_v36  ;;  %vm5303_vm13 = vcmp.eq.f32.partialorder %v1289_v1, 8.507059e+37 }
  0x88   : > { %4196 = vrcp.f32 %v5296_v11  ;;  %v5308_v49 = vadd.f32 1.0, %v4185_v5  ;;  %v4191_v18 = vpop.eup %4190  ;;  %v1259_v20 = vand.u32 2147483647, %v5296_v11  ;;  %v1261_v53 = vand.u32 2147483648, %v5296_v11  ;;  %vm5324_vm6 = vmor %vm1210_vm8, %vm1211_vm12 }
  0x89   : > { %v1207_v50 = vsub.f32 1.0, %v1206_v13  ;;  %4198 = vrcp.f32 %v5298_v12  ;;  %v1281_v22 = vmul.f32 %v4191_v18, %v5270_v57  ;;  %v1292_v14 = vor.u32 1.1754944e-38, %v1291_v8 }
  0x8a   : > { %v4193_v48 = vpop.eup %4192  ;;  %vm5314_vm14 = vcmp.eq.f32.partialorder %v1274_v9, 8.507059e+37  ;;  %v1277_v15 = vor.u32 1.1754944e-38, %v1276_v10  ;;  %vm1255_vm15 = vweird.f32 %v5296_v11  ;;  %vm1330_vm0 = vweird.f32 %v5298_v12 }
  0x8b   : > { %v4195_v24 = vpop.eup %4194  ;;  %v1208_v25 = vmul.f32 %v4187_v36, %v1207_v50  ;;  %v1266_v27 = vmul.f32 %v4193_v48, %v5274_v63  ;;  %v1282_v19 = vsub.f32 1.0, %v1281_v22  ;;  %vm1286_vm1 = vweird.f32 %v4191_v18  ;;  %v238_v22 = vld [vmem:[%s4650_s17 + $0x130] sm:$0xff] }
  0x8c   : > { %v1334_v21 = vand.u32 2147483647, %v5298_v12  ;;  %4200 = vrcp.f32 %v5308_v49  ;;  %vm1271_vm2 = vweird.f32 %v4193_v48  ;;  %vm5330_vm4 = vcmp.eq.f32.partialorder %v1259_v20, 8.507059e+37  ;;  %vm5343_vm5 = vmor %vm1285_vm10, %vm1286_vm1 }
  0x8d   : > { %v1209_v30 = vadd.f32 %v4187_v36, %v1208_v25  ;;  %v1267_v31 = vsub.f32 1.0, %v1266_v27  ;;  %v1262_v33 = vor.u32 1.1754944e-38, %v1261_v53  ;;  %v1283_v38 = vmul.f32 %v4191_v18, %v1282_v19  ;;  %vm5354_vm7 = vmor %vm1270_vm11, %vm1271_vm2 }
  0x8e   : > { %v4197_v37 = vpop.eup %4196  ;;  %v1336_v39 = vand.u32 2147483648, %v5298_v12  ;;  %vm1315_vm3 = vweird.f32 %v5308_v49  ;;  %v5336_v40 = vadd.f32 1.0, %v4189_v2  ;;  %v1319_v46 = vand.u32 2147483647, %v5308_v49 }
  0x8f   : > { %v4199_v34 = vpop.eup %4198  ;;  %v1213_v41 = vsel %vm5324_vm6, %v4187_v36, %v1209_v30  ;;  %v1268_v44 = vmul.f32 %v4193_v48, %v1267_v31  ;;  %v1251_v45 = vmul.f32 %v4197_v37, %v5296_v11  ;;  %v1284_v26 = vadd.f32 %v4191_v18, %v1283_v38  ;;  %v2932_v36 = vpop.permute.xlu2 %2931 }
  0x90   : > { %v1218_v29 = vsel %vm5289_vm9, %v1217_v16, %v1213_v41  ;;  %v1326_v52 = vmul.f32 %v4199_v34, %v5298_v12  ;;  %v1321_v42 = vand.u32 2147483648, %v5308_v49  ;;  %vm1256_vm8 = vweird.f32 %v4197_v37 }
  0x91   : > { %3031 = vperm.xlu0 %4067, %v1218_v29   ;;  %v1269_v47 = vadd.f32 %v4193_v48, %v1268_v44  ;;  %v1252_v54 = vsub.f32 1.0, %v1251_v45  ;;  %v5360_v55 = vadd.f32 1.0, %v4195_v24  ;;  %v1288_v57 = vsel %vm5343_vm5, %v4191_v18, %v1284_v26  ;;  %vm5374_vm10 = vmor %vm1255_vm15, %vm1256_vm8 }
  0x92   : > { %v4201_v56 = vpop.eup %4200  ;;  %v1327_v58 = vsub.f32 1.0, %v1326_v52  ;;  %vm1331_vm9 = vweird.f32 %v4199_v34  ;;  %4202 = vrcp.f32 %v5336_v40  ;;  %v1293_v59 = vsel %vm5303_vm13, %v1292_v14, %v1288_v57  ;;  %v237_v14 = vld [vmem:[%s4650_s17 + $0x128] sm:$0xff]  ;;  %v240_v52 = vld [vmem:[%s4650_s17 + $0x140] sm:$0xff] }
  0x93   : > { %v1273_v60 = vsel %vm5354_vm7, %v4193_v48, %v1269_v47  ;;  %v1253_v61 = vmul.f32 %v4197_v37, %v1252_v54  ;;  %v1311_v63 = vmul.f32 %v4201_v56, %v5308_v49  ;;  %3056 = vperm.xlu2 %4069, %v1293_v59   ;;  %v1337_v1 = vor.u32 1.1754944e-38, %v1336_v39  ;;  %vm5388_vm11 = vmor %vm1330_vm0, %vm1331_vm9  ;;  %v236_v49 = vld [vmem:[%s4650_s17 + $0x120] sm:$0xff] }
  0x94   : > { %v1278_v35 = vsel %vm5314_vm14, %v1277_v15, %v1273_v60  ;;  %v1328_v4 = vmul.f32 %v4199_v34, %v1327_v58  ;;  %v1304_v5 = vand.u32 2147483647, %v5336_v40  ;;  %vm1316_vm12 = vweird.f32 %v4201_v56  ;;  %v244_v59 = vld [vmem:[%s4650_s17 + $0x160] sm:$0xff] }
  0x95   : > { %3051 = vperm.xlu1 %4068, %v1278_v35   ;;  %v1254_v6 = vadd.f32 %v4197_v37, %v1253_v61  ;;  %v1312_v8 = vsub.f32 1.0, %v1311_v63  ;;  %4204 = vrcp.f32 %v5360_v55  ;;  %vm5393_vm13 = vcmp.eq.f32.partialorder %v1334_v21, 8.507059e+37  ;;  %vm5413_vm0 = vmor %vm1315_vm3, %vm1316_vm12 }
  0x96   : > { %v1329_v9 = vadd.f32 %v4199_v34, %v1328_v4  ;;  %vm5397_vm14 = vcmp.eq.f32.partialorder %v1319_v46, 8.507059e+37  ;;  %v1322_v12 = vor.u32 1.1754944e-38, %v1321_v42  ;;  %vm1300_vm15 = vweird.f32 %v5336_v40 }
  0x97   : > { %v1258_v13 = vsel %vm5374_vm10, %v4197_v37, %v1254_v6  ;;  %v1313_v16 = vmul.f32 %v4201_v56, %v1312_v8  ;;  %v1306_v2 = vand.u32 2147483648, %v5336_v40  ;;  %vm5417_vm6 = vcmp.eq.f32.partialorder %v1304_v5, 8.507059e+37  ;;  %v2937_v41 = vpop.permute.xlu2 %2936 }
  0x98   : > { %v4203_v18 = vpop.eup %4202  ;;  %v1263_v50 = vsel %vm5330_vm4, %v1262_v33, %v1258_v13  ;;  %v1333_v20 = vsel %vm5388_vm11, %v4199_v34, %v1329_v9  ;;  %4206 = vpow2.f32 %v5278_v0  ;;  %vm1375_vm1 = vweird.f32 %v5360_v55  ;;  %v241_v33 = vld [vmem:[%s4650_s17 + $0x148] sm:$0xff] }
  0x99   : > { %3046 = vperm.xlu0 %4067, %v1263_v50   ;;  %v1338_v23 = vsel %vm5393_vm13, %v1337_v1, %v1333_v20  ;;  %v1314_v15 = vadd.f32 %v4201_v56, %v1313_v16  ;;  %v1296_v24 = vmul.f32 %v4203_v18, %v5336_v40  ;;  %vm1301_vm2 = vweird.f32 %v4203_v18  ;;  %v2785_v34 = vld [vmem:[%s5383_s20 + $0x28] sm:$0xff]  ;;  %v239_v40 = vld [vmem:[%s4650_s17 + $0x138] sm:$0xff] }
  0x9a   : > { %4208 = vpow2.f32 %v5280_v3  ;;  %vm3683_vm4 = vcmask 400384   ;;  %v3558_v0 = vmul.f32 %v2932_v36, %v2784_v17  ;;  %v3949_v19 = vmul.f32 -1.442695, %v238_v22  ;;  %vm5450_vm3 = vmor %vm1300_vm15, %vm1301_vm2 }
  0x9b   : > { %v4205_v25 = vpop.eup %4204  ;;  %v1318_v27 = vsel %vm5413_vm0, %v4201_v56, %v1314_v15  ;;  %v1297_v28 = vsub.f32 1.0, %v1296_v24  ;;  %v3948_v21 = vmul.f32 -1.442695, %v237_v14  ;;  %3071 = vperm.xlu2 %4069, %v1338_v23   ;;  %v1379_v32 = vand.u32 2147483647, %v5360_v55  ;;  %v247_v14 = vld [vmem:[%s4650_s17 + $0x178] sm:$0xff] }
  0x9c   : > { %v1323_v30 = vsel %vm5397_vm14, %v1322_v12, %v1318_v27  ;;  %v1371_v31 = vmul.f32 %v4205_v25, %v5360_v55  ;;  %3688 = vst.msk [vmem:[%s5432_s23 + $0x20] sm:$0xff] %vm3683_vm4, %v3558_v0  ;;  %v3947_v3 = vmul.f32 -1.442695, %v236_v49  ;;  %v1307_v38 = vor.u32 1.1754944e-38, %v1306_v2 }
  0x9d   : > { %3066 = vperm.xlu1 %4068, %v1323_v30   ;;  %v1298_v37 = vmul.f32 %v4203_v18, %v1297_v28  ;;  %v1381_v39 = vand.u32 2147483648, %v5360_v55  ;;  %4210 = vpow2.f32 %v3949_v19  ;;  %vm1376_vm5 = vweird.f32 %v4205_v25  ;;  %v243_v55 = vld [vmem:[%s4650_s17 + $0x158] sm:$0xff] }
  0x9e   : > { %v4207_v43 = vpop.eup %4206  ;;  %v1372_v45 = vsub.f32 1.0, %v1371_v31  ;;  %4212 = vpow2.f32 %v3948_v21  ;;  %v3559_v46 = vmul.f32 %v2937_v41, %v2785_v34  ;;  %v3952_v51 = vmul.f32 -1.442695, %v241_v33  ;;  %vm5464_vm7 = vmor %vm1375_vm1, %vm1376_vm5  ;;  %v2791_v28 = vld [vmem:[%s5383_s20 + $0x58] sm:$0xff]  ;;  %v2782_v33 = vld [vmem:[%s5383_s20 + $0x10] sm:$0xff] }
  0x9f   : > { %v1299_v29 = vadd.f32 %v4203_v18, %v1298_v37  ;;  %v5454_v26 = vadd.f32 1.0, %v4207_v43  ;;  %4214 = vpow2.f32 %v3947_v3  ;;  %vm5468_vm8 = vcmp.eq.f32.partialorder %v1379_v32, 8.507059e+37 }
  0xa0   : > { %v4209_v42 = vpop.eup %4208  ;;  %v1373_v47 = vmul.f32 %v4205_v25, %v1372_v45  ;;  %3689 = vst.msk [vmem:[%s5432_s23 + $0x28] sm:$0xff] %vm3683_vm4, %v3559_v46  ;;  %v1382_v58 = vor.u32 1.1754944e-38, %v1381_v39  ;;  %v3951_v35 = vmul.f32 -1.442695, %v240_v52  ;;  %v3950_v5 = vmul.f32 -1.442695, %v239_v40  ;;  %v5548_v52 = vpop.permute.xlu2 %2951 }
  0xa1   : > { %v1303_v54 = vsel %vm5450_vm3, %v4203_v18, %v1299_v29  ;;  %4216 = vrcp.f32 %v5454_v26  ;;  %v5476_v63 = vadd.f32 1.0, %v4209_v42  ;;  %v1364_v1 = vand.u32 2147483647, %v5454_v26  ;;  %v250_v40 = vld [vmem:[%s4650_s17 + $0x190] sm:$0xff] }
  0xa2   : > { %v1308_v60 = vsel %vm5417_vm6, %v1307_v38, %v1303_v54  ;;  %v1374_v61 = vadd.f32 %v4205_v25, %v1373_v47  ;;  %4218 = vpow2.f32 %v3952_v51  ;;  %v1366_v8 = vand.u32 2147483648, %v5454_v26 }
  0xa3   : > { %v4211_v4 = vpop.eup %4210  ;;  %3061 = vperm.xlu0 %4067, %v1308_v60   ;;  %4220 = vrcp.f32 %v5476_v63  ;;  %v5485_v36 = vmul.f32 -1.442695, %v244_v59  ;;  %v5491_v12 = vmul.f32 -1.442695, %v243_v55  ;;  %v5493_v13 = vmul.f32 -1.442695, %v242_v62 }
  0xa4   : > { %v4213_v6 = vpop.eup %4212  ;;  %v1378_v7 = vsel %vm5464_vm7, %v4205_v25, %v1374_v61  ;;  %v5489_v11 = vadd.f32 1.0, %v4211_v4  ;;  %vm1360_vm9 = vweird.f32 %v5454_v26  ;;  %4222 = vpow2.f32 %v3951_v35 }
  0xa5   : > { %v4215_v9 = vpop.eup %4214  ;;  %v1383_v10 = vsel %vm5468_vm8, %v1382_v58, %v1378_v7  ;;  %v5496_v16 = vadd.f32 1.0, %v4213_v6  ;;  %vm5500_vm10 = vcmp.eq.f32.partialorder %v1364_v1, 8.507059e+37  ;;  %v1349_v50 = vand.u32 2147483647, %v5476_v63 }
  0xa6   : > { %3086 = vperm.xlu2 %4069, %v1383_v10   ;;  %v5498_v2 = vadd.f32 1.0, %v4215_v9  ;;  %v1351_v20 = vand.u32 2147483648, %v5476_v63  ;;  %4224 = vrcp.f32 %v5489_v11  ;;  %v1367_v48 = vor.u32 1.1754944e-38, %v1366_v8 }
  0xa7   : > { %v4217_v17 = vpop.eup %4216  ;;  %v1424_v22 = vand.u32 2147483647, %v5489_v11  ;;  %4226 = vpow2.f32 %v3950_v5  ;;  %vm1345_vm12 = vweird.f32 %v5476_v63  ;;  %v1426_v15 = vand.u32 2147483648, %v5489_v11 }
  0xa8   : > { %v1356_v53 = vmul.f32 %v4217_v17, %v5454_v26  ;;  %v4219_v23 = vpop.eup %4218  ;;  %vm1361_vm11 = vweird.f32 %v4217_v17  ;;  %4228 = vrcp.f32 %v5496_v16  ;;  %v1409_v0 = vand.u32 2147483647, %v5496_v16 }
  0xa9   : > { %v4221_v24 = vpop.eup %4220  ;;  %v1411_v25 = vand.u32 2147483648, %v5496_v16  ;;  %4230 = vrcp.f32 %v5498_v2  ;;  %vm5517_vm13 = vcmp.eq.f32.partialorder %v1349_v50, 8.507059e+37  ;;  %v1352_v19 = vor.u32 1.1754944e-38, %v1351_v20  ;;  %vm5532_vm6 = vmor %vm1360_vm9, %vm1361_vm11 }
  0xaa   : > { %v1357_v49 = vsub.f32 1.0, %v1356_v53  ;;  %v1341_v27 = vmul.f32 %v4221_v24, %v5476_v63  ;;  %v5521_v21 = vmul.f32 -1.442695, %v247_v14  ;;  %v4223_v30 = vpop.eup %4222  ;;  %vm1420_vm14 = vweird.f32 %v5489_v11 }
  0xab   : > { %vm5524_vm15 = vcmp.eq.f32.partialorder %v1424_v22, 8.507059e+37  ;;  %vm1405_vm0 = vweird.f32 %v5496_v16  ;;  %vm1346_vm1 = vweird.f32 %v4221_v24  ;;  %v1427_v38 = vor.u32 1.1754944e-38, %v1426_v15  ;;  %v2788_v15 = vld [vmem:[%s5383_s20 + $0x40] sm:$0xff] }
  0xac   : > { %v1358_v31 = vmul.f32 %v4217_v17, %v1357_v49  ;;  %v4225_v3 = vpop.eup %4224  ;;  %v1342_v37 = vsub.f32 1.0, %v1341_v27  ;;  %v5536_v39 = vadd.f32 1.0, %v4219_v23  ;;  %vm5539_vm2 = vcmp.eq.f32.partialorder %v1409_v0, 8.507059e+37  ;;  %vm5555_vm5 = vmor %vm1345_vm12, %vm1346_vm1 }
  0xad   : > { %v4227_v34 = vpop.eup %4226  ;;  %v1416_v43 = vmul.f32 %v4225_v3, %v5489_v11  ;;  %v1412_v45 = vor.u32 1.1754944e-38, %v1411_v25  ;;  %vm1390_vm3 = vweird.f32 %v5498_v2  ;;  %v1394_v26 = vand.u32 2147483647, %v5498_v2 }
  0xae   : > { %v1359_v41 = vadd.f32 %v4217_v17, %v1358_v31  ;;  %v4229_v46 = vpop.eup %4228  ;;  %v1343_v29 = vmul.f32 %v4221_v24, %v1342_v37  ;;  %4232 = vrcp.f32 %v5536_v39  ;;  %v5546_v51 = vadd.f32 1.0, %v4223_v30  ;;  %v2922_v37 = vpop.permute.xlu1 %2921 }
  0xaf   : > { %v4231_v42 = vpop.eup %4230  ;;  %v1417_v54 = vsub.f32 1.0, %v1416_v43  ;;  %vm1421_vm7 = vweird.f32 %v4225_v3  ;;  %v1401_v56 = vmul.f32 %v4229_v46, %v5496_v16  ;;  %v1396_v60 = vand.u32 2147483648, %v5498_v2 }
  0xb0   : > { %v1363_v47 = vsel %vm5532_vm6, %v4217_v17, %v1359_v41  ;;  %v1344_v58 = vadd.f32 %v4221_v24, %v1343_v29  ;;  %v1386_v59 = vmul.f32 %v4231_v42, %v5498_v2  ;;  %vm1406_vm8 = vweird.f32 %v4229_v46  ;;  %vm5570_vm9 = vmor %vm1420_vm14, %vm1421_vm7  ;;  %v246_v41 = vld [vmem:[%s4650_s17 + $0x170] sm:$0xff] }
  0xb1   : > { %v1368_v57 = vsel %vm5500_vm10, %v1367_v48, %v1363_v47  ;;  %v1418_v61 = vmul.f32 %v4225_v3, %v1417_v54  ;;  %v1402_v35 = vsub.f32 1.0, %v1401_v56  ;;  %v5564_v63 = vadd.f32 1.0, %v4227_v34  ;;  %vm5585_vm12 = vmor %vm1405_vm0, %vm1406_vm8  ;;  %v2912_v34 = vpop.permute.xlu0 %2911 }
  0xb2   : > { %3081 = vperm.xlu1 %4068, %v1368_v57   ;;  %v1348_v55 = vsel %vm5555_vm5, %v4221_v24, %v1344_v58  ;;  %v1387_v4 = vsub.f32 1.0, %v1386_v59  ;;  %vm1391_vm10 = vweird.f32 %v4231_v42  ;;  %4234 = vrcp.f32 %v5546_v51 }
  0xb3   : > { %v1353_v1 = vsel %vm5517_vm13, %v1352_v19, %v1348_v55  ;;  %v1419_v5 = vadd.f32 %v4225_v3, %v1418_v61  ;;  %v1403_v6 = vmul.f32 %v4229_v46, %v1402_v35  ;;  %vm5577_vm11 = vcmp.eq.f32.partialorder %v1394_v26, 8.507059e+37  ;;  %vm5596_vm13 = vmor %vm1390_vm3, %vm1391_vm10  ;;  %v2967_v19 = vpop.permute.xlu2 %2966 }
  0xb4   : > { %v5581_v8 = vpop.eup %4232  ;;  %3076 = vperm.xlu0 %4067, %v1353_v1   ;;  %v1388_v10 = vmul.f32 %v4231_v42, %v1387_v4  ;;  %v1397_v11 = vor.u32 1.1754944e-38, %v1396_v60  ;;  %v1469_v17 = vand.u32 2147483647, %v5536_v39  ;;  %v1471_v18 = vand.u32 2147483648, %v5536_v39  ;;  %v248_v4 = vld [vmem:[%s4650_s17 + $0x180] sm:$0xff] }
  0xb5   : > { %v1423_v50 = vsel %vm5570_vm9, %v4225_v3, %v1419_v5  ;;  %v1404_v20 = vadd.f32 %v4229_v46, %v1403_v6  ;;  %v1461_v53 = vmul.f32 %v5581_v8, %v5536_v39  ;;  %vm1465_vm14 = vweird.f32 %v5536_v39 }
  0xb6   : > { %v1428_v48 = vsel %vm5524_vm15, %v1427_v38, %v1423_v50  ;;  %v1389_v22 = vadd.f32 %v4231_v42, %v1388_v10  ;;  %vm1450_vm0 = vweird.f32 %v5546_v51  ;;  %v1454_v14 = vand.u32 2147483647, %v5546_v51  ;;  %v2780_v38 = vld [vmem:[%s5383_s20] sm:$0xff] }
  0xb7   : > { %3101 = vperm.xlu2 %4069, %v1428_v48   ;;  %v1408_v2 = vsel %vm5585_vm12, %v4229_v46, %v1404_v20  ;;  %v1462_v23 = vsub.f32 1.0, %v1461_v53  ;;  %vm1466_vm6 = vweird.f32 %v5581_v8  ;;  %4236 = vrcp.f32 %v5564_v63  ;;  %v245_v46 = vld [vmem:[%s4650_s17 + $0x168] sm:$0xff] }
  0xb8   : > { %v5612_v24 = vpop.eup %4234  ;;  %v1413_v49 = vsel %vm5539_vm2, %v1412_v45, %v1408_v2  ;;  %v1393_v0 = vsel %vm5596_vm13, %v4231_v42, %v1389_v22  ;;  %vm5618_vm15 = vcmp.eq.f32.partialorder %v1469_v17, 8.507059e+37  ;;  %v1472_v27 = vor.u32 1.1754944e-38, %v1471_v18  ;;  %vm5636_vm1 = vmor %vm1465_vm14, %vm1466_vm6 }
  0xb9   : > { %v1398_v30 = vsel %vm5577_vm11, %v1397_v11, %v1393_v0  ;;  %v1463_v31 = vmul.f32 %v5581_v8, %v1462_v23  ;;  %v1446_v32 = vmul.f32 %v5612_v24, %v5546_v51  ;;  %v1456_v3 = vand.u32 2147483648, %v5546_v51 }
  0xba   : > { %3096 = vperm.xlu1 %4068, %v1413_v49   ;;  %vm1451_vm2 = vweird.f32 %v5612_v24  ;;  %vm5641_vm3 = vcmp.eq.f32.partialorder %v1454_v14, 8.507059e+37  ;;  %v3562_v45 = vmul.f32 %v5548_v52, %v2788_v15  ;;  %4238 = vpow2.f32 %v5485_v36 }
  0xbb   : > { %v1464_v29 = vadd.f32 %v5581_v8, %v1463_v31  ;;  %v1447_v39 = vsub.f32 1.0, %v1446_v32  ;;  %4240 = vpow2.f32 %v5491_v12  ;;  %v3565_v26 = vmul.f32 %v2967_v19, %v2791_v28  ;;  %vm5667_vm5 = vmor %vm1450_vm0, %vm1451_vm2 }
  0xbc   : > { %3091 = vperm.xlu0 %4067, %v1398_v30   ;;  %3692 = vst.msk [vmem:[%s5432_s23 + $0x40] sm:$0xff] %vm3683_vm4, %v3562_v45  ;;  %4242 = vpow2.f32 %v5493_v13  ;;  %v3556_v42 = vmul.f32 %v2922_v37, %v2782_v33  ;;  %v3554_v47 = vmul.f32 %v2912_v34, %v2780_v38  ;;  %v3957_v52 = vmul.f32 -1.442695, %v246_v41  ;;  %v2927_v33 = vpop.permute.xlu1 %2926  ;;  %v252_v34 = vld [vmem:[%s4650_s17 + $0x1a0] sm:$0xff] }
  0xbd   : > { %v4237_v36 = vpop.eup %4236  ;;  %v1468_v54 = vsel %vm5636_vm1, %v5581_v8, %v1464_v29  ;;  %v1448_v12 = vmul.f32 %v5612_v24, %v1447_v39  ;;  %3695 = vst.msk [vmem:[%s5432_s23 + $0x58] sm:$0xff] %vm3683_vm4, %v3565_v26  ;;  %4244 = vpow2.f32 %v5521_v21  ;;  %v3956_v56 = vmul.f32 -1.442695, %v245_v46  ;;  %v249_v21 = vld [vmem:[%s4650_s17 + $0x188] sm:$0xff]  ;;  %v2794_v29 = vld [vmem:[%s5383_s20 + $0x70] sm:$0xff]  ;;  %v2783_v39 = vld [vmem:[%s5383_s20 + $0x18] sm:$0xff] }
  0xbe   : > { %v1473_v13 = vsel %vm5618_vm15, %v1472_v27, %v1468_v54  ;;  %v1457_v58 = vor.u32 1.1754944e-38, %v1456_v3  ;;  %v1431_v59 = vmul.f32 %v4237_v36, %v5564_v63  ;;  %3686 = vst.msk [vmem:[%s5432_s23 + $0x10] sm:$0xff] %vm3683_vm4, %v3556_v42  ;;  %4246 = vpow2.f32 %v3957_v52  ;;  %v253_v8 = vld [vmem:[%s4650_s17 + $0x1a8] sm:$0xff]  ;;  %v2982_v3 = vpop.permute.xlu2 %2981  ;;  %v2917_v42 = vpop.permute.xlu0 %2916 }
  0xbf   : > { %3116 = vperm.xlu2 %4069, %v1473_v13   ;;  %v1449_v60 = vadd.f32 %v5612_v24, %v1448_v12  ;;  %v1439_v61 = vand.u32 2147483647, %v5564_v63  ;;  %v1441_v51 = vand.u32 2147483648, %v5564_v63  ;;  %3684 = vst.msk [vmem:[%s5432_s23] sm:$0xff] %vm3683_vm4, %v3554_v47  ;;  %v3961_v35 = vmul.f32 -1.442695, %v250_v40 }
  0xc0   : > { %v4239_v55 = vpop.eup %4238  ;;  %v1432_v62 = vsub.f32 1.0, %v1431_v59  ;;  %vm1435_vm7 = vweird.f32 %v5564_v63  ;;  %vm1436_vm8 = vweird.f32 %v4237_v36  ;;  %4248 = vpow2.f32 %v3956_v56  ;;  %v2781_v26 = vld [vmem:[%s5383_s20 + $0x8] sm:$0xff] }
  0xc1   : > { %v4241_v1 = vpop.eup %4240  ;;  %v1453_v5 = vsel %vm5667_vm5, %v5612_v24, %v1449_v60  ;;  %v5685_v6 = vadd.f32 1.0, %v4239_v55  ;;  %v3960_v7 = vmul.f32 -1.442695, %v249_v21  ;;  %4250 = vpow2.f32 %v3961_v35  ;;  %vm5695_vm9 = vmor %vm1435_vm7, %vm1436_vm8 }
  0xc2   : > { %v4243_v9 = vpop.eup %4242  ;;  %v1458_v10 = vsel %vm5641_vm3, %v1457_v58, %v1453_v5  ;;  %v1433_v11 = vmul.f32 %v4237_v36, %v1432_v62  ;;  %v5690_v17 = vadd.f32 1.0, %v4241_v1  ;;  %vm5699_vm10 = vcmp.eq.f32.partialorder %v1439_v61, 8.507059e+37 }
  0xc3   : > { %v4245_v18 = vpop.eup %4244  ;;  %3111 = vperm.xlu1 %4068, %v1458_v10   ;;  %v1442_v16 = vor.u32 1.1754944e-38, %v1441_v51  ;;  %4252 = vrcp.f32 %v5685_v6  ;;  %v5704_v53 = vmul.f32 -1.442695, %v248_v4  ;;  %v1514_v14 = vand.u32 2147483647, %v5685_v6 }
  0xc4   : > { %v4247_v48 = vpop.eup %4246  ;;  %v1434_v22 = vadd.f32 %v4237_v36, %v1433_v11  ;;  %4254 = vrcp.f32 %v5690_v17  ;;  %v5708_v63 = vmul.f32 -1.442695, %v253_v8  ;;  %v1516_v2 = vand.u32 2147483648, %v5685_v6 }
  0xc5   : > { %v1499_v23 = vand.u32 2147483647, %v5690_v17  ;;  %v1501_v15 = vand.u32 2147483648, %v5690_v17  ;;  %v5713_v24 = vadd.f32 1.0, %v4243_v9  ;;  %v5717_v0 = vadd.f32 1.0, %v4245_v18 }
  0xc6   : > { %v1438_v49 = vsel %vm5695_vm9, %v4237_v36, %v1434_v22  ;;  %v5719_v25 = vadd.f32 1.0, %v4247_v48  ;;  %4256 = vpow2.f32 %v3960_v7  ;;  %v4249_v27 = vpop.eup %4248  ;;  %vm1510_vm11 = vweird.f32 %v5685_v6  ;;  %v2947_v48 = vpop.permute.xlu1 %2946 }
  0xc7   : > { %v1443_v28 = vsel %vm5699_vm10, %v1442_v16, %v1438_v49  ;;  %vm1495_vm12 = vweird.f32 %v5690_v17  ;;  %4258 = vrcp.f32 %v5713_v24  ;;  %v5726_v19 = vpop.eup %4250  ;;  %vm5728_vm13 = vcmp.eq.f32.partialorder %v1514_v14, 8.507059e+37  ;;  %v2997_v16 = vpop.permute.xlu2 %2996  ;;  %v2797_v49 = vld [vmem:[%s5383_s20 + $0x88] sm:$0xff] }
  0xc8   : > { %3106 = vperm.xlu0 %4067, %v1443_v28   ;;  %v1484_v31 = vand.u32 2147483647, %v5713_v24  ;;  %v1486_v32 = vand.u32 2147483648, %v5713_v24  ;;  %4260 = vrcp.f32 %v5717_v0  ;;  %v1517_v38 = vor.u32 1.1754944e-38, %v1516_v2 }
  0xc9   : > { %v4253_v37 = vpop.eup %4252  ;;  %vm5735_vm14 = vcmp.eq.f32.partialorder %v1499_v23, 8.507059e+37  ;;  %v5739_v41 = vor.u32 1.1754944e-38, %v1501_v15  ;;  %4262 = vrcp.f32 %v5719_v25  ;;  %vm1480_vm0 = vweird.f32 %v5713_v24 }
  0xca   : > { %v4255_v43 = vpop.eup %4254  ;;  %v1506_v44 = vmul.f32 %v4253_v37, %v5685_v6  ;;  %v1559_v45 = vand.u32 2147483647, %v5717_v0  ;;  %v1561_v46 = vand.u32 2147483648, %v5717_v0  ;;  %vm1511_vm6 = vweird.f32 %v4253_v37 }
  0xcb   : > { %v1491_v47 = vmul.f32 %v4255_v43, %v5690_v17  ;;  %vm1555_vm15 = vweird.f32 %v5717_v0  ;;  %vm1540_vm1 = vweird.f32 %v5719_v25  ;;  %vm1496_vm2 = vweird.f32 %v4255_v43  ;;  %vm5772_vm7 = vmor %vm1510_vm11, %vm1511_vm6 }
  0xcc   : > { %v4257_v52 = vpop.eup %4256  ;;  %v1507_v40 = vsub.f32 1.0, %v1506_v44  ;;  %vm5752_vm3 = vcmp.eq.f32.partialorder %v1484_v31, 8.507059e+37  ;;  %v1487_v54 = vor.u32 1.1754944e-38, %v1486_v32  ;;  %v5756_v12 = vadd.f32 1.0, %v4249_v27  ;;  %vm5785_vm8 = vmor %vm1495_vm12, %vm1496_vm2 }
  0xcd   : > { %v4259_v56 = vpop.eup %4258  ;;  %v1492_v13 = vsub.f32 1.0, %v1491_v47  ;;  %v3568_v57 = vmul.f32 %v2982_v3, %v2794_v29  ;;  %v3557_v58 = vmul.f32 %v2927_v33, %v2783_v39  ;;  %v3555_v59 = vmul.f32 %v2917_v42, %v2781_v26  ;;  %v2787_v29 = vld [vmem:[%s5383_s20 + $0x38] sm:$0xff]  ;;  %v2786_v39 = vld [vmem:[%s5383_s20 + $0x30] sm:$0xff] }
  0xce   : > { %v5758_v21 = vpop.eup %4260  ;;  %v1508_v60 = vmul.f32 %v4253_v37, %v1507_v40  ;;  %v1476_v61 = vmul.f32 %v4259_v56, %v5713_v24  ;;  %vm5761_vm5 = vcmp.eq.f32.partialorder %v1559_v45, 8.507059e+37  ;;  %v5765_v35 = vor.u32 1.1754944e-38, %v1561_v46  ;;  %v255_v24 = vld [vmem:[%s4650_s17 + $0x1b8] sm:$0xff] }
  0xcf   : > { %v5767_v55 = vpop.eup %4262  ;;  %v1493_v4 = vmul.f32 %v4255_v43, %v1492_v13  ;;  %v1551_v1 = vmul.f32 %v5758_v21, %v5717_v0  ;;  %v1544_v5 = vand.u32 2147483647, %v5719_v25  ;;  %v1546_v7 = vand.u32 2147483648, %v5719_v25  ;;  %3698 = vst.msk [vmem:[%s5432_s23 + $0x70] sm:$0xff] %vm3683_vm4, %v3568_v57  ;;  %v3012_v51 = vpop.permute.xlu2 %3011 }
  0xd0   : > { %v1509_v8 = vadd.f32 %v4253_v37, %v1508_v60  ;;  %v1477_v9 = vsub.f32 1.0, %v1476_v61  ;;  %vm1481_vm9 = vweird.f32 %v4259_v56  ;;  %v1536_v10 = vmul.f32 %v5767_v55, %v5719_v25  ;;  %3687 = vst.msk [vmem:[%s5432_s23 + $0x18] sm:$0xff] %vm3683_vm4, %v3557_v58  ;;  %v2800_v61 = vld [vmem:[%s5383_s20 + $0xa0] sm:$0xff] }
  0xd1   : > { %v1494_v11 = vadd.f32 %v4255_v43, %v1493_v4  ;;  %v1552_v18 = vsub.f32 1.0, %v1551_v1  ;;  %vm1556_vm10 = vweird.f32 %v5758_v21  ;;  %4264 = vrcp.f32 %v5756_v12  ;;  %3685 = vst.msk [vmem:[%s5432_s23 + $0x8] sm:$0xff] %vm3683_vm4, %v3555_v59  ;;  %vm5807_vm12 = vmor %vm1480_vm0, %vm1481_vm9 }
  0xd2   : > { %v1513_v17 = vsel %vm5772_vm7, %v4253_v37, %v1509_v8  ;;  %v1478_v50 = vmul.f32 %v4259_v56, %v1477_v9  ;;  %v1537_v20 = vsub.f32 1.0, %v1536_v10  ;;  %vm1541_vm11 = vweird.f32 %v5767_v55 }
  0xd3   : > { %v1518_v22 = vsel %vm5728_vm13, %v1517_v38, %v1513_v17  ;;  %v1498_v14 = vsel %vm5785_vm8, %v4255_v43, %v1494_v11  ;;  %v1553_v23 = vmul.f32 %v5758_v21, %v1552_v18  ;;  %v1547_v15 = vor.u32 1.1754944e-38, %v1546_v7  ;;  %vm5820_vm13 = vmor %vm1555_vm15, %vm1556_vm10  ;;  %v2942_v38 = vpop.permute.xlu0 %2941  ;;  %v2789_v17 = vld [vmem:[%s5383_s20 + $0x48] sm:$0xff] }
  0xd4   : > { %3131 = vperm.xlu2 %4069, %v1518_v22   ;;  %v1503_v27 = vsel %vm5735_vm14, %v5739_v41, %v1498_v14  ;;  %v1479_v28 = vadd.f32 %v4259_v56, %v1478_v50  ;;  %v1538_v30 = vmul.f32 %v5767_v55, %v1537_v20  ;;  %v1529_v31 = vand.u32 2147483647, %v5756_v12  ;;  %vm5831_vm14 = vmor %vm1540_vm1, %vm1541_vm11  ;;  %v256_v20 = vld [vmem:[%s4650_s17 + $0x1c0] sm:$0xff] }
  0xd5   : > { %3126 = vperm.xlu1 %4068, %v1503_v27   ;;  %v1554_v32 = vadd.f32 %v5758_v21, %v1553_v23  ;;  %v1531_v0 = vand.u32 2147483648, %v5756_v12  ;;  %v5837_v33 = vadd.f32 1.0, %v5726_v19  ;;  %v5839_v37 = vadd.f32 1.0, %v4257_v52 }
  0xd6   : > { %v1483_v41 = vsel %vm5807_vm12, %v4259_v56, %v1479_v28  ;;  %v1539_v25 = vadd.f32 %v5767_v55, %v1538_v30  ;;  %4266 = vpow2.f32 %v5704_v53  ;;  %v3571_v43 = vmul.f32 %v2997_v16, %v2797_v49  ;;  %v251_v56 = vld [vmem:[%s4650_s17 + $0x198] sm:$0xff]  ;;  %v254_v30 = vld [vmem:[%s4650_s17 + $0x1b0] sm:$0xff] }
  0xd7   : > { %v5846_v44 = vpop.eup %4264  ;;  %v1488_v19 = vsel %vm5752_vm3, %v1487_v54, %v1483_v41  ;;  %v1558_v45 = vsel %vm5820_vm13, %v5758_v21, %v1554_v32  ;;  %vm1545_vm0 = vcmp.eq.f32.partialorder %v1544_v5, 8.507059e+37  ;;  %4268 = vrcp.f32 %v5837_v33 }
  0xd8   : > { %3121 = vperm.xlu0 %4067, %v1488_v19   ;;  %v1543_v46 = vsel %vm5831_vm14, %v5767_v55, %v1539_v25  ;;  %v1521_v53 = vmul.f32 %v5846_v44, %v5756_v12  ;;  %vm1525_vm6 = vweird.f32 %v5756_v12  ;;  %3701 = vst.msk [vmem:[%s5432_s23 + $0x88] sm:$0xff] %vm3683_vm4, %v3571_v43  ;;  %v3963_v26 = vmul.f32 -1.442695, %v252_v34  ;;  %v2962_v55 = vpop.permute.xlu1 %2961 }
  0xd9   : > { %v1563_v42 = vsel %vm5761_vm5, %v5765_v35, %v1558_v45  ;;  %vm5867_vm15 = vcmp.eq.f32.partialorder %v1529_v31, 8.507059e+37  ;;  %v1532_v52 = vor.u32 1.1754944e-38, %v1531_v0  ;;  %4270 = vrcp.f32 %v5839_v37  ;;  %v2790_v35 = vld [vmem:[%s5383_s20 + $0x50] sm:$0xff] }
  0xda   : > { %v1548_v40 = vsel %vm1545_vm0, %v1547_v15, %v1543_v46  ;;  %v1522_v36 = vsub.f32 1.0, %v1521_v53  ;;  %vm1526_vm1 = vweird.f32 %v5846_v44  ;;  %v1604_v54 = vand.u32 2147483647, %v5837_v33 }
  0xdb   : > { %v1606_v13 = vand.u32 2147483648, %v5837_v33  ;;  %v1589_v57 = vand.u32 2147483647, %v5839_v37  ;;  %v3561_v58 = vmul.f32 %v2947_v48, %v2787_v29  ;;  %v3560_v59 = vmul.f32 %v2942_v38, %v2786_v39  ;;  %vm5889_vm5 = vmor %vm1525_vm6, %vm1526_vm1  ;;  %v2957_v50 = vpop.permute.xlu0 %2956 }
  0xdc   : > { %v4267_v21 = vpop.eup %4266  ;;  %3146 = vperm.xlu2 %4069, %v1563_v42   ;;  %v1523_v60 = vmul.f32 %v5846_v44, %v1522_v36  ;;  %vm1600_vm2 = vweird.f32 %v5837_v33  ;;  %vm1585_vm3 = vweird.f32 %v5839_v37  ;;  %4272 = vpow2.f32 %v5708_v63 }
  0xdd   : > { %v5883_v62 = vpop.eup %4268  ;;  %3141 = vperm.xlu1 %4068, %v1548_v40   ;;  %v5893_v1 = vadd.f32 1.0, %v4267_v21  ;;  %3691 = vst.msk [vmem:[%s5432_s23 + $0x38] sm:$0xff] %vm3683_vm4, %v3561_v58  ;;  %4274 = vpow2.f32 %v3963_v26  ;;  %v3962_v63 = vmul.f32 -1.442695, %v251_v56  ;;  %v3574_v5 = vmul.f32 %v3012_v51, %v2800_v61  ;;  %v3027_v40 = vpop.permute.xlu2 %3026  ;;  %v2793_v61 = vld [vmem:[%s5383_s20 + $0x68] sm:$0xff] }
  0xde   : > { %v1524_v7 = vadd.f32 %v5846_v44, %v1523_v60  ;;  %v1596_v8 = vmul.f32 %v5883_v62, %v5837_v33  ;;  %v1591_v12 = vand.u32 2147483648, %v5839_v37  ;;  %3690 = vst.msk [vmem:[%s5432_s23 + $0x30] sm:$0xff] %vm3683_vm4, %v3560_v59  ;;  %v3564_v6 = vmul.f32 %v2962_v55, %v2790_v35  ;;  %v2792_v35 = vld [vmem:[%s5383_s20 + $0x60] sm:$0xff] }
  0xdf   : > { %v4271_v9 = vpop.eup %4270  ;;  %vm5903_vm7 = vcmp.eq.f32.partialorder %v1604_v54, 8.507059e+37  ;;  %v1607_v11 = vor.u32 1.1754944e-38, %v1606_v13  ;;  %vm5907_vm8 = vcmp.eq.f32.partialorder %v1589_v57, 8.507059e+37  ;;  %4276 = vrcp.f32 %v5893_v1  ;;  %3704 = vst.msk [vmem:[%s5432_s23 + $0xa0] sm:$0xff] %vm3683_vm4, %v3574_v5 }
  0xe0   : > { %v1528_v16 = vsel %vm5889_vm5, %v5846_v44, %v1524_v7  ;;  %v1597_v48 = vsub.f32 1.0, %v1596_v8  ;;  %vm1601_vm9 = vweird.f32 %v5883_v62  ;;  %v1581_v22 = vmul.f32 %v4271_v9, %v5839_v37  ;;  %3694 = vst.msk [vmem:[%s5432_s23 + $0x50] sm:$0xff] %vm3683_vm4, %v3564_v6  ;;  %v2977_v51 = vpop.permute.xlu1 %2976 }
  0xe1   : > { %v1533_v14 = vsel %vm5867_vm15, %v1532_v52, %v1528_v16  ;;  %vm1586_vm10 = vweird.f32 %v4271_v9  ;;  %v1574_v2 = vand.u32 2147483647, %v5893_v1  ;;  %4278 = vpow2.f32 %v3962_v63  ;;  %vm5933_vm11 = vmor %vm1600_vm2, %vm1601_vm9  ;;  %v2803_v52 = vld [vmem:[%s5383_s20 + $0xb8] sm:$0xff] }
  0xe2   : > { %v4273_v23 = vpop.eup %4272  ;;  %3136 = vperm.xlu0 %4067, %v1533_v14   ;;  %v1598_v15 = vmul.f32 %v5883_v62, %v1597_v48  ;;  %v1582_v49 = vsub.f32 1.0, %v1581_v22  ;;  %v3563_v27 = vmul.f32 %v2957_v50, %v2789_v17  ;;  %v3967_v28 = vmul.f32 -1.442695, %v256_v20  ;;  %vm5949_vm13 = vmor %vm1585_vm3, %vm1586_vm10 }
  0xe3   : > { %v4275_v31 = vpop.eup %4274  ;;  %v1592_v3 = vor.u32 1.1754944e-38, %v1591_v12  ;;  %vm1570_vm12 = vweird.f32 %v5893_v1  ;;  %v1576_v0 = vand.u32 2147483648, %v5893_v1  ;;  %v5939_v38 = vadd.f32 1.0, %v4273_v23  ;;  %v2972_v55 = vpop.permute.xlu0 %2971  ;;  %v261_v12 = vld [vmem:[%s4650_s17 + $0x1e8] sm:$0xff] }
  0xe4   : > { %v1599_v34 = vadd.f32 %v5883_v62, %v1598_v15  ;;  %v1583_v41 = vmul.f32 %v4271_v9, %v1582_v49  ;;  %v5942_v25 = vadd.f32 1.0, %v4275_v31  ;;  %3693 = vst.msk [vmem:[%s5432_s23 + $0x48] sm:$0xff] %vm3683_vm4, %v3563_v27  ;;  %4280 = vpow2.f32 %v3967_v28  ;;  %v259_v49 = vld [vmem:[%s4650_s17 + $0x1d8] sm:$0xff]  ;;  %v258_v27 = vld [vmem:[%s4650_s17 + $0x1d0] sm:$0xff] }
  0xe5   : > { %v4277_v33 = vpop.eup %4276  ;;  %vm5953_vm14 = vcmp.eq.f32.partialorder %v1574_v2, 8.507059e+37  ;;  %4282 = vrcp.f32 %v5939_v38  ;;  %v3966_v19 = vmul.f32 -1.442695, %v255_v24  ;;  %v3965_v45 = vmul.f32 -1.442695, %v254_v30 }
  0xe6   : > { %v1603_v46 = vsel %vm5933_vm11, %v5883_v62, %v1599_v34  ;;  %v1584_v53 = vadd.f32 %v4271_v9, %v1583_v41  ;;  %v1566_v29 = vmul.f32 %v4277_v33, %v5893_v1  ;;  %v1649_v37 = vand.u32 2147483647, %v5939_v38 }
  0xe7   : > { %v4279_v39 = vpop.eup %4278  ;;  %v1608_v26 = vsel %vm5903_vm7, %v1607_v11, %v1603_v46  ;;  %v1577_v42 = vor.u32 1.1754944e-38, %v1576_v0  ;;  %v1651_v47 = vand.u32 2147483648, %v5939_v38  ;;  %4284 = vrcp.f32 %v5942_v25 }
  0xe8   : > { %3161 = vperm.xlu2 %4069, %v1608_v26   ;;  %v1588_v36 = vsel %vm5949_vm13, %v4271_v9, %v1584_v53  ;;  %v1567_v54 = vsub.f32 1.0, %v1566_v29  ;;  %vm1571_vm0 = vweird.f32 %v4277_v33  ;;  %v1634_v56 = vand.u32 2147483647, %v5942_v25  ;;  %v2992_v21 = vpop.permute.xlu1 %2991  ;;  %v2799_v29 = vld [vmem:[%s5383_s20 + $0x98] sm:$0xff] }
  0xe9   : > { %v1593_v13 = vsel %vm5907_vm8, %v1592_v3, %v1588_v36  ;;  %vm1645_vm6 = vweird.f32 %v5939_v38  ;;  %v5974_v57 = vadd.f32 1.0, %v4279_v39  ;;  %4286 = vpow2.f32 %v3966_v19  ;;  %vm5985_vm1 = vmor %vm1570_vm12, %vm1571_vm0  ;;  %v2798_v36 = vld [vmem:[%s5383_s20 + $0x90] sm:$0xff] }
  0xea   : > { %v4281_v58 = vpop.eup %4280  ;;  %3156 = vperm.xlu1 %4068, %v1593_v13   ;;  %v1568_v59 = vmul.f32 %v4277_v33, %v1567_v54  ;;  %vm5976_vm15 = vcmp.eq.f32.partialorder %v1649_v37, 8.507059e+37  ;;  %4288 = vpow2.f32 %v3965_v45  ;;  %v3577_v60 = vmul.f32 %v3027_v40, %v2803_v52  ;;  %v257_v52 = vld [vmem:[%s4650_s17 + $0x1c8] sm:$0xff]  ;;  %v3042_v13 = vpop.permute.xlu2 %3041 }
  0xeb   : > { %v4283_v62 = vpop.eup %4282  ;;  %v1652_v63 = vor.u32 1.1754944e-38, %v1651_v47  ;;  %vm1630_vm2 = vweird.f32 %v5942_v25  ;;  %v1636_v5 = vand.u32 2147483648, %v5942_v25  ;;  %4290 = vrcp.f32 %v5974_v57 }
  0xec   : > { %v1569_v7 = vadd.f32 %v4277_v33, %v1568_v59  ;;  %v1641_v8 = vmul.f32 %v4283_v62, %v5939_v38  ;;  %vm5993_vm3 = vcmp.eq.f32.partialorder %v1634_v56, 8.507059e+37  ;;  %v1619_v1 = vand.u32 2147483647, %v5974_v57  ;;  %3707 = vst.msk [vmem:[%s5432_s23 + $0xb8] sm:$0xff] %vm3683_vm4, %v3577_v60  ;;  %v2806_v56 = vld [vmem:[%s5383_s20 + $0xd0] sm:$0xff] }
  0xed   : > { %v4285_v6 = vpop.eup %4284  ;;  %v1621_v9 = vand.u32 2147483648, %v5974_v57  ;;  %v6001_v10 = vadd.f32 1.0, %v4281_v58  ;;  %v3567_v11 = vmul.f32 %v2977_v51, %v2793_v61  ;;  %v3566_v18 = vmul.f32 %v2972_v55, %v2792_v35 }
  0xee   : > { %v1573_v17 = vsel %vm5985_vm1, %v4277_v33, %v1569_v7  ;;  %v1642_v50 = vsub.f32 1.0, %v1641_v8  ;;  %vm1646_vm5 = vweird.f32 %v4283_v62  ;;  %v1626_v20 = vmul.f32 %v4285_v6, %v5942_v25  ;;  %v2987_v7 = vpop.permute.xlu0 %2986  ;;  %v262_v8 = vld [vmem:[%s4650_s17 + $0x1f0] sm:$0xff] }
  0xef   : > { %v4287_v16 = vpop.eup %4286  ;;  %v1578_v48 = vsel %vm5953_vm14, %v1577_v42, %v1573_v17  ;;  %v1637_v22 = vor.u32 1.1754944e-38, %v1636_v5  ;;  %vm1615_vm7 = vweird.f32 %v5974_v57  ;;  %4292 = vrcp.f32 %v6001_v10  ;;  %3697 = vst.msk [vmem:[%s5432_s23 + $0x68] sm:$0xff] %vm3683_vm4, %v3567_v11  ;;  %vm6023_vm10 = vmor %vm1645_vm6, %vm1646_vm5  ;;  %v2795_v5 = vld [vmem:[%s5383_s20 + $0x78] sm:$0xff] }
  0xf0   : > { %v4289_v14 = vpop.eup %4288  ;;  %3151 = vperm.xlu0 %4067, %v1578_v48   ;;  %v1643_v2 = vmul.f32 %v4283_v62, %v1642_v50  ;;  %v1627_v23 = vsub.f32 1.0, %v1626_v20  ;;  %vm1631_vm8 = vweird.f32 %v4285_v6  ;;  %vm6012_vm9 = vcmp.eq.f32.partialorder %v1619_v1, 8.507059e+37  ;;  %3696 = vst.msk [vmem:[%s5432_s23 + $0x60] sm:$0xff] %vm3683_vm4, %v3566_v18 }
  0xf1   : > { %v4291_v28 = vpop.eup %4290  ;;  %v1622_v30 = vor.u32 1.1754944e-38, %v1621_v9  ;;  %v1694_v31 = vand.u32 2147483647, %v6001_v10  ;;  %v6028_v32 = vadd.f32 1.0, %v4287_v16  ;;  %v6030_v3 = vadd.f32 1.0, %v4289_v14  ;;  %vm6037_vm12 = vmor %vm1630_vm2, %vm1631_vm8 }
  0xf2   : > { %v1644_v0 = vadd.f32 %v4283_v62, %v1643_v2  ;;  %v1628_v34 = vmul.f32 %v4285_v6, %v1627_v23  ;;  %v1611_v41 = vmul.f32 %v4291_v28, %v5974_v57  ;;  %vm1690_vm11 = vweird.f32 %v6001_v10  ;;  %v2796_v57 = vld [vmem:[%s5383_s20 + $0x80] sm:$0xff] }
  0xf3   : > { %v1696_v33 = vand.u32 2147483648, %v6001_v10  ;;  %4294 = vrcp.f32 %v6028_v32  ;;  %v3970_v43 = vmul.f32 -1.442695, %v259_v49  ;;  %v3969_v44 = vmul.f32 -1.442695, %v258_v27  ;;  %v260_v49 = vld [vmem:[%s4650_s17 + $0x1e0] sm:$0xff] }
  0xf4   : > { %v1648_v19 = vsel %vm6023_vm10, %v4283_v62, %v1644_v0  ;;  %v1629_v45 = vadd.f32 %v4285_v6, %v1628_v34  ;;  %v1612_v46 = vsub.f32 1.0, %v1611_v41  ;;  %vm1616_vm13 = vweird.f32 %v4291_v28  ;;  %v265_v41 = vld [vmem:[%s4650_s17 + $0x208] sm:$0xff] }
  0xf5   : > { %v6045_v53 = vpop.eup %4292  ;;  %v1653_v25 = vsel %vm5976_vm15, %v1652_v63, %v1648_v19  ;;  %vm6049_vm14 = vcmp.eq.f32.partialorder %v1694_v31, 8.507059e+37  ;;  %v1679_v37 = vand.u32 2147483647, %v6028_v32  ;;  %4296 = vrcp.f32 %v6030_v3  ;;  %vm6065_vm0 = vmor %vm1615_vm7, %vm1616_vm13 }
  0xf6   : > { %3176 = vperm.xlu2 %4069, %v1653_v25   ;;  %v1633_v39 = vsel %vm6037_vm12, %v4285_v6, %v1629_v45  ;;  %v1613_v26 = vmul.f32 %v4291_v28, %v1612_v46  ;;  %v1686_v42 = vmul.f32 %v6045_v53, %v6001_v10  ;;  %v1681_v47 = vand.u32 2147483648, %v6028_v32  ;;  %v3057_v25 = vpop.permute.xlu2 %3056 }
  0xf7   : > { %v1638_v40 = vsel %vm5993_vm3, %v1637_v22, %v1633_v39  ;;  %v1697_v54 = vor.u32 1.1754944e-38, %v1696_v33  ;;  %vm1675_vm6 = vweird.f32 %v6028_v32  ;;  %vm1660_vm15 = vweird.f32 %v6030_v3  ;;  %v264_v33 = vld [vmem:[%s4650_s17 + $0x200] sm:$0xff] }
  0xf8   : > { %3171 = vperm.xlu1 %4068, %v1638_v40   ;;  %v1614_v58 = vadd.f32 %v4291_v28, %v1613_v26  ;;  %v1687_v59 = vsub.f32 1.0, %v1686_v42  ;;  %vm1691_vm1 = vweird.f32 %v6045_v53  ;;  %4298 = vpow2.f32 %v3970_v43 }
  0xf9   : > { %v6074_v60 = vpop.eup %4294  ;;  %vm6076_vm2 = vcmp.eq.f32.partialorder %v1679_v37, 8.507059e+37  ;;  %4300 = vpow2.f32 %v3969_v44  ;;  %v3968_v51 = vmul.f32 -1.442695, %v257_v52  ;;  %v3580_v35 = vmul.f32 %v3042_v13, %v2806_v56  ;;  %vm6096_vm3 = vmor %vm1690_vm11, %vm1691_vm1  ;;  %v3007_v37 = vpop.permute.xlu1 %3006 }
  0xfa   : > { %v1618_v55 = vsel %vm6065_vm0, %v4291_v28, %v1614_v58  ;;  %v1688_v62 = vmul.f32 %v6045_v53, %v1687_v59  ;;  %v1671_v4 = vmul.f32 %v6074_v60, %v6028_v32  ;;  %v1682_v63 = vor.u32 1.1754944e-38, %v1681_v47 }
  0xfb   : > { %v6088_v1 = vpop.eup %4296  ;;  %v1623_v6 = vsel %vm6012_vm9, %v1622_v30, %v1618_v55  ;;  %v1664_v11 = vand.u32 2147483647, %v6030_v3  ;;  %4302 = vpow2.f32 %v3968_v51  ;;  %3710 = vst.msk [vmem:[%s5432_s23 + $0xd0] sm:$0xff] %vm3683_vm4, %v3580_v35  ;;  %v3570_v18 = vmul.f32 %v2992_v21, %v2796_v57 }
  0xfc   : > { %3166 = vperm.xlu0 %4067, %v1623_v6   ;;  %v1689_v17 = vadd.f32 %v6045_v53, %v1688_v62  ;;  %v1672_v50 = vsub.f32 1.0, %v1671_v4  ;;  %vm1676_vm5 = vweird.f32 %v6074_v60  ;;  %v1656_v10 = vmul.f32 %v6088_v1, %v6030_v3 }
  0xfd   : > { %v1666_v20 = vand.u32 2147483648, %v6030_v3  ;;  %3700 = vst.msk [vmem:[%s5432_s23 + $0x80] sm:$0xff] %vm3683_vm4, %v3570_v18  ;;  %v3569_v16 = vmul.f32 %v2987_v7, %v2795_v5  ;;  %v3973_v48 = vmul.f32 -1.442695, %v262_v8  ;;  %v3972_v22 = vmul.f32 -1.442695, %v261_v12  ;;  %vm6122_vm8 = vmor %vm1675_vm6, %vm1676_vm5 }
  0xfe   : > { %v4299_v14 = vpop.eup %4298  ;;  %v1693_v2 = vsel %vm6096_vm3, %v6045_v53, %v1689_v17  ;;  %v1673_v23 = vmul.f32 %v6074_v60, %v1672_v50  ;;  %v1657_v15 = vsub.f32 1.0, %v1656_v10  ;;  %vm1661_vm7 = vweird.f32 %v6088_v1  ;;  %v2809_v3 = vld [vmem:[%s5383_s20 + $0xe8] sm:$0xff] }
  0xff   : > { %v4301_v27 = vpop.eup %4300  ;;  %v1698_v28 = vsel %vm6049_vm14, %v1697_v54, %v1693_v2  ;;  %vm6126_vm9 = vcmp.eq.f32.partialorder %v1664_v11, 8.507059e+37  ;;  %v6130_v31 = vadd.f32 1.0, %v4299_v14  ;;  %3699 = vst.msk [vmem:[%s5432_s23 + $0x78] sm:$0xff] %vm3683_vm4, %v3569_v16  ;;  %4304 = vpow2.f32 %v3973_v48  ;;  %vm6143_vm10 = vmor %vm1660_vm15, %vm1661_vm7  ;;  %v3002_v54 = vpop.permute.xlu0 %3001 }
 0x100   : > { %3191 = vperm.xlu2 %4069, %v1698_v28   ;;  %v1674_v0 = vadd.f32 %v6074_v60, %v1673_v23  ;;  %v1658_v34 = vmul.f32 %v6088_v1, %v1657_v15  ;;  %v6136_v32 = vadd.f32 1.0, %v4301_v27  ;;  %4306 = vpow2.f32 %v3972_v22  ;;  %v271_v27 = vld [vmem:[%s4650_s17 + $0x238] sm:$0xff] }
 0x101   : > { %v4303_v38 = vpop.eup %4302  ;;  %v1667_v43 = vor.u32 1.1754944e-38, %v1666_v20  ;;  %4308 = vrcp.f32 %v6130_v31  ;;  %v1739_v44 = vand.u32 2147483647, %v6130_v31  ;;  %v3971_v19 = vmul.f32 -1.442695, %v260_v49 }
 0x102   : > { %v1678_v45 = vsel %vm6122_vm8, %v6074_v60, %v1674_v0  ;;  %v1659_v46 = vadd.f32 %v6088_v1, %v1658_v34  ;;  %v1741_v53 = vand.u32 2147483648, %v6130_v31  ;;  %4310 = vrcp.f32 %v6136_v32 }
 0x103   : > { %v1683_v39 = vsel %vm6076_vm2, %v1682_v63, %v1678_v45  ;;  %vm1735_vm11 = vweird.f32 %v6130_v31  ;;  %v3976_v26 = vmul.f32 -1.442695, %v265_v41  ;;  %v1724_v47 = vand.u32 2147483647, %v6136_v32 }
 0x104   : > { %3186 = vperm.xlu1 %4068, %v1683_v39   ;;  %v1663_v42 = vsel %vm6143_vm10, %v6088_v1, %v1659_v46  ;;  %v1726_v52 = vand.u32 2147483648, %v6136_v32  ;;  %v6165_v40 = vadd.f32 1.0, %v4303_v38  ;;  %4312 = vpow2.f32 %v3971_v19  ;;  %v3072_v39 = vpop.permute.xlu2 %3071 }
 0x105   : > { %v4305_v56 = vpop.eup %4304  ;;  %v1668_v13 = vsel %vm6126_vm9, %v1667_v43, %v1663_v42  ;;  %v3583_v58 = vmul.f32 %v3057_v25, %v2809_v3  ;;  %v3573_v59 = vmul.f32 %v3007_v37, %v2799_v29  ;;  %vm6170_vm12 = vcmp.eq.f32.partialorder %v1739_v44, 8.507059e+37 }
 0x106   : > { %v4307_v57 = vpop.eup %4306  ;;  %3181 = vperm.xlu0 %4067, %v1668_v13   ;;  %v1742_v60 = vor.u32 1.1754944e-38, %v1741_v53  ;;  %vm1720_vm13 = vweird.f32 %v6136_v32  ;;  %4314 = vrcp.f32 %v6165_v40  ;;  %v1709_v51 = vand.u32 2147483647, %v6165_v40  ;;  %v263_v53 = vld [vmem:[%s4650_s17 + $0x1f8] sm:$0xff] }
 0x107   : > { %v4309_v61 = vpop.eup %4308  ;;  %v6177_v35 = vadd.f32 1.0, %v4305_v56  ;;  %v6179_v55 = vadd.f32 1.0, %v4307_v57  ;;  %3713 = vst.msk [vmem:[%s5432_s23 + $0xe8] sm:$0xff] %vm3683_vm4, %v3583_v58  ;;  %v3572_v62 = vmul.f32 %v3002_v54, %v2798_v36  ;;  %vm6184_vm14 = vcmp.eq.f32.partialorder %v1724_v47, 8.507059e+37  ;;  %v2812_v57 = vld [vmem:[%s5383_s20 + $0x100] sm:$0xff] }
 0x108   : > { %v4311_v4 = vpop.eup %4310  ;;  %v1731_v63 = vmul.f32 %v4309_v61, %v6130_v31  ;;  %v1711_v7 = vand.u32 2147483648, %v6165_v40  ;;  %3703 = vst.msk [vmem:[%s5432_s23 + $0x98] sm:$0xff] %vm3683_vm4, %v3573_v59  ;;  %4316 = vpow2.f32 %v3976_v26  ;;  %v1727_v12 = vor.u32 1.1754944e-38, %v1726_v52  ;;  %v3022_v26 = vpop.permute.xlu1 %3021 }
 0x109   : > { %v1716_v8 = vmul.f32 %v4311_v4, %v6136_v32  ;;  %vm1705_vm0 = vweird.f32 %v6165_v40  ;;  %4318 = vrcp.f32 %v6177_v35  ;;  %3702 = vst.msk [vmem:[%s5432_s23 + $0x90] sm:$0xff] %vm3683_vm4, %v3572_v62  ;;  %vm1736_vm6 = vweird.f32 %v4309_v61  ;;  %v2802_v62 = vld [vmem:[%s5383_s20 + $0xb0] sm:$0xff] }
 0x10a   : > { %v1732_v1 = vsub.f32 1.0, %v1731_v63  ;;  %v1784_v6 = vand.u32 2147483647, %v6177_v35  ;;  %v1786_v9 = vand.u32 2147483648, %v6177_v35  ;;  %v4313_v11 = vpop.eup %4312  ;;  %vm1721_vm15 = vweird.f32 %v4311_v4  ;;  %vm6207_vm3 = vmor %vm1735_vm11, %vm1736_vm6 }
 0x10b   : > { %v1717_v18 = vsub.f32 1.0, %v1716_v8  ;;  %vm6198_vm1 = vcmp.eq.f32.partialorder %v1709_v51, 8.507059e+37  ;;  %4320 = vrcp.f32 %v6179_v55  ;;  %v1712_v20 = vor.u32 1.1754944e-38, %v1711_v7  ;;  %vm6217_vm7 = vmor %vm1720_vm13, %vm1721_vm15  ;;  %v268_v8 = vld [vmem:[%s4650_s17 + $0x220] sm:$0xff] }
 0x10c   : > { %v4315_v50 = vpop.eup %4314  ;;  %v1733_v10 = vmul.f32 %v4309_v61, %v1732_v1  ;;  %vm1780_vm2 = vweird.f32 %v6177_v35  ;;  %v1769_v16 = vand.u32 2147483647, %v6179_v55  ;;  %vm1765_vm5 = vweird.f32 %v6179_v55 }
 0x10d   : > { %v1718_v22 = vmul.f32 %v4311_v4, %v1717_v18  ;;  %v1701_v14 = vmul.f32 %v4315_v50, %v6165_v40  ;;  %v1771_v2 = vand.u32 2147483648, %v6179_v55  ;;  %vm6221_vm8 = vcmp.eq.f32.partialorder %v1784_v6, 8.507059e+37  ;;  %v3017_v40 = vpop.permute.xlu0 %3016  ;;  %v267_v6 = vld [vmem:[%s4650_s17 + $0x218] sm:$0xff] }
 0x10e   : > { %v4317_v23 = vpop.eup %4316  ;;  %v1734_v15 = vadd.f32 %v4309_v61, %v1733_v10  ;;  %v6225_v28 = vor.u32 1.1754944e-38, %v1786_v9  ;;  %v6227_v24 = vadd.f32 1.0, %v4313_v11  ;;  %vm1706_vm9 = vweird.f32 %v4315_v50  ;;  %v266_v9 = vld [vmem:[%s4650_s17 + $0x210] sm:$0xff] }
 0x10f   : > { %v6229_v30 = vpop.eup %4318  ;;  %v1719_v31 = vadd.f32 %v4311_v4, %v1718_v22  ;;  %v1702_v0 = vsub.f32 1.0, %v1701_v14  ;;  %v6231_v34 = vadd.f32 1.0, %v4317_v23  ;;  %vm6237_vm10 = vcmp.eq.f32.partialorder %v1769_v16, 8.507059e+37  ;;  %vm6255_vm11 = vmor %vm1705_vm0, %vm1706_vm9 }
 0x110   : > { %v1738_v32 = vsel %vm6207_vm3, %v4309_v61, %v1734_v15  ;;  %v1776_v41 = vmul.f32 %v6229_v30, %v6177_v35  ;;  %4322 = vrcp.f32 %v6227_v24  ;;  %v1772_v46 = vor.u32 1.1754944e-38, %v1771_v2 }
 0x111   : > { %v6243_v43 = vpop.eup %4320  ;;  %v1743_v44 = vsel %vm6170_vm12, %v1742_v60, %v1738_v32  ;;  %v1723_v19 = vsel %vm6217_vm7, %v4311_v4, %v1719_v31  ;;  %v1703_v45 = vmul.f32 %v4315_v50, %v1702_v0  ;;  %vm1781_vm12 = vweird.f32 %v6229_v30  ;;  %v2801_v4 = vld [vmem:[%s5383_s20 + $0xa8] sm:$0xff]  ;;  %v2815_v31 = vld [vmem:[%s5383_s20 + $0x118] sm:$0xff]  ;;  %v3037_v32 = vpop.permute.xlu1 %3036 }
 0x112   : > { %3206 = vperm.xlu2 %4069, %v1743_v44   ;;  %v1728_v3 = vsel %vm6184_vm14, %v1727_v12, %v1723_v19  ;;  %v1777_v29 = vsub.f32 1.0, %v1776_v41  ;;  %v1761_v37 = vmul.f32 %v6243_v43, %v6179_v55  ;;  %v1754_v47 = vand.u32 2147483647, %v6227_v24  ;;  %vm6272_vm14 = vmor %vm1780_vm2, %vm1781_vm12  ;;  %v2805_v0 = vld [vmem:[%s5383_s20 + $0xc8] sm:$0xff]  ;;  %v2804_v41 = vld [vmem:[%s5383_s20 + $0xc0] sm:$0xff] }
 0x113   : > { %3201 = vperm.xlu1 %4068, %v1728_v3   ;;  %v1704_v42 = vadd.f32 %v4315_v50, %v1703_v45  ;;  %4324 = vrcp.f32 %v6231_v34  ;;  %v3975_v52 = vmul.f32 -1.442695, %v264_v33  ;;  %vm1766_vm13 = vweird.f32 %v6243_v43 }
 0x114   : > { %v1778_v36 = vmul.f32 %v6229_v30, %v1777_v29  ;;  %v1762_v54 = vsub.f32 1.0, %v1761_v37  ;;  %v3974_v56 = vmul.f32 -1.442695, %v263_v53  ;;  %vm1750_vm0 = vweird.f32 %v6227_v24  ;;  %vm6293_vm15 = vmor %vm1765_vm5, %vm1766_vm13 }
 0x115   : > { %v1708_v13 = vsel %vm6255_vm11, %v4315_v50, %v1704_v42  ;;  %v1756_v59 = vand.u32 2147483648, %v6227_v24  ;;  %vm1825_vm6 = vweird.f32 %v6231_v34  ;;  %v1829_v35 = vand.u32 2147483647, %v6231_v34  ;;  %v3032_v19 = vpop.permute.xlu0 %3031 }
 0x116   : > { %v6280_v21 = vpop.eup %4322  ;;  %v1713_v60 = vsel %vm6198_vm1, %v1712_v20, %v1708_v13  ;;  %v1779_v61 = vadd.f32 %v6229_v30, %v1778_v36  ;;  %v1763_v51 = vmul.f32 %v6243_v43, %v1762_v54  ;;  %vm6300_vm2 = vcmp.eq.f32.partialorder %v1754_v47, 8.507059e+37 }
 0x117   : > { %3196 = vperm.xlu0 %4067, %v1713_v60   ;;  %v1746_v5 = vmul.f32 %v6280_v21, %v6227_v24  ;;  %vm1751_vm1 = vweird.f32 %v6280_v21  ;;  %4326 = vpow2.f32 %v3975_v52  ;;  %v3586_v1 = vmul.f32 %v3072_v39, %v2812_v57  ;;  %v3087_v24 = vpop.permute.xlu2 %3086 }
 0x118   : > { %v1783_v55 = vsel %vm6272_vm14, %v6229_v30, %v1779_v61  ;;  %v1764_v12 = vadd.f32 %v6243_v43, %v1763_v51  ;;  %4328 = vpow2.f32 %v3974_v56  ;;  %v3576_v50 = vmul.f32 %v3022_v26, %v2802_v62  ;;  %vm6331_vm3 = vmor %vm1750_vm0, %vm1751_vm1 }
 0x119   : > { %v6311_v11 = vpop.eup %4324  ;;  %v1788_v18 = vsel %vm6221_vm8, %v6225_v28, %v1783_v55  ;;  %v1747_v17 = vsub.f32 1.0, %v1746_v5  ;;  %v3575_v10 = vmul.f32 %v3017_v40, %v2801_v4  ;;  %v1831_v48 = vand.u32 2147483648, %v6231_v34  ;;  %3716 = vst.msk [vmem:[%s5432_s23 + $0x100] sm:$0xff] %vm3683_vm4, %v3586_v1  ;;  %v270_v40 = vld [vmem:[%s4650_s17 + $0x230] sm:$0xff] }
 0x11a   : > { %3221 = vperm.xlu2 %4069, %v1788_v18   ;;  %v1768_v20 = vsel %vm6293_vm15, %v6243_v43, %v1764_v12  ;;  %v1821_v16 = vmul.f32 %v6311_v11, %v6231_v34  ;;  %v3979_v22 = vmul.f32 -1.442695, %v268_v8  ;;  %3706 = vst.msk [vmem:[%s5432_s23 + $0xb0] sm:$0xff] %vm3683_vm4, %v3576_v50  ;;  %v3978_v15 = vmul.f32 -1.442695, %v267_v6  ;;  %v274_v50 = vld [vmem:[%s4650_s17 + $0x250] sm:$0xff] }
 0x11b   : > { %v1773_v14 = vsel %vm6237_vm10, %v1772_v46, %v1768_v20  ;;  %v1748_v2 = vmul.f32 %v6280_v21, %v1747_v17  ;;  %v3977_v49 = vmul.f32 -1.442695, %v266_v9  ;;  %v1757_v28 = vor.u32 1.1754944e-38, %v1756_v59  ;;  %3705 = vst.msk [vmem:[%s5432_s23 + $0xa8] sm:$0xff] %vm3683_vm4, %v3575_v10  ;;  %v273_v10 = vld [vmem:[%s4650_s17 + $0x248] sm:$0xff] }
 0x11c   : > { %3216 = vperm.xlu1 %4068, %v1773_v14   ;;  %v1822_v30 = vsub.f32 1.0, %v1821_v16  ;;  %vm1826_vm5 = vweird.f32 %v6311_v11  ;;  %4330 = vpow2.f32 %v3979_v22  ;;  %v3589_v43 = vmul.f32 %v3087_v24, %v2815_v31  ;;  %v2821_v16 = vld [vmem:[%s5383_s20 + $0x148] sm:$0xff] }
 0x11d   : > { %v4327_v38 = vpop.eup %4326  ;;  %v1749_v33 = vadd.f32 %v6280_v21, %v1748_v2  ;;  %4332 = vpow2.f32 %v3978_v15  ;;  %v3579_v44 = vmul.f32 %v3037_v32, %v2805_v0  ;;  %v1832_v53 = vor.u32 1.1754944e-38, %v1831_v48  ;;  %vm6355_vm7 = vmor %vm1825_vm6, %vm1826_vm5 }
 0x11e   : > { %v4329_v45 = vpop.eup %4328  ;;  %v1823_v46 = vmul.f32 %v6311_v11, %v1822_v30  ;;  %v6346_v3 = vadd.f32 1.0, %v4327_v38  ;;  %v3578_v25 = vmul.f32 %v3032_v19, %v2804_v41  ;;  %4334 = vpow2.f32 %v3977_v49  ;;  %3719 = vst.msk [vmem:[%s5432_s23 + $0x118] sm:$0xff] %vm3683_vm4, %v3589_v43 }
 0x11f   : > { %v1753_v29 = vsel %vm6331_vm3, %v6280_v21, %v1749_v33  ;;  %v6359_v39 = vadd.f32 1.0, %v4329_v45  ;;  %v3982_v26 = vmul.f32 -1.442695, %v271_v27  ;;  %vm1830_vm8 = vcmp.eq.f32.partialorder %v1829_v35, 8.507059e+37  ;;  %3709 = vst.msk [vmem:[%s5432_s23 + $0xc8] sm:$0xff] %vm3683_vm4, %v3579_v44 }
 0x120   : > { %v1758_v42 = vsel %vm6300_vm2, %v1757_v28, %v1753_v29  ;;  %v1824_v47 = vadd.f32 %v6311_v11, %v1823_v46  ;;  %4336 = vrcp.f32 %v6346_v3  ;;  %v1814_v52 = vand.u32 2147483647, %v6346_v3  ;;  %3708 = vst.msk [vmem:[%s5432_s23 + $0xc0] sm:$0xff] %vm3683_vm4, %v3578_v25  ;;  %v3102_v46 = vpop.permute.xlu2 %3101  ;;  %v3047_v29 = vpop.permute.xlu0 %3046  ;;  %v277_v28 = vld [vmem:[%s4650_s17 + $0x268] sm:$0xff] }
 0x121   : > { %3211 = vperm.xlu0 %4067, %v1758_v42   ;;  %4338 = vrcp.f32 %v6359_v39  ;;  %v1816_v34 = vand.u32 2147483648, %v6346_v3  ;;  %v1799_v58 = vand.u32 2147483647, %v6359_v39  ;;  %v1801_v57 = vand.u32 2147483648, %v6359_v39 }
 0x122   : > { %v4331_v36 = vpop.eup %4330  ;;  %v1828_v54 = vsel %vm6355_vm7, %v6311_v11, %v1824_v47  ;;  %4340 = vpow2.f32 %v3982_v26  ;;  %v3981_v60 = vmul.f32 -1.442695, %v270_v40  ;;  %vm1810_vm9 = vweird.f32 %v6346_v3  ;;  %v269_v11 = vld [vmem:[%s4650_s17 + $0x228] sm:$0xff] }
 0x123   : > { %v4333_v56 = vpop.eup %4332  ;;  %v1833_v13 = vsel %vm1830_vm8, %v1832_v53, %v1828_v54  ;;  %v6381_v59 = vadd.f32 1.0, %v4331_v36  ;;  %vm6387_vm10 = vcmp.eq.f32.partialorder %v1814_v52, 8.507059e+37  ;;  %vm1795_vm11 = vweird.f32 %v6359_v39  ;;  %v3052_v53 = vpop.permute.xlu1 %3051 }
 0x124   : > { %3236 = vperm.xlu2 %4069, %v1833_v13   ;;  %v6384_v21 = vadd.f32 1.0, %v4333_v56  ;;  %v4335_v61 = vpop.eup %4334  ;;  %v1817_v62 = vor.u32 1.1754944e-38, %v1816_v34  ;;  %vm6397_vm12 = vcmp.eq.f32.partialorder %v1799_v58, 8.507059e+37  ;;  %v1802_v9 = vor.u32 1.1754944e-38, %v1801_v57 }
 0x125   : > { %4342 = vrcp.f32 %v6381_v59  ;;  %v1874_v4 = vand.u32 2147483647, %v6381_v59  ;;  %v1876_v63 = vand.u32 2147483648, %v6381_v59  ;;  %vm1870_vm13 = vweird.f32 %v6381_v59 }
 0x126   : > { %v4337_v35 = vpop.eup %4336  ;;  %4344 = vrcp.f32 %v6384_v21  ;;  %v1859_v55 = vand.u32 2147483647, %v6384_v21  ;;  %v1861_v12 = vand.u32 2147483648, %v6384_v21  ;;  %vm1855_vm0 = vweird.f32 %v6384_v21 }
 0x127   : > { %v4339_v5 = vpop.eup %4338  ;;  %v1806_v7 = vmul.f32 %v4337_v35, %v6346_v3  ;;  %4346 = vpow2.f32 %v3981_v60  ;;  %vm1811_vm14 = vweird.f32 %v4337_v35  ;;  %v6407_v17 = vadd.f32 1.0, %v4335_v61 }
 0x128   : > { %v4341_v1 = vpop.eup %4340  ;;  %v1791_v6 = vmul.f32 %v4339_v5, %v6359_v39  ;;  %vm1796_vm6 = vweird.f32 %v4339_v5  ;;  %vm6411_vm15 = vcmp.eq.f32.partialorder %v1874_v4, 8.507059e+37  ;;  %v1877_v48 = vor.u32 1.1754944e-38, %v1876_v63  ;;  %vm6425_vm2 = vmor %vm1810_vm9, %vm1811_vm14  ;;  %v2808_v4 = vld [vmem:[%s5383_s20 + $0xe0] sm:$0xff]  ;;  %v2807_v63 = vld [vmem:[%s5383_s20 + $0xd8] sm:$0xff] }
 0x129   : > { %v1807_v18 = vsub.f32 1.0, %v1806_v7  ;;  %v6415_v22 = vadd.f32 1.0, %v4341_v1  ;;  %vm6417_vm1 = vcmp.eq.f32.partialorder %v1859_v55, 8.507059e+37  ;;  %v1862_v15 = vor.u32 1.1754944e-38, %v1861_v12  ;;  %vm6437_vm3 = vmor %vm1795_vm11, %vm1796_vm6  ;;  %v272_v12 = vld [vmem:[%s4650_s17 + $0x240] sm:$0xff] }
 0x12a   : > { %v1792_v20 = vsub.f32 1.0, %v1791_v6  ;;  %4348 = vrcp.f32 %v6407_v17  ;;  %v3980_v49 = vmul.f32 -1.442695, %v269_v11  ;;  %v6430_v24 = vmul.f32 -1.442695, %v274_v50 }
 0x12b   : > { %v4343_v14 = vpop.eup %4342  ;;  %v1808_v2 = vmul.f32 %v4337_v35, %v1807_v18  ;;  %v6432_v0 = vmul.f32 -1.442695, %v273_v10  ;;  %v1844_v33 = vand.u32 2147483647, %v6407_v17  ;;  %v1846_v45 = vand.u32 2147483648, %v6407_v17 }
 0x12c   : > { %v4345_v27 = vpop.eup %4344  ;;  %v1793_v30 = vmul.f32 %v4339_v5, %v1792_v20  ;;  %v1866_v31 = vmul.f32 %v4343_v14, %v6381_v59  ;;  %vm1871_vm5 = vweird.f32 %v4343_v14  ;;  %4350 = vrcp.f32 %v6415_v22 }
 0x12d   : > { %v1809_v32 = vadd.f32 %v4337_v35, %v1808_v2  ;;  %v1851_v38 = vmul.f32 %v4345_v27, %v6384_v21  ;;  %v4347_v43 = vpop.eup %4346  ;;  %vm1856_vm7 = vweird.f32 %v4345_v27  ;;  %vm1840_vm8 = vweird.f32 %v6407_v17  ;;  %vm6460_vm9 = vmor %vm1870_vm13, %vm1871_vm5  ;;  %v3067_v2 = vpop.permute.xlu1 %3066 }
 0x12e   : > { %v1794_v44 = vadd.f32 %v4339_v5, %v1793_v30  ;;  %v1867_v19 = vsub.f32 1.0, %v1866_v31  ;;  %v1919_v42 = vand.u32 2147483647, %v6415_v22  ;;  %v1921_v54 = vand.u32 2147483648, %v6415_v22 }
 0x12f   : > { %v1813_v3 = vsel %vm6425_vm2, %v4337_v35, %v1809_v32  ;;  %v1852_v25 = vsub.f32 1.0, %v1851_v38  ;;  %v6465_v34 = vadd.f32 1.0, %v4347_v43  ;;  %vm6476_vm11 = vcmp.eq.f32.partialorder %v1844_v33, 8.507059e+37  ;;  %v276_v38 = vld [vmem:[%s4650_s17 + $0x260] sm:$0xff] }
 0x130   : > { %v1818_v37 = vsel %vm6387_vm10, %v1817_v62, %v1813_v3  ;;  %v1798_v39 = vsel %vm6437_vm3, %v4339_v5, %v1794_v44  ;;  %v1868_v26 = vmul.f32 %v4343_v14, %v1867_v19  ;;  %v6453_v47 = vpop.eup %4348  ;;  %vm6470_vm10 = vmor %vm1855_vm0, %vm1856_vm7  ;;  %v1847_v57 = vor.u32 1.1754944e-38, %v1846_v45  ;;  %v2818_v62 = vld [vmem:[%s5383_s20 + $0x130] sm:$0xff] }
 0x131   : > { %3231 = vperm.xlu1 %4068, %v1818_v37   ;;  %v1803_v52 = vsel %vm6397_vm12, %v1802_v9, %v1798_v39  ;;  %v1853_v36 = vmul.f32 %v4345_v27, %v1852_v25  ;;  %v1836_v58 = vmul.f32 %v6453_v47, %v6407_v17  ;;  %vm1841_vm12 = vweird.f32 %v6453_v47  ;;  %v2810_v17 = vld [vmem:[%s5383_s20 + $0xf0] sm:$0xff]  ;;  %v275_v25 = vld [vmem:[%s4650_s17 + $0x258] sm:$0xff] }
 0x132   : > { %3226 = vperm.xlu0 %4067, %v1803_v52   ;;  %v1869_v56 = vadd.f32 %v4343_v14, %v1868_v26  ;;  %vm1915_vm13 = vweird.f32 %v6415_v22  ;;  %4352 = vrcp.f32 %v6465_v34  ;;  %v6483_v21 = vpop.eup %4350  ;;  %vm6487_vm14 = vcmp.eq.f32.partialorder %v1919_v42, 8.507059e+37  ;;  %vm6508_vm0 = vmor %vm1840_vm8, %vm1841_vm12 }
 0x133   : > { %v1854_v60 = vadd.f32 %v4345_v27, %v1853_v36  ;;  %v1837_v51 = vsub.f32 1.0, %v1836_v58  ;;  %4354 = vpow2.f32 %v3980_v49  ;;  %v1911_v8 = vmul.f32 %v6483_v21, %v6415_v22 }
 0x134   : > { %v1873_v61 = vsel %vm6460_vm9, %v4343_v14, %v1869_v56  ;;  %v1922_v55 = vor.u32 1.1754944e-38, %v1921_v54  ;;  %vm1916_vm6 = vweird.f32 %v6483_v21  ;;  %v1904_v11 = vand.u32 2147483647, %v6465_v34  ;;  %v2811_v14 = vld [vmem:[%s5383_s20 + $0xf8] sm:$0xff] }
 0x135   : > { %v1878_v5 = vsel %vm6411_vm15, %v1877_v48, %v1873_v61  ;;  %v1858_v7 = vsel %vm6470_vm10, %v4345_v27, %v1854_v60  ;;  %v1838_v6 = vmul.f32 %v6453_v47, %v1837_v51  ;;  %v1912_v18 = vsub.f32 1.0, %v1911_v8  ;;  %v3117_v48 = vpop.permute.xlu2 %3116  ;;  %v3062_v27 = vpop.permute.xlu0 %3061  ;;  %vm6535_vm15 = vmor %vm1915_vm13, %vm1916_vm6 }
 0x136   : > { %3251 = vperm.xlu2 %4069, %v1878_v5   ;;  %v1863_v1 = vsel %vm6417_vm1, %v1862_v15, %v1858_v7  ;;  %v3592_v50 = vmul.f32 %v3102_v46, %v2818_v62  ;;  %v3582_v10 = vmul.f32 %v3052_v53, %v2808_v4  ;;  %v3581_v20 = vmul.f32 %v3047_v29, %v2807_v63  ;;  %v2824_v62 = vld [vmem:[%s5383_s20 + $0x160] sm:$0xff]  ;;  %v2814_v63 = vld [vmem:[%s5383_s20 + $0x110] sm:$0xff]  ;;  %v3082_v5 = vpop.permute.xlu1 %3081 }
 0x137   : > { %v1839_v23 = vadd.f32 %v6453_v47, %v1838_v6  ;;  %4356 = vpow2.f32 %v6430_v24  ;;  %v3983_v15 = vmul.f32 -1.442695, %v272_v12  ;;  %v3595_v49 = vmul.f32 %v3117_v48, %v2821_v16 }
 0x138   : > { %v6520_v30 = vpop.eup %4352  ;;  %v1913_v31 = vmul.f32 %v6483_v21, %v1912_v18  ;;  %v1906_v32 = vand.u32 2147483648, %v6465_v34  ;;  %3722 = vst.msk [vmem:[%s5432_s23 + $0x130] sm:$0xff] %vm3683_vm4, %v3592_v50  ;;  %4358 = vpow2.f32 %v6432_v0  ;;  %v3585_v41 = vmul.f32 %v3067_v2, %v2811_v14 }
 0x139   : > { %3246 = vperm.xlu1 %4068, %v1863_v1   ;;  %v4355_v24 = vpop.eup %4354  ;;  %v1843_v33 = vsel %vm6508_vm0, %v6453_v47, %v1839_v23  ;;  %v1896_v0 = vmul.f32 %v6520_v30, %v6465_v34  ;;  %3712 = vst.msk [vmem:[%s5432_s23 + $0xe0] sm:$0xff] %vm3683_vm4, %v3582_v10  ;;  %4360 = vpow2.f32 %v3983_v15  ;;  %v3584_v44 = vmul.f32 %v3062_v27, %v2810_v17  ;;  %v280_v47 = vld [vmem:[%s4650_s17 + $0x280] sm:$0xff] }
 0x13a   : > { %v1848_v19 = vsel %vm6476_vm11, %v1847_v57, %v1843_v33  ;;  %v1914_v45 = vadd.f32 %v6483_v21, %v1913_v31  ;;  %v6546_v46 = vadd.f32 1.0, %v4355_v24  ;;  %3711 = vst.msk [vmem:[%s5432_s23 + $0xd8] sm:$0xff] %vm3683_vm4, %v3581_v20  ;;  %v3988_v22 = vmul.f32 -1.442695, %v277_v28  ;;  %v2813_v31 = vld [vmem:[%s5383_s20 + $0x108] sm:$0xff] }
 0x13b   : > { %3241 = vperm.xlu0 %4067, %v1848_v19   ;;  %v1897_v53 = vsub.f32 1.0, %v1896_v0  ;;  %vm1900_vm1 = vweird.f32 %v6465_v34  ;;  %vm1901_vm2 = vweird.f32 %v6520_v30  ;;  %3725 = vst.msk [vmem:[%s5432_s23 + $0x148] sm:$0xff] %vm3683_vm4, %v3595_v49  ;;  %v3987_v3 = vmul.f32 -1.442695, %v276_v38 }
 0x13c   : > { %v1918_v29 = vsel %vm6535_vm15, %v6483_v21, %v1914_v45  ;;  %4362 = vrcp.f32 %v6546_v46  ;;  %3715 = vst.msk [vmem:[%s5432_s23 + $0xf8] sm:$0xff] %vm3683_vm4, %v3585_v41  ;;  %v1889_v42 = vand.u32 2147483647, %v6546_v46  ;;  %vm6572_vm3 = vmor %vm1900_vm1, %vm1901_vm2  ;;  %vm6576_vm5 = vcmp.eq.f32.partialorder %v1904_v11, 8.507059e+37 }
 0x13d   : > { %v4357_v37 = vpop.eup %4356  ;;  %v1923_v39 = vsel %vm6487_vm14, %v1922_v55, %v1918_v29  ;;  %v1898_v26 = vmul.f32 %v6520_v30, %v1897_v53  ;;  %3714 = vst.msk [vmem:[%s5432_s23 + $0xf0] sm:$0xff] %vm3683_vm4, %v3584_v44  ;;  %4364 = vpow2.f32 %v3988_v22  ;;  %v1907_v54 = vor.u32 1.1754944e-38, %v1906_v32  ;;  %v3132_v4 = vpop.permute.xlu2 %3131 }
 0x13e   : > { %v4359_v52 = vpop.eup %4358  ;;  %3266 = vperm.xlu2 %4069, %v1923_v39   ;;  %v6580_v56 = vadd.f32 1.0, %v4357_v37  ;;  %v3986_v13 = vmul.f32 -1.442695, %v275_v25  ;;  %v1891_v57 = vand.u32 2147483648, %v6546_v46  ;;  %4366 = vpow2.f32 %v3987_v3  ;;  %v3077_v32 = vpop.permute.xlu0 %3076 }
 0x13f   : > { %v4361_v58 = vpop.eup %4360  ;;  %v1899_v59 = vadd.f32 %v6520_v30, %v1898_v26  ;;  %v6584_v34 = vadd.f32 1.0, %v4359_v52  ;;  %vm1885_vm7 = vweird.f32 %v6546_v46  ;;  %v3991_v60 = vmul.f32 -1.442695, %v280_v47 }
 0x140   : > { %4368 = vrcp.f32 %v6580_v56  ;;  %vm6591_vm8 = vcmp.eq.f32.partialorder %v1889_v42, 8.507059e+37  ;;  %v1964_v51 = vand.u32 2147483647, %v6580_v56  ;;  %v1966_v35 = vand.u32 2147483648, %v6580_v56 }
 0x141   : > { %v1903_v21 = vsel %vm6572_vm3, %v6520_v30, %v1899_v59  ;;  %4370 = vrcp.f32 %v6584_v34  ;;  %v1949_v55 = vand.u32 2147483647, %v6584_v34  ;;  %v1951_v12 = vand.u32 2147483648, %v6584_v34 }
 0x142   : > { %v4363_v7 = vpop.eup %4362  ;;  %v1908_v8 = vsel %vm6576_vm5, %v1907_v54, %v1903_v21  ;;  %4372 = vpow2.f32 %v3986_v13  ;;  %v1892_v9 = vor.u32 1.1754944e-38, %v1891_v57  ;;  %vm1960_vm9 = vweird.f32 %v6580_v56 }
 0x143   : > { %v4365_v1 = vpop.eup %4364  ;;  %3261 = vperm.xlu1 %4068, %v1908_v8   ;;  %v1881_v6 = vmul.f32 %v4363_v7, %v6546_v46  ;;  %v6606_v11 = vadd.f32 1.0, %v4361_v58  ;;  %vm1945_vm10 = vweird.f32 %v6584_v34  ;;  %v3598_v50 = vmul.f32 %v3132_v4, %v2824_v62  ;;  %v279_v4 = vld [vmem:[%s4650_s17 + $0x278] sm:$0xff]  ;;  %v282_v46 = vld [vmem:[%s4650_s17 + $0x290] sm:$0xff] }
 0x144   : > { %v6609_v18 = vadd.f32 1.0, %v4365_v1  ;;  %v3588_v10 = vmul.f32 %v3082_v5, %v2814_v63  ;;  %v4367_v20 = vpop.eup %4366  ;;  %vm1886_vm11 = vweird.f32 %v4363_v7  ;;  %vm6611_vm12 = vcmp.eq.f32.partialorder %v1964_v51, 8.507059e+37 }
 0x145   : > { %v1882_v16 = vsub.f32 1.0, %v1881_v6  ;;  %v1967_v14 = vor.u32 1.1754944e-38, %v1966_v35  ;;  %4374 = vrcp.f32 %v6606_v11  ;;  %vm6616_vm13 = vcmp.eq.f32.partialorder %v1949_v55, 8.507059e+37  ;;  %3728 = vst.msk [vmem:[%s5432_s23 + $0x160] sm:$0xff] %vm3683_vm4, %v3598_v50  ;;  %vm6636_vm6 = vmor %vm1885_vm7, %vm1886_vm11 }
 0x146   : > { %v4369_v2 = vpop.eup %4368  ;;  %v6620_v23 = vor.u32 1.1754944e-38, %v1951_v12  ;;  %v1934_v15 = vand.u32 2147483647, %v6606_v11  ;;  %v1936_v49 = vand.u32 2147483648, %v6606_v11  ;;  %4376 = vrcp.f32 %v6609_v18  ;;  %3718 = vst.msk [vmem:[%s5432_s23 + $0x110] sm:$0xff] %vm3683_vm4, %v3588_v10  ;;  %v278_v12 = vld [vmem:[%s4650_s17 + $0x270] sm:$0xff]  ;;  %v3147_v10 = vpop.permute.xlu2 %3146 }
 0x147   : > { %v4371_v27 = vpop.eup %4370  ;;  %v1883_v28 = vmul.f32 %v4363_v7, %v1882_v16  ;;  %v1956_v30 = vmul.f32 %v4369_v2, %v6580_v56  ;;  %vm1930_vm14 = vweird.f32 %v6606_v11  ;;  %vm2005_vm0 = vweird.f32 %v6609_v18 }
 0x148   : > { %v4373_v41 = vpop.eup %4372  ;;  %vm1961_vm15 = vweird.f32 %v4369_v2  ;;  %v1941_v24 = vmul.f32 %v4371_v27, %v6584_v34  ;;  %vm1946_vm1 = vweird.f32 %v4371_v27  ;;  %v2009_v33 = vand.u32 2147483647, %v6609_v18 }
 0x149   : > { %v1884_v43 = vadd.f32 %v4363_v7, %v1883_v28  ;;  %v1957_v0 = vsub.f32 1.0, %v1956_v30  ;;  %v2011_v44 = vand.u32 2147483648, %v6609_v18  ;;  %v6643_v19 = vadd.f32 1.0, %v4367_v20  ;;  %vm6661_vm3 = vmor %vm1960_vm9, %vm1961_vm15  ;;  %v3097_v20 = vpop.permute.xlu1 %3096 }
 0x14a   : > { %v1942_v45 = vsub.f32 1.0, %v1941_v24  ;;  %vm6645_vm2 = vcmp.eq.f32.partialorder %v1934_v15, 8.507059e+37  ;;  %v6649_v22 = vor.u32 1.1754944e-38, %v1936_v49  ;;  %v3587_v53 = vmul.f32 %v3077_v32, %v2813_v31  ;;  %vm6675_vm7 = vmor %vm1945_vm10, %vm1946_vm1  ;;  %v2827_v49 = vld [vmem:[%s5383_s20 + $0x178] sm:$0xff]  ;;  %v2817_v32 = vld [vmem:[%s5383_s20 + $0x128] sm:$0xff] }
 0x14b   : > { %4378 = vpow2.f32 %v3991_v60  ;;  %v4375_v3 = vpop.eup %4374  ;;  %v1888_v25 = vsel %vm6636_vm6, %v4363_v7, %v1884_v43  ;;  %v1958_v29 = vmul.f32 %v4369_v2, %v1957_v0  ;;  %v6654_v37 = vadd.f32 1.0, %v4373_v41  ;;  %v2816_v43 = vld [vmem:[%s5383_s20 + $0x120] sm:$0xff]  ;;  %v283_v0 = vld [vmem:[%s4650_s17 + $0x298] sm:$0xff] }
 0x14c   : > { %4380 = vrcp.f32 %v6643_v19  ;;  %v4377_v39 = vpop.eup %4376  ;;  %v1893_v26 = vsel %vm6591_vm8, %v1892_v9, %v1888_v25  ;;  %v1943_v47 = vmul.f32 %v4371_v27, %v1942_v45  ;;  %v1926_v52 = vmul.f32 %v4375_v3, %v6606_v11  ;;  %3717 = vst.msk [vmem:[%s5432_s23 + $0x108] sm:$0xff] %vm3683_vm4, %v3587_v53  ;;  %v286_v25 = vld [vmem:[%s4650_s17 + $0x2b0] sm:$0xff] }
 0x14d   : > { %vm6666_vm5 = vcmp.eq.f32.partialorder %v2009_v33, 8.507059e+37  ;;  %3256 = vperm.xlu0 %4067, %v1893_v26   ;;  %v1959_v36 = vadd.f32 %v4369_v2, %v1958_v29  ;;  %vm1931_vm8 = vweird.f32 %v4375_v3  ;;  %v2001_v56 = vmul.f32 %v4377_v39, %v6609_v18  ;;  %v285_v29 = vld [vmem:[%s4650_s17 + $0x2a8] sm:$0xff] }
 0x14e   : > { %v2012_v13 = vor.u32 1.1754944e-38, %v2011_v44  ;;  %v1944_v58 = vadd.f32 %v4371_v27, %v1943_v47  ;;  %v1927_v59 = vsub.f32 1.0, %v1926_v52  ;;  %vm2006_vm9 = vweird.f32 %v4377_v39  ;;  %vm6699_vm11 = vmor %vm1930_vm14, %vm1931_vm8 }
 0x14f   : > { %v1994_v57 = vand.u32 2147483647, %v6643_v19  ;;  %v1963_v60 = vsel %vm6661_vm3, %v4369_v2, %v1959_v36  ;;  %v2002_v21 = vsub.f32 1.0, %v2001_v56  ;;  %v1996_v34 = vand.u32 2147483648, %v6643_v19  ;;  %v3092_v2 = vpop.permute.xlu0 %3091  ;;  %v2830_v56 = vld [vmem:[%s5383_s20 + $0x190] sm:$0xff] }
 0x150   : > { %4382 = vrcp.f32 %v6654_v37  ;;  %v1968_v51 = vsel %vm6611_vm12, %v1967_v14, %v1963_v60  ;;  %v1948_v35 = vsel %vm6675_vm7, %v4371_v27, %v1944_v58  ;;  %v1928_v62 = vmul.f32 %v4375_v3, %v1927_v59 }
 0x151   : > { %v4379_v61 = vpop.eup %4378  ;;  %vm1990_vm10 = vweird.f32 %v6643_v19  ;;  %3281 = vperm.xlu2 %4069, %v1968_v51   ;;  %v1953_v5 = vsel %vm6616_vm13, %v6620_v23, %v1948_v35  ;;  %v2003_v8 = vmul.f32 %v4377_v39, %v2002_v21  ;;  %vm1975_vm12 = vweird.f32 %v6654_v37  ;;  %vm6709_vm13 = vmor %vm2005_vm0, %vm2006_vm9  ;;  %v3112_v58 = vpop.permute.xlu1 %3111 }
 0x152   : > { %v6691_v63 = vpop.eup %4380  ;;  %v1979_v55 = vand.u32 2147483647, %v6654_v37  ;;  %3276 = vperm.xlu1 %4068, %v1953_v5   ;;  %v1929_v1 = vadd.f32 %v4375_v3, %v1928_v62  ;;  %vm6715_vm14 = vcmp.eq.f32.partialorder %v1994_v57, 8.507059e+37  ;;  %v1981_v50 = vand.u32 2147483648, %v6654_v37 }
 0x153   : > { %v1986_v9 = vmul.f32 %v6691_v63, %v6643_v19  ;;  %v2004_v16 = vadd.f32 %v4377_v39, %v2003_v8  ;;  %v1997_v48 = vor.u32 1.1754944e-38, %v1996_v34  ;;  %v6720_v18 = vadd.f32 1.0, %v4379_v61  ;;  %v2820_v34 = vld [vmem:[%s5383_s20 + $0x140] sm:$0xff]  ;;  %v2819_v61 = vld [vmem:[%s5383_s20 + $0x138] sm:$0xff] }
 0x154   : > { %v3990_v14 = vmul.f32 -1.442695, %v279_v4  ;;  %v1933_v17 = vsel %vm6699_vm11, %v4375_v3, %v1929_v1  ;;  %vm1991_vm0 = vweird.f32 %v6691_v63  ;;  %v3989_v15 = vmul.f32 -1.442695, %v278_v12 }
 0x155   : > { %v1987_v23 = vsub.f32 1.0, %v1986_v9  ;;  %v1938_v28 = vsel %vm6645_vm2, %v6649_v22, %v1933_v17  ;;  %v2008_v30 = vsel %vm6709_vm13, %v4377_v39, %v2004_v16  ;;  %vm6733_vm6 = vcmp.eq.f32.partialorder %v1979_v55, 8.507059e+37  ;;  %vm6750_vm15 = vmor %vm1990_vm10, %vm1991_vm0  ;;  %v281_v22 = vld [vmem:[%s4650_s17 + $0x288] sm:$0xff] }
 0x156   : > { %v6726_v27 = vpop.eup %4382  ;;  %4384 = vrcp.f32 %v6720_v18  ;;  %3271 = vperm.xlu0 %4067, %v1938_v28   ;;  %v2013_v41 = vsel %vm6666_vm5, %v2012_v13, %v2008_v30  ;;  %v1982_v33 = vor.u32 1.1754944e-38, %v1981_v50  ;;  %vm2050_vm2 = vweird.f32 %v6720_v18  ;;  %v3162_v13 = vpop.permute.xlu2 %3161  ;;  %v284_v50 = vld [vmem:[%s4650_s17 + $0x2a0] sm:$0xff] }
 0x157   : > { %v1988_v38 = vmul.f32 %v6691_v63, %v1987_v23  ;;  %v1971_v24 = vmul.f32 %v6726_v27, %v6654_v37  ;;  %vm1976_vm1 = vweird.f32 %v6726_v27  ;;  %4386 = vpow2.f32 %v3990_v14  ;;  %v3107_v51 = vpop.permute.xlu0 %3106 }
 0x158   : > { %v3601_v45 = vmul.f32 %v3147_v10, %v2827_v49  ;;  %4388 = vpow2.f32 %v3989_v15  ;;  %v3591_v19 = vmul.f32 %v3097_v20, %v2817_v32  ;;  %v2054_v39 = vand.u32 2147483647, %v6720_v18  ;;  %vm6778_vm3 = vmor %vm1975_vm12, %vm1976_vm1 }
 0x159   : > { %v1989_v53 = vadd.f32 %v6691_v63, %v1988_v38  ;;  %v1972_v3 = vsub.f32 1.0, %v1971_v24  ;;  %3296 = vperm.xlu2 %4069, %v2013_v41   ;;  %v2056_v26 = vand.u32 2147483648, %v6720_v18  ;;  %v3590_v42 = vmul.f32 %v3092_v2, %v2816_v43 }
 0x15a   : > { %3731 = vst.msk [vmem:[%s5432_s23 + $0x178] sm:$0xff] %vm3683_vm4, %v3601_v45  ;;  %v3994_v47 = vmul.f32 -1.442695, %v283_v0  ;;  %v3993_v36 = vmul.f32 -1.442695, %v282_v46  ;;  %v3604_v21 = vmul.f32 %v3162_v13, %v2830_v56  ;;  %v3593_v5 = vmul.f32 %v3107_v51, %v2819_v61 }
 0x15b   : > { %v1993_v52 = vsel %vm6750_vm15, %v6691_v63, %v1989_v53  ;;  %v1973_v40 = vmul.f32 %v6726_v27, %v1972_v3  ;;  %3721 = vst.msk [vmem:[%s5432_s23 + $0x128] sm:$0xff] %vm3683_vm4, %v3591_v19  ;;  %v3992_v54 = vmul.f32 -1.442695, %v281_v22  ;;  %v3997_v35 = vmul.f32 -1.442695, %v286_v25 }
 0x15c   : > { %v4385_v59 = vpop.eup %4384  ;;  %v1998_v57 = vsel %vm6715_vm14, %v1997_v48, %v1993_v52  ;;  %3720 = vst.msk [vmem:[%s5432_s23 + $0x120] sm:$0xff] %vm3683_vm4, %v3590_v42  ;;  %4390 = vpow2.f32 %v3994_v47  ;;  %v3594_v63 = vmul.f32 %v3112_v58, %v2820_v34  ;;  %v3996_v7 = vmul.f32 -1.442695, %v285_v29 }
 0x15d   : > { %3291 = vperm.xlu1 %4068, %v1998_v57   ;;  %v1974_v62 = vadd.f32 %v6726_v27, %v1973_v40  ;;  %v2046_v4 = vmul.f32 %v4385_v59, %v6720_v18  ;;  %vm2051_vm5 = vweird.f32 %v4385_v59  ;;  %4392 = vpow2.f32 %v3993_v36  ;;  %v4387_v37 = vpop.eup %4386  ;;  %3734 = vst.msk [vmem:[%s5432_s23 + $0x190] sm:$0xff] %vm3683_vm4, %v3604_v21 }
 0x15e   : > { %4394 = vpow2.f32 %v3992_v54  ;;  %v4389_v8 = vpop.eup %4388  ;;  %v6793_v1 = vadd.f32 1.0, %v4387_v37  ;;  %3724 = vst.msk [vmem:[%s5432_s23 + $0x140] sm:$0xff] %vm3683_vm4, %v3594_v63  ;;  %vm6808_vm7 = vmor %vm2050_vm2, %vm2051_vm5  ;;  %vm6812_vm8 = vcmp.eq.f32.partialorder %v2054_v39, 8.507059e+37  ;;  %v2057_v48 = vor.u32 1.1754944e-38, %v2056_v26  ;;  %v288_v26 = vld [vmem:[%s4650_s17 + $0x2c0] sm:$0xff] }
 0x15f   : > { %v1978_v55 = vsel %vm6778_vm3, %v6726_v27, %v1974_v62  ;;  %v2047_v12 = vsub.f32 1.0, %v2046_v4  ;;  %4396 = vpow2.f32 %v3997_v35  ;;  %v6797_v9 = vadd.f32 1.0, %v4389_v8  ;;  %3723 = vst.msk [vmem:[%s5432_s23 + $0x138] sm:$0xff] %vm3683_vm4, %v3593_v5  ;;  %v2836_v62 = vld [vmem:[%s5383_s20 + $0x1c0] sm:$0xff] }
 0x160   : > { %v1983_v6 = vsel %vm6733_vm6, %v1982_v33, %v1978_v55  ;;  %4398 = vpow2.f32 %v3996_v7  ;;  %v2039_v14 = vand.u32 2147483647, %v6793_v1  ;;  %v2041_v23 = vand.u32 2147483648, %v6793_v1 }
 0x161   : > { %3286 = vperm.xlu0 %4067, %v1983_v6   ;;  %v2048_v11 = vmul.f32 %v4385_v59, %v2047_v12  ;;  %4400 = vrcp.f32 %v6793_v1  ;;  %v2024_v15 = vand.u32 2147483647, %v6797_v9  ;;  %v2026_v27 = vand.u32 2147483648, %v6797_v9 }
 0x162   : > { %v4391_v10 = vpop.eup %4390  ;;  %4402 = vrcp.f32 %v6797_v9  ;;  %v3995_v30 = vmul.f32 -1.442695, %v284_v50  ;;  %vm2035_vm9 = vweird.f32 %v6793_v1  ;;  %vm2020_vm10 = vweird.f32 %v6797_v9  ;;  %v2833_v50 = vld [vmem:[%s5383_s20 + $0x1a8] sm:$0xff] }
 0x163   : > { %v4393_v2 = vpop.eup %4392  ;;  %v2049_v17 = vadd.f32 %v4385_v59, %v2048_v11  ;;  %v6820_v18 = vadd.f32 1.0, %v4391_v10  ;;  %vm6832_vm11 = vcmp.eq.f32.partialorder %v2039_v14, 8.507059e+37  ;;  %v2042_v44 = vor.u32 1.1754944e-38, %v2041_v23  ;;  %v3177_v10 = vpop.permute.xlu2 %3176 }
 0x164   : > { %v4395_v49 = vpop.eup %4394  ;;  %v6823_v28 = vadd.f32 1.0, %v4393_v2  ;;  %vm6839_vm12 = vcmp.eq.f32.partialorder %v2024_v15, 8.507059e+37  ;;  %v2027_v19 = vor.u32 1.1754944e-38, %v2026_v27  ;;  %v3127_v2 = vpop.permute.xlu1 %3126 }
 0x165   : > { %v4397_v31 = vpop.eup %4396  ;;  %v2053_v32 = vsel %vm6808_vm7, %v4385_v59, %v2049_v17  ;;  %4404 = vrcp.f32 %v6820_v18  ;;  %v2099_v33 = vand.u32 2147483647, %v6820_v18  ;;  %v2101_v43 = vand.u32 2147483648, %v6820_v18 }
 0x166   : > { %v4399_v41 = vpop.eup %4398  ;;  %v2058_v38 = vsel %vm6812_vm8, %v2057_v48, %v2053_v32  ;;  %4406 = vrcp.f32 %v6823_v28  ;;  %v2084_v46 = vand.u32 2147483647, %v6823_v28  ;;  %v6844_v22 = vadd.f32 1.0, %v4395_v49 }
 0x167   : > { %v4401_v0 = vpop.eup %4400  ;;  %3311 = vperm.xlu2 %4069, %v2058_v38   ;;  %vm2095_vm13 = vweird.f32 %v6820_v18  ;;  %4408 = vpow2.f32 %v3995_v30  ;;  %vm2080_vm0 = vweird.f32 %v6823_v28  ;;  %v2086_v29 = vand.u32 2147483648, %v6823_v28 }
 0x168   : > { %v4403_v53 = vpop.eup %4402  ;;  %v2031_v3 = vmul.f32 %v4401_v0, %v6793_v1  ;;  %vm2036_vm14 = vweird.f32 %v4401_v0  ;;  %vm6851_vm6 = vcmp.eq.f32.partialorder %v2099_v33, 8.507059e+37  ;;  %v2102_v42 = vor.u32 1.1754944e-38, %v2101_v43 }
 0x169   : > { %v2016_v25 = vmul.f32 %v4403_v53, %v6797_v9  ;;  %4410 = vrcp.f32 %v6844_v22  ;;  %vm2021_vm15 = vweird.f32 %v4403_v53  ;;  %vm6856_vm1 = vcmp.eq.f32.partialorder %v2084_v46, 8.507059e+37  ;;  %vm6869_vm2 = vmor %vm2035_vm9, %vm2036_vm14  ;;  %v2823_v46 = vld [vmem:[%s5383_s20 + $0x158] sm:$0xff] }
 0x16a   : > { %v2032_v39 = vsub.f32 1.0, %v2031_v3  ;;  %v6860_v36 = vadd.f32 1.0, %v4397_v31  ;;  %v2069_v58 = vand.u32 2147483647, %v6844_v22  ;;  %v6864_v59 = vadd.f32 1.0, %v4399_v41  ;;  %vm6878_vm3 = vmor %vm2020_vm10, %vm2021_vm15 }
 0x16b   : > { %v4405_v47 = vpop.eup %4404  ;;  %v2017_v52 = vsub.f32 1.0, %v2016_v25  ;;  %v2087_v34 = vor.u32 1.1754944e-38, %v2086_v29  ;;  %v2071_v61 = vand.u32 2147483648, %v6844_v22  ;;  %vm2065_vm8 = vweird.f32 %v6844_v22 }
 0x16c   : > { %v4407_v54 = vpop.eup %4406  ;;  %v2033_v56 = vmul.f32 %v4401_v0, %v2032_v39  ;;  %v2091_v13 = vmul.f32 %v4405_v47, %v6820_v18  ;;  %vm2096_vm5 = vweird.f32 %v4405_v47  ;;  %4412 = vrcp.f32 %v6860_v36  ;;  %v3122_v18 = vpop.permute.xlu0 %3121  ;;  %v289_v39 = vld [vmem:[%s4650_s17 + $0x2c8] sm:$0xff] }
 0x16d   : > { %v2018_v60 = vmul.f32 %v4403_v53, %v2017_v52  ;;  %v2076_v21 = vmul.f32 %v4407_v54, %v6823_v28  ;;  %v4409_v51 = vpop.eup %4408  ;;  %vm2081_vm7 = vweird.f32 %v4407_v54  ;;  %vm6886_vm9 = vcmp.eq.f32.partialorder %v2069_v58, 8.507059e+37  ;;  %vm6897_vm10 = vmor %vm2095_vm13, %vm2096_vm5 }
 0x16e   : > { %v2034_v35 = vadd.f32 %v4401_v0, %v2033_v56  ;;  %v2092_v4 = vsub.f32 1.0, %v2091_v13  ;;  %4414 = vrcp.f32 %v6864_v59  ;;  %v2072_v14 = vor.u32 1.1754944e-38, %v2071_v61 }
 0x16f   : > { %v2019_v37 = vadd.f32 %v4403_v53, %v2018_v60  ;;  %v2077_v63 = vsub.f32 1.0, %v2076_v21  ;;  %v4411_v5 = vpop.eup %4410  ;;  %vm2140_vm13 = vweird.f32 %v6860_v36  ;;  %v2144_v15 = vand.u32 2147483647, %v6860_v36 }
 0x170   : > { %v2038_v7 = vsel %vm6869_vm2, %v4401_v0, %v2034_v35  ;;  %v2093_v8 = vmul.f32 %v4405_v47, %v2092_v4  ;;  %v2061_v11 = vmul.f32 %v4411_v5, %v6844_v22  ;;  %vm2066_vm14 = vweird.f32 %v4411_v5  ;;  %v3192_v4 = vpop.permute.xlu2 %3191 }
 0x171   : > { %v2043_v12 = vsel %vm6832_vm11, %v2042_v44, %v2038_v7  ;;  %v2023_v1 = vsel %vm6878_vm3, %v4403_v53, %v2019_v37  ;;  %v2078_v9 = vmul.f32 %v4407_v54, %v2077_v63  ;;  %vm6908_vm11 = vmor %vm2080_vm0, %vm2081_vm7  ;;  %v2146_v28 = vand.u32 2147483648, %v6860_v36  ;;  %v2826_v37 = vld [vmem:[%s5383_s20 + $0x170] sm:$0xff]  ;;  %v3142_v63 = vpop.permute.xlu1 %3141 }
 0x172   : > { %3306 = vperm.xlu1 %4068, %v2043_v12   ;;  %v2028_v20 = vsel %vm6839_vm12, %v2027_v19, %v2023_v1  ;;  %v2094_v16 = vadd.f32 %v4405_v47, %v2093_v8  ;;  %v2062_v23 = vsub.f32 1.0, %v2061_v11  ;;  %v6914_v49 = vpop.eup %4412  ;;  %v6919_v30 = vadd.f32 1.0, %v4409_v51  ;;  %vm6934_vm12 = vmor %vm2065_vm8, %vm2066_vm14  ;;  %v2822_v19 = vld [vmem:[%s5383_s20 + $0x150] sm:$0xff]  ;;  %v292_v12 = vld [vmem:[%s4650_s17 + $0x2e0] sm:$0xff] }
 0x173   : > { %3301 = vperm.xlu0 %4067, %v2028_v20   ;;  %v2079_v17 = vadd.f32 %v4407_v54, %v2078_v9  ;;  %v3607_v31 = vmul.f32 %v3177_v10, %v2833_v50  ;;  %v2136_v24 = vmul.f32 %v6914_v49, %v6860_v36  ;;  %vm2125_vm0 = vweird.f32 %v6864_v59  ;;  %v291_v1 = vld [vmem:[%s4650_s17 + $0x2d8] sm:$0xff]  ;;  %v290_v10 = vld [vmem:[%s4650_s17 + $0x2d0] sm:$0xff] }
 0x174   : > { %v2098_v27 = vsel %vm6897_vm10, %v4405_v47, %v2094_v16  ;;  %v2063_v38 = vmul.f32 %v4411_v5, %v2062_v23  ;;  %v6927_v33 = vpop.eup %4414  ;;  %v2129_v44 = vand.u32 2147483647, %v6864_v59  ;;  %v2131_v45 = vand.u32 2147483648, %v6864_v59  ;;  %v3137_v55 = vpop.permute.xlu0 %3136 }
 0x175   : > { %v2103_v32 = vsel %vm6851_vm6, %v2102_v42, %v2098_v27  ;;  %v2083_v41 = vsel %vm6908_vm11, %v4407_v54, %v2079_v17  ;;  %3737 = vst.msk [vmem:[%s5432_s23 + $0x1a8] sm:$0xff] %vm3683_vm4, %v3607_v31  ;;  %v2137_v3 = vsub.f32 1.0, %v2136_v24  ;;  %vm2141_vm6 = vweird.f32 %v6914_v49  ;;  %v287_v54 = vld [vmem:[%s4650_s17 + $0x2b8] sm:$0xff]  ;;  %v294_v31 = vld [vmem:[%s4650_s17 + $0x2f0] sm:$0xff] }
 0x176   : > { %3326 = vperm.xlu2 %4069, %v2103_v32   ;;  %v2088_v43 = vsel %vm6856_vm1, %v2087_v34, %v2083_v41  ;;  %v2064_v53 = vadd.f32 %v4411_v5, %v2063_v38  ;;  %v2121_v22 = vmul.f32 %v6927_v33, %v6864_v59  ;;  %vm6948_vm15 = vcmp.eq.f32.partialorder %v2144_v15, 8.507059e+37  ;;  %vm6966_vm2 = vmor %vm2140_vm13, %vm2141_vm6  ;;  %v293_v32 = vld [vmem:[%s4650_s17 + $0x2e8] sm:$0xff] }
 0x177   : > { %v2147_v29 = vor.u32 1.1754944e-38, %v2146_v28  ;;  %vm2126_vm1 = vweird.f32 %v6927_v33  ;;  %4416 = vrcp.f32 %v6919_v30  ;;  %v2138_v47 = vmul.f32 %v6914_v49, %v2137_v3  ;;  %v295_v28 = vld [vmem:[%s4650_s17 + $0x2f8] sm:$0xff] }
 0x178   : > { %v2068_v42 = vsel %vm6934_vm12, %v4411_v5, %v2064_v53  ;;  %v2122_v52 = vsub.f32 1.0, %v2121_v22  ;;  %v3597_v40 = vmul.f32 %v3127_v2, %v2823_v46  ;;  %vm6970_vm3 = vcmp.eq.f32.partialorder %v2129_v44, 8.507059e+37  ;;  %vm6980_vm5 = vmor %vm2125_vm0, %vm2126_vm1  ;;  %v2825_v5 = vld [vmem:[%s5383_s20 + $0x168] sm:$0xff]  ;;  %v3207_v0 = vpop.permute.xlu2 %3206 }
 0x179   : > { %v2073_v56 = vsel %vm6886_vm9, %v2072_v14, %v2068_v42  ;;  %v2132_v57 = vor.u32 1.1754944e-38, %v2131_v45  ;;  %v3596_v60 = vmul.f32 %v3122_v18, %v2822_v19  ;;  %v2139_v21 = vadd.f32 %v6914_v49, %v2138_v47  ;;  %v2829_v44 = vld [vmem:[%s5383_s20 + $0x188] sm:$0xff]  ;;  %v3157_v45 = vpop.permute.xlu1 %3156  ;;  %v298_v19 = vld [vmem:[%s4650_s17 + $0x310] sm:$0xff] }
 0x17a   : > { %3321 = vperm.xlu1 %4068, %v2088_v43   ;;  %v2123_v34 = vmul.f32 %v6927_v33, %v2122_v52  ;;  %3727 = vst.msk [vmem:[%s5432_s23 + $0x158] sm:$0xff] %vm3683_vm4, %v3597_v40  ;;  %v4000_v61 = vmul.f32 -1.442695, %v289_v39  ;;  %v3999_v51 = vmul.f32 -1.442695, %v288_v26  ;;  %v3610_v8 = vmul.f32 %v3192_v4, %v2836_v62  ;;  %v2839_v43 = vld [vmem:[%s5383_s20 + $0x1d8] sm:$0xff] }
 0x17b   : > { %3316 = vperm.xlu0 %4067, %v2073_v56   ;;  %3726 = vst.msk [vmem:[%s5432_s23 + $0x150] sm:$0xff] %vm3683_vm4, %v3596_v60  ;;  %v3998_v35 = vmul.f32 -1.442695, %v287_v54  ;;  %v2143_v59 = vsel %vm6966_vm2, %v6914_v49, %v2139_v21  ;;  %v3600_v11 = vmul.f32 %v3142_v63, %v2826_v37  ;;  %v3599_v50 = vmul.f32 %v3137_v55, %v2825_v5  ;;  %v297_v42 = vld [vmem:[%s4650_s17 + $0x308] sm:$0xff]  ;;  %v296_v54 = vld [vmem:[%s4650_s17 + $0x300] sm:$0xff] }
 0x17c   : > { %v2124_v7 = vadd.f32 %v6927_v33, %v2123_v34  ;;  %4418 = vpow2.f32 %v4000_v61  ;;  %v2148_v9 = vsel %vm6948_vm15, %v2147_v29, %v2143_v59  ;;  %v2114_v48 = vand.u32 2147483647, %v6919_v30  ;;  %3740 = vst.msk [vmem:[%s5432_s23 + $0x1c0] sm:$0xff] %vm3683_vm4, %v3610_v8  ;;  %v2828_v29 = vld [vmem:[%s5383_s20 + $0x180] sm:$0xff]  ;;  %v3152_v39 = vpop.permute.xlu0 %3151 }
 0x17d   : > { %v4417_v6 = vpop.eup %4416  ;;  %4420 = vpow2.f32 %v3999_v51  ;;  %v2116_v14 = vand.u32 2147483648, %v6919_v30  ;;  %3730 = vst.msk [vmem:[%s5432_s23 + $0x170] sm:$0xff] %vm3683_vm4, %v3600_v11  ;;  %v4003_v17 = vmul.f32 -1.442695, %v292_v12  ;;  %v4002_v23 = vmul.f32 -1.442695, %v291_v1 }
 0x17e   : > { %3341 = vperm.xlu2 %4069, %v2148_v9   ;;  %v2128_v20 = vsel %vm6980_vm5, %v6927_v33, %v2124_v7  ;;  %v2106_v16 = vmul.f32 %v4417_v6, %v6919_v30  ;;  %4422 = vpow2.f32 %v3998_v35  ;;  %vm2110_vm7 = vweird.f32 %v6919_v30  ;;  %3729 = vst.msk [vmem:[%s5432_s23 + $0x168] sm:$0xff] %vm3683_vm4, %v3599_v50 }
 0x17f   : > { %v2133_v2 = vsel %vm6970_vm3, %v2132_v57, %v2128_v20  ;;  %vm2111_vm8 = vweird.f32 %v4417_v6  ;;  %v4001_v18 = vmul.f32 -1.442695, %v290_v10  ;;  %4424 = vpow2.f32 %v4003_v17 }
 0x180   : > { %v2107_v15 = vsub.f32 1.0, %v2106_v16  ;;  %4426 = vpow2.f32 %v4002_v23  ;;  %vm7018_vm9 = vmor %vm2110_vm7, %vm2111_vm8  ;;  %vm7022_vm10 = vcmp.eq.f32.partialorder %v2114_v48, 8.507059e+37  ;;  %v2117_v24 = vor.u32 1.1754944e-38, %v2116_v14 }
 0x181   : > { %4428 = vpow2.f32 %v4001_v18  ;;  %v3613_v3 = vmul.f32 %v3207_v0, %v2839_v43  ;;  %v3603_v22 = vmul.f32 %v3157_v45, %v2829_v44  ;;  %v4006_v26 = vmul.f32 -1.442695, %v295_v28 }
 0x182   : > { %3336 = vperm.xlu1 %4068, %v2133_v2   ;;  %v4419_v49 = vpop.eup %4418  ;;  %v2108_v27 = vmul.f32 %v4417_v6, %v2107_v15  ;;  %v4005_v52 = vmul.f32 -1.442695, %v294_v31  ;;  %v7041_v40 = vmul.f32 -1.442695, %v293_v32  ;;  %v7050_v60 = vmul.f32 -1.442695, %v298_v19 }
 0x183   : > { %v4421_v41 = vpop.eup %4420  ;;  %v7026_v33 = vadd.f32 1.0, %v4419_v49  ;;  %3743 = vst.msk [vmem:[%s5432_s23 + $0x1d8] sm:$0xff] %vm3683_vm4, %v3613_v3  ;;  %v3602_v51 = vmul.f32 %v3152_v39, %v2828_v29  ;;  %v7058_v4 = vmul.f32 -1.442695, %v297_v42  ;;  %v7060_v37 = vmul.f32 -1.442695, %v296_v54 }
 0x184   : > { %v2109_v46 = vadd.f32 %v4417_v6, %v2108_v27  ;;  %v7030_v53 = vadd.f32 1.0, %v4421_v41  ;;  %v4423_v25 = vpop.eup %4422  ;;  %3733 = vst.msk [vmem:[%s5432_s23 + $0x188] sm:$0xff] %vm3683_vm4, %v3603_v22 }
 0x185   : > { %4430 = vrcp.f32 %v7026_v33  ;;  %v4425_v56 = vpop.eup %4424  ;;  %v2189_v58 = vand.u32 2147483647, %v7026_v33  ;;  %v2191_v57 = vand.u32 2147483648, %v7026_v33  ;;  %v7053_v36 = vadd.f32 1.0, %v4423_v25  ;;  %3732 = vst.msk [vmem:[%s5432_s23 + $0x180] sm:$0xff] %vm3683_vm4, %v3602_v51 }
 0x186   : > { %v2113_v47 = vsel %vm7018_vm9, %v4417_v6, %v2109_v46  ;;  %4432 = vrcp.f32 %v7030_v53  ;;  %v4427_v21 = vpop.eup %4426  ;;  %v2174_v34 = vand.u32 2147483647, %v7030_v53  ;;  %v7055_v61 = vadd.f32 1.0, %v4425_v56 }
 0x187   : > { %v2118_v13 = vsel %vm7022_vm10, %v2117_v24, %v2113_v47  ;;  %v4429_v35 = vpop.eup %4428  ;;  %v2176_v62 = vand.u32 2147483648, %v7030_v53  ;;  %4434 = vpow2.f32 %v4006_v26  ;;  %vm2185_vm11 = vweird.f32 %v7026_v33  ;;  %v300_v26 = vld [vmem:[%s4650_s17 + $0x320] sm:$0xff] }
 0x188   : > { %3331 = vperm.xlu0 %4067, %v2118_v13   ;;  %vm2170_vm13 = vweird.f32 %v7030_v53  ;;  %4436 = vrcp.f32 %v7053_v36  ;;  %v7065_v63 = vadd.f32 1.0, %v4427_v21  ;;  %vm7069_vm14 = vcmp.eq.f32.partialorder %v2189_v58, 8.507059e+37  ;;  %v3172_v58 = vpop.permute.xlu1 %3171 }
 0x189   : > { %v2192_v7 = vor.u32 1.1754944e-38, %v2191_v57  ;;  %v2159_v8 = vand.u32 2147483647, %v7053_v36  ;;  %4438 = vrcp.f32 %v7055_v61  ;;  %vm7076_vm12 = vcmp.eq.f32.partialorder %v2174_v34, 8.507059e+37  ;;  %v3167_v57 = vpop.permute.xlu0 %3166 }
 0x18a   : > { %v2161_v6 = vand.u32 2147483648, %v7053_v36  ;;  %v2234_v9 = vand.u32 2147483647, %v7055_v61  ;;  %v2177_v50 = vor.u32 1.1754944e-38, %v2176_v62  ;;  %vm2155_vm0 = vweird.f32 %v7053_v36 }
 0x18b   : > { %v4431_v5 = vpop.eup %4430  ;;  %v2236_v10 = vand.u32 2147483648, %v7055_v61  ;;  %vm2230_vm15 = vweird.f32 %v7055_v61  ;;  %4440 = vrcp.f32 %v7065_v63  ;;  %vm7087_vm2 = vcmp.eq.f32.partialorder %v2159_v8, 8.507059e+37 }
 0x18c   : > { %v4433_v55 = vpop.eup %4432  ;;  %v2181_v12 = vmul.f32 %v4431_v5, %v7026_v33  ;;  %vm2186_vm6 = vweird.f32 %v4431_v5  ;;  %v7091_v2 = vadd.f32 1.0, %v4429_v35  ;;  %4442 = vpow2.f32 %v4005_v52  ;;  %v3222_v52 = vpop.permute.xlu2 %3221 }
 0x18d   : > { %v2166_v11 = vmul.f32 %v4433_v55, %v7030_v53  ;;  %v4435_v16 = vpop.eup %4434  ;;  %vm2171_vm1 = vweird.f32 %v4433_v55  ;;  %v2162_v15 = vor.u32 1.1754944e-38, %v2161_v6  ;;  %vm7093_vm3 = vcmp.eq.f32.partialorder %v2234_v9, 8.507059e+37  ;;  %vm7102_vm5 = vmor %vm2185_vm11, %vm2186_vm6 }
 0x18e   : > { %v2182_v20 = vsub.f32 1.0, %v2181_v12  ;;  %v4437_v17 = vpop.eup %4436  ;;  %v7097_v49 = vadd.f32 1.0, %v4435_v16  ;;  %v2237_v41 = vor.u32 1.1754944e-38, %v2236_v10  ;;  %v2219_v38 = vand.u32 2147483647, %v7065_v63  ;;  %vm7111_vm7 = vmor %vm2170_vm13, %vm2171_vm1  ;;  %v2842_v10 = vld [vmem:[%s5383_s20 + $0x1f0] sm:$0xff] }
 0x18f   : > { %v2167_v48 = vsub.f32 1.0, %v2166_v11  ;;  %v4439_v27 = vpop.eup %4438  ;;  %v2151_v32 = vmul.f32 %v4437_v17, %v7053_v36  ;;  %v2221_v43 = vand.u32 2147483648, %v7065_v63  ;;  %4444 = vrcp.f32 %v7091_v2  ;;  %v2832_v16 = vld [vmem:[%s5383_s20 + $0x1a0] sm:$0xff] }
 0x190   : > { %v2183_v23 = vmul.f32 %v4431_v5, %v2182_v20  ;;  %v2226_v33 = vmul.f32 %v4439_v27, %v7055_v61  ;;  %vm2156_vm8 = vweird.f32 %v4437_v17  ;;  %4446 = vpow2.f32 %v7041_v40 }
 0x191   : > { %v2168_v31 = vmul.f32 %v4433_v55, %v2167_v48  ;;  %v2152_v44 = vsub.f32 1.0, %v2151_v32  ;;  %v4441_v45 = vpop.eup %4440  ;;  %vm2231_vm9 = vweird.f32 %v4439_v27  ;;  %4448 = vrcp.f32 %v7097_v49  ;;  %vm7131_vm10 = vmor %vm2155_vm0, %vm2156_vm8 }
 0x192   : > { %v2184_v30 = vadd.f32 %v4431_v5, %v2183_v23  ;;  %v2227_v53 = vsub.f32 1.0, %v2226_v33  ;;  %v4443_v3 = vpop.eup %4442  ;;  %v2211_v29 = vmul.f32 %v4441_v45, %v7065_v63  ;;  %vm2215_vm11 = vweird.f32 %v7065_v63  ;;  %vm7140_vm13 = vmor %vm2230_vm15, %vm2231_vm9 }
 0x193   : > { %v2169_v0 = vadd.f32 %v4433_v55, %v2168_v31  ;;  %v2153_v25 = vmul.f32 %v4437_v17, %v2152_v44  ;;  %v2206_v47 = vand.u32 2147483648, %v7091_v2  ;;  %v2222_v36 = vor.u32 1.1754944e-38, %v2221_v43  ;;  %v2831_v31 = vld [vmem:[%s5383_s20 + $0x198] sm:$0xff] }
 0x194   : > { %v2188_v46 = vsel %vm7102_vm5, %v4431_v5, %v2184_v30  ;;  %v2228_v42 = vmul.f32 %v4439_v27, %v2227_v53  ;;  %v2212_v56 = vsub.f32 1.0, %v2211_v29  ;;  %vm2200_vm0 = vweird.f32 %v7091_v2  ;;  %v3237_v43 = vpop.permute.xlu2 %3236  ;;  %v3187_v53 = vpop.permute.xlu1 %3186 }
 0x195   : > { %v2193_v22 = vsel %vm7069_vm14, %v2192_v7, %v2188_v46  ;;  %v2173_v19 = vsel %vm7111_vm7, %v4433_v55, %v2169_v0  ;;  %v2154_v40 = vadd.f32 %v4437_v17, %v2153_v25  ;;  %vm2216_vm14 = vweird.f32 %v4441_v45  ;;  %v7148_v21 = vpop.eup %4444  ;;  %v2835_v46 = vld [vmem:[%s5383_s20 + $0x1b8] sm:$0xff] }
 0x196   : > { %3356 = vperm.xlu2 %4069, %v2193_v22   ;;  %v2178_v39 = vsel %vm7076_vm12, %v2177_v50, %v2173_v19  ;;  %vm7144_vm12 = vcmp.eq.f32.partialorder %v2219_v38, 8.507059e+37  ;;  %v2229_v34 = vadd.f32 %v4439_v27, %v2228_v42  ;;  %v7151_v51 = vadd.f32 1.0, %v4443_v3  ;;  %v4447_v61 = vpop.eup %4446  ;;  %vm7167_vm6 = vmor %vm2215_vm11, %vm2216_vm14  ;;  %v2834_v3 = vld [vmem:[%s5383_s20 + $0x1b0] sm:$0xff]  ;;  %v3182_v22 = vpop.permute.xlu0 %3181 }
 0x197   : > { %3351 = vperm.xlu1 %4068, %v2178_v39   ;;  %v2158_v35 = vsel %vm7131_vm10, %v4437_v17, %v2154_v40  ;;  %v2213_v62 = vmul.f32 %v4441_v45, %v2212_v56  ;;  %v2196_v5 = vmul.f32 %v7148_v21, %v7091_v2  ;;  %v2204_v59 = vand.u32 2147483647, %v7091_v2  ;;  %v7158_v7 = vpop.eup %4448  ;;  %v299_v40 = vld [vmem:[%s4650_s17 + $0x318] sm:$0xff] }
 0x198   : > { %v2163_v8 = vsel %vm7087_vm2, %v2162_v15, %v2158_v35  ;;  %v2233_v55 = vsel %vm7140_vm13, %v4439_v27, %v2229_v34  ;;  %vm2201_vm15 = vweird.f32 %v7148_v21  ;;  %v2207_v1 = vor.u32 1.1754944e-38, %v2206_v47  ;;  %v304_v34 = vld [vmem:[%s4650_s17 + $0x340] sm:$0xff] }
 0x199   : > { %3346 = vperm.xlu0 %4067, %v2163_v8   ;;  %v2238_v6 = vsel %vm7093_vm3, %v2237_v41, %v2233_v55  ;;  %v2214_v9 = vadd.f32 %v4441_v45, %v2213_v62  ;;  %v2197_v11 = vsub.f32 1.0, %v2196_v5  ;;  %v2271_v50 = vmul.f32 %v7158_v7, %v7097_v49  ;;  %vm7192_vm3 = vmor %vm2200_vm0, %vm2201_vm15  ;;  %v303_v8 = vld [vmem:[%s4650_s17 + $0x338] sm:$0xff] }
 0x19a   : > { %vm2275_vm1 = vweird.f32 %v7097_v49  ;;  %v2279_v63 = vand.u32 2147483647, %v7097_v49  ;;  %v2281_v20 = vand.u32 2147483648, %v7097_v49  ;;  %4450 = vrcp.f32 %v7151_v51 }
 0x19b   : > { %v2218_v48 = vsel %vm7167_vm6, %v4441_v45, %v2214_v9  ;;  %v2198_v14 = vmul.f32 %v7148_v21, %v2197_v11  ;;  %v2272_v17 = vsub.f32 1.0, %v2271_v50  ;;  %vm2276_vm2 = vweird.f32 %v7158_v7  ;;  %v2845_v45 = vld [vmem:[%s5383_s20 + $0x208] sm:$0xff] }
 0x19c   : > { %v2223_v23 = vsel %vm7144_vm12, %v2222_v36, %v2218_v48  ;;  %v2264_v18 = vand.u32 2147483647, %v7151_v51  ;;  %v7197_v27 = vadd.f32 1.0, %v4447_v61  ;;  %v3616_v28 = vmul.f32 %v3222_v52, %v2842_v10  ;;  %vm7208_vm7 = vmor %vm2275_vm1, %vm2276_vm2  ;;  %v302_v10 = vld [vmem:[%s4650_s17 + $0x330] sm:$0xff]  ;;  %v3252_v48 = vpop.permute.xlu2 %3251 }
 0x19d   : > { %v2199_v32 = vadd.f32 %v7148_v21, %v2198_v14  ;;  %vm7201_vm5 = vcmp.eq.f32.partialorder %v2204_v59, 8.507059e+37  ;;  %v2273_v2 = vmul.f32 %v7158_v7, %v2272_v17  ;;  %v3606_v38 = vmul.f32 %v3172_v58, %v2832_v16  ;;  %v2848_v16 = vld [vmem:[%s5383_s20 + $0x220] sm:$0xff] }
 0x19e   : > { %3371 = vperm.xlu2 %4069, %v2238_v6   ;;  %vm7212_vm8 = vcmp.eq.f32.partialorder %v2279_v63, 8.507059e+37  ;;  %v2282_v33 = vor.u32 1.1754944e-38, %v2281_v20  ;;  %vm2260_vm9 = vweird.f32 %v7151_v51  ;;  %4452 = vrcp.f32 %v7197_v27  ;;  %3746 = vst.msk [vmem:[%s5432_s23 + $0x1f0] sm:$0xff] %vm3683_vm4, %v3616_v28  ;;  %v3202_v28 = vpop.permute.xlu1 %3201 }
 0x19f   : > { %3366 = vperm.xlu1 %4068, %v2223_v23   ;;  %v2203_v49 = vsel %vm7192_vm3, %v7148_v21, %v2199_v32  ;;  %v2274_v0 = vadd.f32 %v7158_v7, %v2273_v2  ;;  %3736 = vst.msk [vmem:[%s5432_s23 + $0x1a0] sm:$0xff] %vm3683_vm4, %v3606_v38  ;;  %v3605_v44 = vmul.f32 %v3167_v57, %v2831_v31  ;;  %4454 = vpow2.f32 %v7050_v60  ;;  %v301_v60 = vld [vmem:[%s4650_s17 + $0x328] sm:$0xff]  ;;  %v3197_v32 = vpop.permute.xlu0 %3196 }
 0x1a0   : > { %v7230_v19 = vpop.eup %4450  ;;  %v2208_v25 = vsel %vm7201_vm5, %v2207_v1, %v2203_v49  ;;  %vm7234_vm10 = vcmp.eq.f32.partialorder %v2264_v18, 8.507059e+37  ;;  %v2266_v39 = vand.u32 2147483648, %v7151_v51  ;;  %4456 = vpow2.f32 %v7058_v4  ;;  %v2838_v18 = vld [vmem:[%s5383_s20 + $0x1d0] sm:$0xff]  ;;  %v2837_v31 = vld [vmem:[%s5383_s20 + $0x1c8] sm:$0xff] }
 0x1a1   : > { %3361 = vperm.xlu0 %4067, %v2208_v25   ;;  %v2278_v42 = vsel %vm7208_vm7, %v7158_v7, %v2274_v0  ;;  %v2256_v47 = vmul.f32 %v7230_v19, %v7151_v51  ;;  %v2249_v52 = vand.u32 2147483647, %v7197_v27  ;;  %3735 = vst.msk [vmem:[%s5432_s23 + $0x198] sm:$0xff] %vm3683_vm4, %v3605_v44  ;;  %4458 = vpow2.f32 %v7060_v37 }
 0x1a2   : > { %v2283_v4 = vsel %vm7212_vm8, %v2282_v33, %v2278_v42  ;;  %v3619_v54 = vmul.f32 %v3237_v43, %v2845_v45  ;;  %v3609_v56 = vmul.f32 %v3187_v53, %v2835_v46  ;;  %v3608_v13 = vmul.f32 %v3182_v22, %v2834_v3 }
 0x1a3   : > { %v2257_v58 = vsub.f32 1.0, %v2256_v47  ;;  %vm2261_vm11 = vweird.f32 %v7230_v19  ;;  %v4012_v57 = vmul.f32 -1.442695, %v301_v60  ;;  %v4011_v21 = vmul.f32 -1.442695, %v300_v26 }
 0x1a4   : > { %v7256_v36 = vpop.eup %4452  ;;  %v2267_v37 = vor.u32 1.1754944e-38, %v2266_v39  ;;  %vm2245_vm13 = vweird.f32 %v7197_v27  ;;  %v2251_v61 = vand.u32 2147483648, %v7197_v27  ;;  %3749 = vst.msk [vmem:[%s5432_s23 + $0x208] sm:$0xff] %vm3683_vm4, %v3619_v54  ;;  %v4010_v35 = vmul.f32 -1.442695, %v299_v40  ;;  %vm7276_vm12 = vmor %vm2260_vm9, %vm2261_vm11 }
 0x1a5   : > { %v4455_v62 = vpop.eup %4454  ;;  %v2258_v5 = vmul.f32 %v7230_v19, %v2257_v58  ;;  %v2241_v59 = vmul.f32 %v7256_v36, %v7197_v27  ;;  %vm7265_vm14 = vcmp.eq.f32.partialorder %v2249_v52, 8.507059e+37  ;;  %3739 = vst.msk [vmem:[%s5432_s23 + $0x1b8] sm:$0xff] %vm3683_vm4, %v3609_v56  ;;  %4460 = vpow2.f32 %v4012_v57  ;;  %v307_v58 = vld [vmem:[%s4650_s17 + $0x358] sm:$0xff] }
 0x1a6   : > { %3386 = vperm.xlu2 %4069, %v2283_v4   ;;  %v4457_v55 = vpop.eup %4456  ;;  %vm2246_vm0 = vweird.f32 %v7256_v36  ;;  %v7281_v1 = vadd.f32 1.0, %v4455_v62  ;;  %3738 = vst.msk [vmem:[%s5432_s23 + $0x1b0] sm:$0xff] %vm3683_vm4, %v3608_v13  ;;  %4462 = vpow2.f32 %v4011_v21  ;;  %v7285_v6 = vmul.f32 -1.442695, %v304_v34 }
 0x1a7   : > { %v4459_v9 = vpop.eup %4458  ;;  %v2259_v11 = vadd.f32 %v7230_v19, %v2258_v5  ;;  %v2242_v50 = vsub.f32 1.0, %v2241_v59  ;;  %v7288_v51 = vadd.f32 1.0, %v4457_v55  ;;  %4464 = vpow2.f32 %v4010_v35  ;;  %vm7310_vm6 = vmor %vm2245_vm13, %vm2246_vm0  ;;  %v309_v5 = vld [vmem:[%s4650_s17 + $0x368] sm:$0xff] }
 0x1a8   : > { %v2252_v63 = vor.u32 1.1754944e-38, %v2251_v61  ;;  %4466 = vrcp.f32 %v7281_v1  ;;  %v2324_v20 = vand.u32 2147483647, %v7281_v1  ;;  %v7294_v14 = vmul.f32 -1.442695, %v303_v8 }
 0x1a9   : > { %v2263_v17 = vsel %vm7276_vm12, %v7230_v19, %v2259_v11  ;;  %v2243_v23 = vmul.f32 %v7256_v36, %v2242_v50  ;;  %v2326_v15 = vand.u32 2147483648, %v7281_v1  ;;  %4468 = vrcp.f32 %v7288_v51 }
 0x1aa   : > { %v2268_v41 = vsel %vm7234_vm10, %v2267_v37, %v2263_v17  ;;  %vm2320_vm15 = vweird.f32 %v7281_v1  ;;  %v2309_v38 = vand.u32 2147483647, %v7288_v51  ;;  %v7316_v30 = vmul.f32 -1.442695, %v302_v10 }
 0x1ab   : > { %v4461_v24 = vpop.eup %4460  ;;  %3381 = vperm.xlu1 %4068, %v2268_v41   ;;  %v2244_v33 = vadd.f32 %v7256_v36, %v2243_v23  ;;  %v2311_v43 = vand.u32 2147483648, %v7288_v51  ;;  %v7320_v49 = vadd.f32 1.0, %v4459_v9  ;;  %v3622_v27 = vmul.f32 %v3252_v48, %v2848_v16 }
 0x1ac   : > { %v4463_v0 = vpop.eup %4462  ;;  %vm2305_vm1 = vweird.f32 %v7288_v51  ;;  %v7323_v44 = vadd.f32 1.0, %v4461_v24  ;;  %v3612_v45 = vmul.f32 %v3202_v28, %v2838_v18  ;;  %v3611_v46 = vmul.f32 %v3197_v32, %v2837_v31 }
 0x1ad   : > { %v4465_v53 = vpop.eup %4464  ;;  %v2248_v3 = vsel %vm7310_vm6, %v7256_v36, %v2244_v33  ;;  %vm7328_vm2 = vcmp.eq.f32.partialorder %v2324_v20, 8.507059e+37  ;;  %v2327_v19 = vor.u32 1.1754944e-38, %v2326_v15  ;;  %4470 = vrcp.f32 %v7320_v49  ;;  %3752 = vst.msk [vmem:[%s5432_s23 + $0x220] sm:$0xff] %vm3683_vm4, %v3622_v27  ;;  %v3217_v27 = vpop.permute.xlu1 %3216 }
 0x1ae   : > { %v4467_v25 = vpop.eup %4466  ;;  %v2253_v29 = vsel %vm7265_vm14, %v2252_v63, %v2248_v3  ;;  %vm7337_vm3 = vcmp.eq.f32.partialorder %v2309_v38, 8.507059e+37  ;;  %v2294_v60 = vand.u32 2147483647, %v7320_v49  ;;  %4472 = vrcp.f32 %v7323_v44  ;;  %3742 = vst.msk [vmem:[%s5432_s23 + $0x1d0] sm:$0xff] %vm3683_vm4, %v3612_v45 }
 0x1af   : > { %v4469_v26 = vpop.eup %4468  ;;  %3376 = vperm.xlu0 %4067, %v2253_v29   ;;  %v2316_v42 = vmul.f32 %v4467_v25, %v7281_v1  ;;  %v2312_v47 = vor.u32 1.1754944e-38, %v2311_v43  ;;  %v2296_v52 = vand.u32 2147483648, %v7320_v49  ;;  %v2369_v40 = vand.u32 2147483647, %v7323_v44  ;;  %3741 = vst.msk [vmem:[%s5432_s23 + $0x1c8] sm:$0xff] %vm3683_vm4, %v3611_v46 }
 0x1b0   : > { %vm2321_vm5 = vweird.f32 %v4467_v25  ;;  %v2301_v4 = vmul.f32 %v4469_v26, %v7288_v51  ;;  %vm2290_vm7 = vweird.f32 %v7320_v49  ;;  %vm2365_vm8 = vweird.f32 %v7323_v44 }
 0x1b1   : > { %v2317_v54 = vsub.f32 1.0, %v2316_v42  ;;  %vm2306_vm9 = vweird.f32 %v4469_v26  ;;  %v2371_v56 = vand.u32 2147483648, %v7323_v44  ;;  %v7354_v13 = vadd.f32 1.0, %v4463_v0  ;;  %vm7372_vm13 = vmor %vm2320_vm15, %vm2321_vm5  ;;  %v306_v42 = vld [vmem:[%s4650_s17 + $0x350] sm:$0xff] }
 0x1b2   : > { %v2302_v57 = vsub.f32 1.0, %v2301_v4  ;;  %vm7357_vm10 = vcmp.eq.f32.partialorder %v2294_v60, 8.507059e+37  ;;  %v7361_v34 = vadd.f32 1.0, %v4465_v53  ;;  %4474 = vpow2.f32 %v7285_v6  ;;  %vm7382_vm14 = vmor %vm2305_vm1, %vm2306_vm9  ;;  %v305_v4 = vld [vmem:[%s4650_s17 + $0x348] sm:$0xff]  ;;  %v2844_v6 = vld [vmem:[%s5383_s20 + $0x200] sm:$0xff] }
 0x1b3   : > { %v4471_v36 = vpop.eup %4470  ;;  %v2318_v37 = vmul.f32 %v4467_v25, %v2317_v54  ;;  %v2297_v61 = vor.u32 1.1754944e-38, %v2296_v52  ;;  %vm7364_vm11 = vcmp.eq.f32.partialorder %v2369_v40, 8.507059e+37  ;;  %4476 = vrcp.f32 %v7354_v13  ;;  %v310_v54 = vld [vmem:[%s4650_s17 + $0x370] sm:$0xff] }
 0x1b4   : > { %v4473_v62 = vpop.eup %4472  ;;  %v2303_v59 = vmul.f32 %v4469_v26, %v2302_v57  ;;  %v2286_v7 = vmul.f32 %v4471_v36, %v7320_v49  ;;  %v2372_v8 = vor.u32 1.1754944e-38, %v2371_v56  ;;  %v7377_v55 = vmul.f32 -1.442695, %v307_v58  ;;  %v3267_v49 = vpop.permute.xlu2 %3266 }
 0x1b5   : > { %v2319_v12 = vadd.f32 %v4467_v25, %v2318_v37  ;;  %vm2291_vm12 = vweird.f32 %v4471_v36  ;;  %v2361_v1 = vmul.f32 %v4473_v62, %v7323_v44  ;;  %v2354_v9 = vand.u32 2147483647, %v7354_v13  ;;  %v3212_v44 = vpop.permute.xlu0 %3211 }
 0x1b6   : > { %v2304_v11 = vadd.f32 %v4469_v26, %v2303_v59  ;;  %v2287_v50 = vsub.f32 1.0, %v2286_v7  ;;  %v2356_v10 = vand.u32 2147483648, %v7354_v13  ;;  %4478 = vrcp.f32 %v7361_v34  ;;  %vm7405_vm15 = vmor %vm2290_vm7, %vm2291_vm12 }
 0x1b7   : > { %v2323_v63 = vsel %vm7372_vm13, %v4467_v25, %v2319_v12  ;;  %v2362_v20 = vsub.f32 1.0, %v2361_v1  ;;  %vm2366_vm0 = vweird.f32 %v4473_v62  ;;  %vm2350_vm6 = vweird.f32 %v7354_v13  ;;  %v2841_v25 = vld [vmem:[%s5383_s20 + $0x1e8] sm:$0xff]  ;;  %v2843_v1 = vld [vmem:[%s5383_s20 + $0x1f8] sm:$0xff] }
 0x1b8   : > { %v4475_v51 = vpop.eup %4474  ;;  %v2328_v16 = vsel %vm7328_vm2, %v2327_v19, %v2323_v63  ;;  %v2308_v48 = vsel %vm7382_vm14, %v4469_v26, %v2304_v11  ;;  %v2288_v17 = vmul.f32 %v4471_v36, %v2287_v50  ;;  %v2339_v23 = vand.u32 2147483647, %v7361_v34  ;;  %vm7415_vm1 = vmor %vm2365_vm8, %vm2366_vm0  ;;  %v2851_v19 = vld [vmem:[%s5383_s20 + $0x238] sm:$0xff]  ;;  %v2840_v26 = vld [vmem:[%s5383_s20 + $0x1e0] sm:$0xff] }
 0x1b9   : > { %v7398_v15 = vpop.eup %4476  ;;  %3401 = vperm.xlu2 %4069, %v2328_v16   ;;  %v2313_v18 = vsel %vm7337_vm3, %v2312_v47, %v2308_v48  ;;  %v2363_v31 = vmul.f32 %v4473_v62, %v2362_v20  ;;  %v2341_v32 = vand.u32 2147483648, %v7361_v34  ;;  %v7410_v41 = vadd.f32 1.0, %v4475_v51 }
 0x1ba   : > { %3396 = vperm.xlu1 %4068, %v2313_v18   ;;  %v2289_v2 = vadd.f32 %v4471_v36, %v2288_v17  ;;  %v2346_v24 = vmul.f32 %v7398_v15, %v7354_v13  ;;  %vm7421_vm2 = vcmp.eq.f32.partialorder %v2354_v9, 8.507059e+37  ;;  %v2357_v43 = vor.u32 1.1754944e-38, %v2356_v10 }
 0x1bb   : > { %v2364_v0 = vadd.f32 %v4473_v62, %v2363_v31  ;;  %vm2351_vm3 = vweird.f32 %v7398_v15  ;;  %vm2335_vm5 = vweird.f32 %v7361_v34  ;;  %4480 = vrcp.f32 %v7410_v41  ;;  %v308_v31 = vld [vmem:[%s4650_s17 + $0x360] sm:$0xff] }
 0x1bc   : > { %v7428_v45 = vpop.eup %4478  ;;  %v2293_v46 = vsel %vm7405_vm15, %v4471_v36, %v2289_v2  ;;  %v2347_v53 = vsub.f32 1.0, %v2346_v24  ;;  %vm7432_vm7 = vcmp.eq.f32.partialorder %v2339_v23, 8.507059e+37  ;;  %v2342_v22 = vor.u32 1.1754944e-38, %v2341_v32  ;;  %v3282_v12 = vpop.permute.xlu2 %3281  ;;  %v313_v32 = vld [vmem:[%s4650_s17 + $0x388] sm:$0xff] }
 0x1bd   : > { %v2298_v29 = vsel %vm7357_vm10, %v2297_v61, %v2293_v46  ;;  %v2368_v39 = vsel %vm7415_vm1, %v4473_v62, %v2364_v0  ;;  %v2331_v60 = vmul.f32 %v7428_v45, %v7361_v34  ;;  %vm2410_vm8 = vweird.f32 %v7410_v41  ;;  %vm7458_vm10 = vmor %vm2350_vm6, %vm2351_vm3  ;;  %v3227_v10 = vpop.permute.xlu0 %3226  ;;  %v311_v0 = vld [vmem:[%s4650_s17 + $0x378] sm:$0xff] }
 0x1be   : > { %3391 = vperm.xlu0 %4067, %v2298_v29   ;;  %v2373_v47 = vsel %vm7364_vm11, %v2372_v8, %v2368_v39  ;;  %v2348_v52 = vmul.f32 %v7398_v15, %v2347_v53  ;;  %vm2336_vm9 = vweird.f32 %v7428_v45  ;;  %v2414_v40 = vand.u32 2147483647, %v7410_v41  ;;  %v2854_v8 = vld [vmem:[%s5383_s20 + $0x250] sm:$0xff] }
 0x1bf   : > { %v2332_v58 = vsub.f32 1.0, %v2331_v60  ;;  %4482 = vpow2.f32 %v7294_v14  ;;  %v3625_v57 = vmul.f32 %v3267_v49, %v2851_v19  ;;  %v3615_v21 = vmul.f32 %v3217_v27, %v2841_v25  ;;  %vm7472_vm11 = vmor %vm2335_vm5, %vm2336_vm9 }
 0x1c0   : > { %v2349_v36 = vadd.f32 %v7398_v15, %v2348_v52  ;;  %4484 = vpow2.f32 %v7316_v30  ;;  %v3614_v37 = vmul.f32 %v3212_v44, %v2840_v26  ;;  %v4017_v61 = vmul.f32 -1.442695, %v306_v42  ;;  %v2846_v52 = vld [vmem:[%s5383_s20 + $0x210] sm:$0xff] }
 0x1c1   : > { %v7465_v35 = vpop.eup %4480  ;;  %3416 = vperm.xlu2 %4069, %v2373_v47   ;;  %v2333_v13 = vmul.f32 %v7428_v45, %v2332_v58  ;;  %3755 = vst.msk [vmem:[%s5432_s23 + $0x238] sm:$0xff] %vm3683_vm4, %v3625_v57  ;;  %4486 = vpow2.f32 %v7377_v55  ;;  %v4016_v30 = vmul.f32 -1.442695, %v305_v4  ;;  %v4021_v62 = vmul.f32 -1.442695, %v310_v54  ;;  %v3232_v55 = vpop.permute.xlu1 %3231 }
 0x1c2   : > { %v2353_v59 = vsel %vm7458_vm10, %v7398_v15, %v2349_v36  ;;  %v2406_v34 = vmul.f32 %v7465_v35, %v7410_v41  ;;  %v2416_v7 = vand.u32 2147483648, %v7410_v41  ;;  %3745 = vst.msk [vmem:[%s5432_s23 + $0x1e8] sm:$0xff] %vm3683_vm4, %v3615_v21  ;;  %4488 = vpow2.f32 %v4017_v61 }
 0x1c3   : > { %v2358_v9 = vsel %vm7421_vm2, %v2357_v43, %v2353_v59  ;;  %v2334_v11 = vadd.f32 %v7428_v45, %v2333_v13  ;;  %vm2411_vm13 = vweird.f32 %v7465_v35  ;;  %3744 = vst.msk [vmem:[%s5432_s23 + $0x1e0] sm:$0xff] %vm3683_vm4, %v3614_v37  ;;  %v3628_v50 = vmul.f32 %v3282_v12, %v2854_v8  ;;  %v312_v43 = vld [vmem:[%s4650_s17 + $0x380] sm:$0xff] }
 0x1c4   : > { %3411 = vperm.xlu1 %4068, %v2358_v9   ;;  %v2407_v63 = vsub.f32 1.0, %v2406_v34  ;;  %4490 = vpow2.f32 %v4016_v30  ;;  %v3618_v20 = vmul.f32 %v3232_v55, %v2844_v6  ;;  %v3617_v51 = vmul.f32 %v3227_v10, %v2843_v1  ;;  %vm7515_vm14 = vmor %vm2410_vm8, %vm2411_vm13  ;;  %v3297_v9 = vpop.permute.xlu2 %3296 }
 0x1c5   : > { %v4483_v16 = vpop.eup %4482  ;;  %v2338_v48 = vsel %vm7472_vm11, %v7428_v45, %v2334_v11  ;;  %3758 = vst.msk [vmem:[%s5432_s23 + $0x250] sm:$0xff] %vm3683_vm4, %v3628_v50  ;;  %4492 = vpow2.f32 %v4021_v62  ;;  %v4020_v17 = vmul.f32 -1.442695, %v309_v5  ;;  %v2417_v24 = vor.u32 1.1754944e-38, %v2416_v7 }
 0x1c6   : > { %v4485_v23 = vpop.eup %4484  ;;  %v2343_v15 = vsel %vm7432_vm7, %v2342_v22, %v2338_v48  ;;  %v2408_v18 = vmul.f32 %v7465_v35, %v2407_v63  ;;  %v7505_v28 = vadd.f32 1.0, %v4483_v16  ;;  %3748 = vst.msk [vmem:[%s5432_s23 + $0x200] sm:$0xff] %vm3683_vm4, %v3618_v20  ;;  %vm2415_vm12 = vcmp.eq.f32.partialorder %v2414_v40, 8.507059e+37 }
 0x1c7   : > { %v4487_v2 = vpop.eup %4486  ;;  %3406 = vperm.xlu0 %4067, %v2343_v15   ;;  %v7519_v33 = vadd.f32 1.0, %v4485_v23  ;;  %3747 = vst.msk [vmem:[%s5432_s23 + $0x1f8] sm:$0xff] %vm3683_vm4, %v3617_v51  ;;  %4494 = vpow2.f32 %v4020_v17  ;;  %v7531_v45 = vmul.f32 -1.442695, %v308_v31  ;;  %v7533_v46 = vmul.f32 -1.442695, %v313_v32  ;;  %v3242_v31 = vpop.permute.xlu0 %3241 }
 0x1c8   : > { %v4489_v49 = vpop.eup %4488  ;;  %v2409_v27 = vadd.f32 %v7465_v35, %v2408_v18  ;;  %4496 = vrcp.f32 %v7505_v28  ;;  %v2399_v44 = vand.u32 2147483647, %v7505_v28  ;;  %v2401_v22 = vand.u32 2147483648, %v7505_v28 }
 0x1c9   : > { %4498 = vrcp.f32 %v7519_v33  ;;  %v7539_v41 = vadd.f32 1.0, %v4487_v2  ;;  %v7541_v19 = vmul.f32 -1.442695, %v312_v43  ;;  %v2384_v39 = vand.u32 2147483647, %v7519_v33  ;;  %v3247_v17 = vpop.permute.xlu1 %3246 }
 0x1ca   : > { %v4491_v53 = vpop.eup %4490  ;;  %v2413_v3 = vsel %vm7515_vm14, %v7465_v35, %v2409_v27  ;;  %v2386_v60 = vand.u32 2147483648, %v7519_v33  ;;  %v7545_v26 = vadd.f32 1.0, %v4489_v49  ;;  %vm2395_vm0 = vweird.f32 %v7505_v28 }
 0x1cb   : > { %v4493_v25 = vpop.eup %4492  ;;  %v2418_v29 = vsel %vm2415_vm12, %v2417_v24, %v2413_v3  ;;  %vm2380_vm6 = vweird.f32 %v7519_v33  ;;  %4500 = vrcp.f32 %v7539_v41  ;;  %v7550_v42 = vmul.f32 -1.442695, %v311_v0 }
 0x1cc   : > { %3431 = vperm.xlu2 %4069, %v2418_v29   ;;  %vm7552_vm15 = vcmp.eq.f32.partialorder %v2399_v44, 8.507059e+37  ;;  %v2459_v40 = vand.u32 2147483647, %v7539_v41  ;;  %v2461_v4 = vand.u32 2147483648, %v7539_v41  ;;  %4502 = vrcp.f32 %v7545_v26 }
 0x1cd   : > { %v4495_v47 = vpop.eup %4494  ;;  %v2402_v56 = vor.u32 1.1754944e-38, %v2401_v22  ;;  %v2446_v58 = vand.u32 2147483648, %v7545_v26  ;;  %v7560_v57 = vadd.f32 1.0, %v4491_v53  ;;  %v7562_v21 = vadd.f32 1.0, %v4493_v25 }
 0x1ce   : > { %v4497_v54 = vpop.eup %4496  ;;  %vm7565_vm1 = vcmp.eq.f32.partialorder %v2384_v39, 8.507059e+37  ;;  %v2387_v35 = vor.u32 1.1754944e-38, %v2386_v60  ;;  %v2444_v13 = vand.u32 2147483647, %v7545_v26  ;;  %vm2455_vm2 = vweird.f32 %v7539_v41 }
 0x1cf   : > { %v4499_v36 = vpop.eup %4498  ;;  %v2391_v37 = vmul.f32 %v4497_v54, %v7505_v28  ;;  %vm2440_vm3 = vweird.f32 %v7545_v26  ;;  %4504 = vrcp.f32 %v7560_v57  ;;  %vm2396_vm5 = vweird.f32 %v4497_v54  ;;  %v3257_v11 = vpop.permute.xlu0 %3256 }
 0x1d0   : > { %v2376_v14 = vmul.f32 %v4499_v36, %v7519_v33  ;;  %vm7574_vm7 = vcmp.eq.f32.partialorder %v2459_v40, 8.507059e+37  ;;  %v2462_v5 = vor.u32 1.1754944e-38, %v2461_v4  ;;  %vm2381_vm8 = vweird.f32 %v4499_v36  ;;  %vm7593_vm11 = vmor %vm2395_vm0, %vm2396_vm5 }
 0x1d1   : > { %v2392_v30 = vsub.f32 1.0, %v2391_v37  ;;  %v4501_v59 = vpop.eup %4500  ;;  %v7578_v7 = vor.u32 1.1754944e-38, %v2446_v58  ;;  %4506 = vrcp.f32 %v7562_v21  ;;  %vm7584_vm9 = vcmp.eq.f32.partialorder %v2444_v13, 8.507059e+37  ;;  %vm7604_vm13 = vmor %vm2380_vm6, %vm2381_vm8 }
 0x1d2   : > { %v2377_v34 = vsub.f32 1.0, %v2376_v14  ;;  %v7581_v8 = vpop.eup %4502  ;;  %v2451_v6 = vmul.f32 %v4501_v59, %v7539_v41  ;;  %vm2425_vm10 = vweird.f32 %v7560_v57  ;;  %v2429_v1 = vand.u32 2147483647, %v7560_v57  ;;  %v2857_v41 = vld [vmem:[%s5383_s20 + $0x268] sm:$0xff]  ;;  %v2860_v14 = vld [vmem:[%s5383_s20 + $0x280] sm:$0xff] }
 0x1d3   : > { %v2393_v12 = vmul.f32 %v4497_v54, %v2392_v30  ;;  %v2436_v10 = vmul.f32 %v7581_v8, %v7545_v26  ;;  %v2431_v63 = vand.u32 2147483648, %v7560_v57  ;;  %v2504_v20 = vand.u32 2147483647, %v7562_v21  ;;  %v3312_v30 = vpop.permute.xlu2 %3311 }
 0x1d4   : > { %v2378_v50 = vmul.f32 %v4499_v36, %v2377_v34  ;;  %v2452_v48 = vsub.f32 1.0, %v2451_v6  ;;  %vm2456_vm14 = vweird.f32 %v4501_v59  ;;  %vm2441_vm12 = vweird.f32 %v7581_v8  ;;  %v3262_v6 = vpop.permute.xlu1 %3261 }
 0x1d5   : > { %v2394_v51 = vadd.f32 %v4497_v54, %v2393_v12  ;;  %v4505_v23 = vpop.eup %4504  ;;  %v2437_v18 = vsub.f32 1.0, %v2436_v10  ;;  %v7609_v28 = vadd.f32 1.0, %v4495_v47  ;;  %4508 = vpow2.f32 %v7531_v45  ;;  %vm7625_vm0 = vmor %vm2455_vm2, %vm2456_vm14  ;;  %v2847_v47 = vld [vmem:[%s5383_s20 + $0x218] sm:$0xff]  ;;  %v2850_v12 = vld [vmem:[%s5383_s20 + $0x230] sm:$0xff] }
 0x1d6   : > { %v2379_v15 = vadd.f32 %v4499_v36, %v2378_v50  ;;  %v2453_v2 = vmul.f32 %v4501_v59, %v2452_v48  ;;  %v2421_v38 = vmul.f32 %v4505_v23, %v7560_v57  ;;  %v2506_v24 = vand.u32 2147483648, %v7562_v21 }
 0x1d7   : > { %v2398_v32 = vsel %vm7593_vm11, %v4497_v54, %v2394_v51  ;;  %v7616_v33 = vpop.eup %4506  ;;  %v2438_v0 = vmul.f32 %v7581_v8, %v2437_v18  ;;  %vm2426_vm6 = vweird.f32 %v4505_v23  ;;  %vm7644_vm2 = vcmp.eq.f32.partialorder %v2429_v1, 8.507059e+37  ;;  %v315_v51 = vld [vmem:[%s4650_s17 + $0x398] sm:$0xff]  ;;  %v314_v18 = vld [vmem:[%s4650_s17 + $0x390] sm:$0xff] }
 0x1d8   : > { %v2403_v43 = vsel %vm7552_vm15, %v2402_v56, %v2398_v32  ;;  %v2383_v49 = vsel %vm7604_vm13, %v4499_v36, %v2379_v15  ;;  %v2454_v45 = vadd.f32 %v4501_v59, %v2453_v2  ;;  %vm7636_vm15 = vmor %vm2440_vm3, %vm2441_vm12  ;;  %v2422_v3 = vsub.f32 1.0, %v2421_v38  ;;  %v2863_v56 = vld [vmem:[%s5383_s20 + $0x298] sm:$0xff] }
 0x1d9   : > { %3426 = vperm.xlu1 %4068, %v2403_v43   ;;  %v2388_v44 = vsel %vm7565_vm1, %v2387_v35, %v2383_v49  ;;  %v2496_v22 = vmul.f32 %v7616_v33, %v7562_v21  ;;  %v2439_v25 = vadd.f32 %v7581_v8, %v2438_v0  ;;  %vm2500_vm1 = vweird.f32 %v7562_v21  ;;  %vm7663_vm5 = vmor %vm2425_vm10, %vm2426_vm6  ;;  %v319_v43 = vld [vmem:[%s4650_s17 + $0x3b8] sm:$0xff] }
 0x1da   : > { %3421 = vperm.xlu0 %4067, %v2388_v44   ;;  %4510 = vrcp.f32 %v7609_v28  ;;  %v2458_v39 = vsel %vm7625_vm0, %v4501_v59, %v2454_v45  ;;  %v2423_v60 = vmul.f32 %v4505_v23, %v2422_v3  ;;  %vm2501_vm3 = vweird.f32 %v7616_v33 }
 0x1db   : > { %v2497_v26 = vsub.f32 1.0, %v2496_v22  ;;  %v4509_v40 = vpop.eup %4508  ;;  %v2463_v4 = vsel %vm7574_vm7, %v2462_v5, %v2458_v39  ;;  %v2443_v54 = vsel %vm7636_vm15, %v7581_v8, %v2439_v25  ;;  %v2432_v58 = vor.u32 1.1754944e-38, %v2431_v63  ;;  %vm7680_vm7 = vmor %vm2500_vm1, %vm2501_vm3  ;;  %v317_v25 = vld [vmem:[%s4650_s17 + $0x3a8] sm:$0xff] }
 0x1dc   : > { %v3631_v36 = vmul.f32 %v3297_v9, %v2857_v41  ;;  %3446 = vperm.xlu2 %4069, %v2463_v4   ;;  %v2424_v37 = vadd.f32 %v4505_v23, %v2423_v60  ;;  %vm7668_vm8 = vcmp.eq.f32.partialorder %v2504_v20, 8.507059e+37  ;;  %v2507_v13 = vor.u32 1.1754944e-38, %v2506_v24  ;;  %v2849_v9 = vld [vmem:[%s5383_s20 + $0x228] sm:$0xff]  ;;  %v316_v20 = vld [vmem:[%s4650_s17 + $0x3a0] sm:$0xff]  ;;  %v318_v41 = vld [vmem:[%s4650_s17 + $0x3b0] sm:$0xff] }
 0x1dd   : > { %v2498_v61 = vmul.f32 %v7616_v33, %v2497_v26  ;;  %v2448_v57 = vsel %vm7584_vm9, %v7578_v7, %v2443_v54  ;;  %v7684_v5 = vadd.f32 1.0, %v4509_v40  ;;  %v3621_v59 = vmul.f32 %v3247_v17, %v2847_v47 }
 0x1de   : > { %3761 = vst.msk [vmem:[%s5432_s23 + $0x268] sm:$0xff] %vm3683_vm4, %v3631_v36  ;;  %v3620_v34 = vmul.f32 %v3242_v31, %v2846_v52  ;;  %v2428_v8 = vsel %vm7663_vm5, %v4505_v23, %v2424_v37  ;;  %4512 = vpow2.f32 %v7533_v46  ;;  %v3634_v21 = vmul.f32 %v3312_v30, %v2860_v14 }
 0x1df   : > { %v2499_v7 = vadd.f32 %v7616_v33, %v2498_v61  ;;  %v2433_v1 = vsel %vm7644_vm2, %v2432_v58, %v2428_v8  ;;  %vm2485_vm9 = vweird.f32 %v7609_v28  ;;  %4514 = vrcp.f32 %v7684_v5  ;;  %3751 = vst.msk [vmem:[%s5432_s23 + $0x218] sm:$0xff] %vm3683_vm4, %v3621_v59  ;;  %v3327_v58 = vpop.permute.xlu2 %3326 }
 0x1e0   : > { %v4511_v55 = vpop.eup %4510  ;;  %v2489_v10 = vand.u32 2147483647, %v7609_v28  ;;  %v2491_v63 = vand.u32 2147483648, %v7609_v28  ;;  %3750 = vst.msk [vmem:[%s5432_s23 + $0x210] sm:$0xff] %vm3683_vm4, %v3620_v34  ;;  %v2474_v48 = vand.u32 2147483647, %v7684_v5  ;;  %4516 = vpow2.f32 %v7541_v19 }
 0x1e1   : > { %3441 = vperm.xlu1 %4068, %v2448_v57   ;;  %v2503_v46 = vsel %vm7680_vm7, %v7616_v33, %v2499_v7  ;;  %v2481_v50 = vmul.f32 %v4511_v55, %v7609_v28  ;;  %3764 = vst.msk [vmem:[%s5432_s23 + $0x280] sm:$0xff] %vm3683_vm4, %v3634_v21  ;;  %v3624_v17 = vmul.f32 %v3262_v6, %v2850_v12  ;;  %vm2486_vm10 = vweird.f32 %v4511_v55  ;;  %v3277_v6 = vpop.permute.xlu1 %3276 }
 0x1e2   : > { %3436 = vperm.xlu0 %4067, %v2433_v1   ;;  %v2508_v16 = vsel %vm7668_vm8, %v2507_v13, %v2503_v46  ;;  %4518 = vpow2.f32 %v7550_v42  ;;  %v3623_v15 = vmul.f32 %v3257_v11, %v2849_v9  ;;  %v2476_v31 = vand.u32 2147483648, %v7684_v5  ;;  %vm7731_vm13 = vmor %vm2485_vm9, %vm2486_vm10  ;;  %v3272_v11 = vpop.permute.xlu0 %3271 }
 0x1e3   : > { %v2482_v23 = vsub.f32 1.0, %v2481_v50  ;;  %3754 = vst.msk [vmem:[%s5432_s23 + $0x230] sm:$0xff] %vm3683_vm4, %v3624_v17  ;;  %v4027_v32 = vmul.f32 -1.442695, %v316_v20  ;;  %v4026_v2 = vmul.f32 -1.442695, %v315_v51  ;;  %vm2470_vm14 = vweird.f32 %v7684_v5 }
 0x1e4   : > { %v4513_v38 = vpop.eup %4512  ;;  %3461 = vperm.xlu2 %4069, %v2508_v16   ;;  %vm7721_vm11 = vcmp.eq.f32.partialorder %v2489_v10, 8.507059e+37  ;;  %v2492_v33 = vor.u32 1.1754944e-38, %v2491_v63  ;;  %3753 = vst.msk [vmem:[%s5432_s23 + $0x228] sm:$0xff] %vm3683_vm4, %v3623_v15  ;;  %v4025_v0 = vmul.f32 -1.442695, %v314_v18  ;;  %vm7739_vm12 = vcmp.eq.f32.partialorder %v2474_v48, 8.507059e+37 }
 0x1e5   : > { %v2483_v19 = vmul.f32 %v4511_v55, %v2482_v23  ;;  %v4515_v42 = vpop.eup %4514  ;;  %v7736_v27 = vadd.f32 1.0, %v4513_v38  ;;  %4520 = vpow2.f32 %v4027_v32  ;;  %v2477_v3 = vor.u32 1.1754944e-38, %v2476_v31  ;;  %v2853_v31 = vld [vmem:[%s5383_s20 + $0x248] sm:$0xff]  ;;  %v2852_v32 = vld [vmem:[%s5383_s20 + $0x240] sm:$0xff] }
 0x1e6   : > { %v2466_v45 = vmul.f32 %v4515_v42, %v7684_v5  ;;  %4522 = vpow2.f32 %v4026_v2  ;;  %v4517_v28 = vpop.eup %4516  ;;  %vm2471_vm0 = vweird.f32 %v4515_v42  ;;  %v7744_v22 = vmul.f32 -1.442695, %v319_v43  ;;  %v320_v10 = vld [vmem:[%s4650_s17 + $0x3c0] sm:$0xff] }
 0x1e7   : > { %v2484_v44 = vadd.f32 %v4511_v55, %v2483_v19  ;;  %4524 = vrcp.f32 %v7736_v27  ;;  %v2549_v26 = vand.u32 2147483647, %v7736_v27  ;;  %v7751_v47 = vadd.f32 1.0, %v4517_v28  ;;  %vm7767_vm6 = vmor %vm2470_vm14, %vm2471_vm0  ;;  %v2859_v19 = vld [vmem:[%s5383_s20 + $0x278] sm:$0xff] }
 0x1e8   : > { %v4519_v29 = vpop.eup %4518  ;;  %v2467_v60 = vsub.f32 1.0, %v2466_v45  ;;  %v2551_v40 = vand.u32 2147483648, %v7736_v27  ;;  %4526 = vpow2.f32 %v4025_v0  ;;  %v7760_v36 = vmul.f32 -1.442695, %v318_v41 }
 0x1e9   : > { %v2488_v39 = vsel %vm7731_vm13, %v4511_v55, %v2484_v44  ;;  %v7756_v4 = vadd.f32 1.0, %v4519_v29  ;;  %4528 = vrcp.f32 %v7751_v47  ;;  %v7762_v37 = vmul.f32 -1.442695, %v317_v25 }
 0x1ea   : > { %v2493_v52 = vsel %vm7721_vm11, %v2492_v33, %v2488_v39  ;;  %v2468_v54 = vmul.f32 %v4515_v42, %v2467_v60  ;;  %vm2545_vm15 = vweird.f32 %v7736_v27  ;;  %v2534_v13 = vand.u32 2147483647, %v7751_v47  ;;  %v324_v39 = vld [vmem:[%s4650_s17 + $0x3e0] sm:$0xff] }
 0x1eb   : > { %3456 = vperm.xlu1 %4068, %v2493_v52   ;;  %v4521_v61 = vpop.eup %4520  ;;  %v2536_v14 = vand.u32 2147483648, %v7751_v47  ;;  %4530 = vrcp.f32 %v7756_v4  ;;  %vm7775_vm2 = vcmp.eq.f32.partialorder %v2549_v26, 8.507059e+37  ;;  %v2519_v5 = vand.u32 2147483647, %v7756_v4 }
 0x1ec   : > { %v4523_v30 = vpop.eup %4522  ;;  %v2469_v57 = vadd.f32 %v4515_v42, %v2468_v54  ;;  %v2521_v59 = vand.u32 2147483648, %v7756_v4  ;;  %v7781_v34 = vadd.f32 1.0, %v4521_v61  ;;  %v2552_v7 = vor.u32 1.1754944e-38, %v2551_v40  ;;  %v3292_v61 = vpop.permute.xlu1 %3291 }
 0x1ed   : > { %v4525_v8 = vpop.eup %4524  ;;  %vm2530_vm1 = vweird.f32 %v7751_v47  ;;  %v7784_v21 = vadd.f32 1.0, %v4523_v30  ;;  %v3637_v12 = vmul.f32 %v3327_v58, %v2863_v56  ;;  %v7789_v9 = vor.u32 1.1754944e-38, %v2536_v14  ;;  %v2866_v56 = vld [vmem:[%s5383_s20 + $0x2b0] sm:$0xff]  ;;  %v3342_v58 = vpop.permute.xlu2 %3341 }
 0x1ee   : > { %v2473_v55 = vsel %vm7767_vm6, %v4515_v42, %v2469_v57  ;;  %v2541_v1 = vmul.f32 %v4525_v8, %v7736_v27  ;;  %vm2515_vm3 = vweird.f32 %v7756_v4  ;;  %v4527_v46 = vpop.eup %4526  ;;  %vm2546_vm5 = vweird.f32 %v4525_v8  ;;  %v3287_v14 = vpop.permute.xlu0 %3286 }
 0x1ef   : > { %v2478_v50 = vsel %vm7739_vm12, %v2477_v3, %v2473_v55  ;;  %vm7794_vm8 = vcmp.eq.f32.partialorder %v2534_v13, 8.507059e+37  ;;  %v7798_v63 = vor.u32 1.1754944e-38, %v2521_v59  ;;  %4532 = vrcp.f32 %v7781_v34  ;;  %3767 = vst.msk [vmem:[%s5432_s23 + $0x298] sm:$0xff] %vm3683_vm4, %v3637_v12  ;;  %v4529_v20 = vpop.eup %4528  ;;  %vm7824_vm14 = vmor %vm2545_vm15, %vm2546_vm5  ;;  %v2856_v12 = vld [vmem:[%s5383_s20 + $0x260] sm:$0xff]  ;;  %v322_v55 = vld [vmem:[%s4650_s17 + $0x3d0] sm:$0xff] }
 0x1f0   : > { %3451 = vperm.xlu0 %4067, %v2478_v50   ;;  %v2542_v51 = vsub.f32 1.0, %v2541_v1  ;;  %vm7803_vm7 = vcmp.eq.f32.partialorder %v2519_v5, 8.507059e+37  ;;  %v2594_v48 = vand.u32 2147483647, %v7781_v34  ;;  %v2596_v17 = vand.u32 2147483648, %v7781_v34  ;;  %v321_v50 = vld [vmem:[%s4650_s17 + $0x3c8] sm:$0xff] }
 0x1f1   : > { %4534 = vrcp.f32 %v7784_v21  ;;  %v7810_v23 = vpop.eup %4530  ;;  %v2526_v15 = vmul.f32 %v4529_v20, %v7751_v47  ;;  %vm2590_vm9 = vweird.f32 %v7781_v34  ;;  %vm2575_vm10 = vweird.f32 %v7784_v21  ;;  %v323_v47 = vld [vmem:[%s4650_s17 + $0x3d8] sm:$0xff] }
 0x1f2   : > { %v2579_v18 = vand.u32 2147483647, %v7784_v21  ;;  %v2543_v2 = vmul.f32 %v4525_v8, %v2542_v51  ;;  %vm2531_vm11 = vweird.f32 %v4529_v20  ;;  %v2511_v38 = vmul.f32 %v7810_v23, %v7756_v4 }
 0x1f3   : > { %vm2516_vm13 = vweird.f32 %v7810_v23  ;;  %v2527_v24 = vsub.f32 1.0, %v2526_v15  ;;  %v7828_v33 = vor.u32 1.1754944e-38, %v2596_v17  ;;  %v2581_v43 = vand.u32 2147483648, %v7784_v21  ;;  %vm7853_vm6 = vmor %vm2530_vm1, %vm2531_vm11 }
 0x1f4   : > { %v7831_v42 = vadd.f32 1.0, %v4527_v46  ;;  %v2544_v49 = vadd.f32 %v4525_v8, %v2543_v2  ;;  %v2512_v0 = vsub.f32 1.0, %v2511_v38  ;;  %vm7833_vm12 = vcmp.eq.f32.partialorder %v2594_v48, 8.507059e+37  ;;  %vm7869_vm1 = vmor %vm2515_vm3, %vm2516_vm13  ;;  %v2869_v2 = vld [vmem:[%s5383_s20 + $0x2c8] sm:$0xff] }
 0x1f5   : > { %v3627_v45 = vmul.f32 %v3277_v6, %v2853_v31  ;;  %v3626_v27 = vmul.f32 %v3272_v11, %v2852_v32  ;;  %v7837_v53 = vpop.eup %4532  ;;  %v2528_v28 = vmul.f32 %v4529_v20, %v2527_v24  ;;  %vm7839_vm0 = vcmp.eq.f32.partialorder %v2579_v18, 8.507059e+37  ;;  %v2855_v6 = vld [vmem:[%s5383_s20 + $0x258] sm:$0xff]  ;;  %v3357_v38 = vpop.permute.xlu2 %3356 }
 0x1f6   : > { %v7843_v41 = vor.u32 1.1754944e-38, %v2581_v43  ;;  %4536 = vrcp.f32 %v7831_v42  ;;  %v2548_v29 = vsel %vm7824_vm14, %v4525_v8, %v2544_v49  ;;  %v2513_v60 = vmul.f32 %v7810_v23, %v2512_v0  ;;  %v3307_v24 = vpop.permute.xlu1 %3306  ;;  %v2858_v43 = vld [vmem:[%s5383_s20 + $0x270] sm:$0xff] }
 0x1f7   : > { %v7846_v25 = vpop.eup %4534  ;;  %v2586_v26 = vmul.f32 %v7837_v53, %v7781_v34  ;;  %vm2560_vm15 = vweird.f32 %v7831_v42  ;;  %3757 = vst.msk [vmem:[%s5432_s23 + $0x248] sm:$0xff] %vm3683_vm4, %v3627_v45  ;;  %v2553_v52 = vsel %vm7775_vm2, %v2552_v7, %v2548_v29  ;;  %v2529_v40 = vadd.f32 %v4529_v20, %v2528_v28  ;;  %v3302_v45 = vpop.permute.xlu0 %3301 }
 0x1f8   : > { %vm2591_vm5 = vweird.f32 %v7837_v53  ;;  %v2571_v54 = vmul.f32 %v7846_v25, %v7784_v21  ;;  %3756 = vst.msk [vmem:[%s5432_s23 + $0x240] sm:$0xff] %vm3683_vm4, %v3626_v27  ;;  %3476 = vperm.xlu2 %4069, %v2553_v52   ;;  %v2514_v4 = vadd.f32 %v7810_v23, %v2513_v60  ;;  %vm2576_vm2 = vweird.f32 %v7846_v25 }
 0x1f9   : > { %v2587_v35 = vsub.f32 1.0, %v2586_v26  ;;  %v2566_v13 = vand.u32 2147483648, %v7831_v42  ;;  %v2533_v30 = vsel %vm7853_vm6, %v4529_v20, %v2529_v40  ;;  %4538 = vpow2.f32 %v7744_v22  ;;  %vm7905_vm3 = vmor %vm2590_vm9, %vm2591_vm5 }
 0x1fa   : > { %v2572_v57 = vsub.f32 1.0, %v2571_v54  ;;  %v3640_v62 = vmul.f32 %v3342_v58, %v2866_v56  ;;  %v2538_v5 = vsel %vm7794_vm8, %v7789_v9, %v2533_v30  ;;  %v2518_v59 = vsel %vm7869_vm1, %v7810_v23, %v2514_v4  ;;  %vm7920_vm8 = vmor %vm2575_vm10, %vm2576_vm2 }
 0x1fb   : > { %v2588_v8 = vmul.f32 %v7837_v53, %v2587_v35  ;;  %v2564_v7 = vand.u32 2147483647, %v7831_v42  ;;  %3471 = vperm.xlu1 %4068, %v2538_v5   ;;  %v2523_v1 = vsel %vm7803_vm7, %v7798_v63, %v2518_v59  ;;  %v2567_v46 = vor.u32 1.1754944e-38, %v2566_v13 }
 0x1fc   : > { %v7896_v22 = vpop.eup %4536  ;;  %v2573_v11 = vmul.f32 %v7846_v25, %v2572_v57  ;;  %4540 = vpow2.f32 %v7760_v36  ;;  %3770 = vst.msk [vmem:[%s5432_s23 + $0x2b0] sm:$0xff] %vm3683_vm4, %v3640_v62  ;;  %3466 = vperm.xlu0 %4067, %v2523_v1   ;;  %v325_v36 = vld [vmem:[%s4650_s17 + $0x3e8] sm:$0xff]  ;;  %v3630_v16 = vmul.f32 %v3292_v61, %v2856_v12  ;;  %v3629_v21 = vmul.f32 %v3287_v14, %v2855_v6 }
 0x1fd   : > { %v2589_v63 = vadd.f32 %v7837_v53, %v2588_v8  ;;  %v2556_v20 = vmul.f32 %v7896_v22, %v7831_v42  ;;  %vm2561_vm7 = vweird.f32 %v7896_v22  ;;  %4542 = vpow2.f32 %v7762_v37 }
 0x1fe   : > { %v2574_v51 = vadd.f32 %v7846_v25, %v2573_v11  ;;  %v4033_v48 = vmul.f32 -1.442695, %v322_v55  ;;  %v4032_v15 = vmul.f32 -1.442695, %v321_v50  ;;  %v4031_v18 = vmul.f32 -1.442695, %v320_v10  ;;  %vm7956_vm9 = vmor %vm2560_vm15, %vm2561_vm7 }
 0x1ff   : > { %v2593_v17 = vsel %vm7905_vm3, %v7837_v53, %v2589_v63  ;;  %v2557_v23 = vsub.f32 1.0, %v2556_v20  ;;  %v4539_v31 = vpop.eup %4538  ;;  %3760 = vst.msk [vmem:[%s5432_s23 + $0x260] sm:$0xff] %vm3683_vm4, %v3630_v16  ;;  %v4036_v49 = vmul.f32 -1.442695, %v325_v36  ;;  %v3643_v28 = vmul.f32 %v3357_v38, %v2869_v2 }
 0x200   : > { %v2598_v37 = vsel %vm7833_vm12, %v7828_v33, %v2593_v17  ;;  %v2578_v32 = vsel %vm7920_vm8, %v7846_v25, %v2574_v51  ;;  %4544 = vpow2.f32 %v4033_v48  ;;  %v7948_v44 = vadd.f32 1.0, %v4539_v31  ;;  %3759 = vst.msk [vmem:[%s5432_s23 + $0x258] sm:$0xff] %vm3683_vm4, %v3629_v21 }
 0x201   : > { %3491 = vperm.xlu2 %4069, %v2598_v37   ;;  %v2583_v0 = vsel %vm7839_vm0, %v7843_v41, %v2578_v32  ;;  %v2558_v33 = vmul.f32 %v7896_v22, %v2557_v23  ;;  %4546 = vpow2.f32 %v4032_v15  ;;  %v3633_v3 = vmul.f32 %v3307_v24, %v2859_v19  ;;  %3773 = vst.msk [vmem:[%s5432_s23 + $0x2c8] sm:$0xff] %vm3683_vm4, %v3643_v28 }
 0x202   : > { %v4541_v27 = vpop.eup %4540  ;;  %4548 = vpow2.f32 %v4031_v18  ;;  %v3632_v41 = vmul.f32 %v3302_v45, %v2858_v43  ;;  %vm2565_vm10 = vcmp.eq.f32.partialorder %v2564_v7, 8.507059e+37  ;;  %v2639_v42 = vand.u32 2147483647, %v7948_v44 }
 0x203   : > { %v4543_v25 = vpop.eup %4542  ;;  %v2559_v29 = vadd.f32 %v7896_v22, %v2558_v33  ;;  %4550 = vrcp.f32 %v7948_v44  ;;  %3486 = vperm.xlu1 %4068, %v2583_v0   ;;  %v7964_v60 = vadd.f32 1.0, %v4541_v27  ;;  %v2641_v40 = vand.u32 2147483648, %v7948_v44  ;;  %3763 = vst.msk [vmem:[%s5432_s23 + $0x278] sm:$0xff] %vm3683_vm4, %v3633_v3 }
 0x204   : > { %v7966_v26 = vadd.f32 1.0, %v4543_v25  ;;  %4552 = vpow2.f32 %v4036_v49  ;;  %3762 = vst.msk [vmem:[%s5432_s23 + $0x270] sm:$0xff] %vm3683_vm4, %v3632_v41  ;;  %v4035_v58 = vmul.f32 -1.442695, %v324_v39  ;;  %vm2635_vm11 = vweird.f32 %v7948_v44  ;;  %v2875_v49 = vld [vmem:[%s5383_s20 + $0x2f8] sm:$0xff] }
 0x205   : > { %v2563_v52 = vsel %vm7956_vm9, %v7896_v22, %v2559_v29  ;;  %4554 = vrcp.f32 %v7964_v60  ;;  %v2624_v4 = vand.u32 2147483647, %v7964_v60  ;;  %vm7983_vm13 = vcmp.eq.f32.partialorder %v2639_v42, 8.507059e+37 }
 0x206   : > { %v4545_v54 = vpop.eup %4544  ;;  %v2568_v56 = vsel %vm2565_vm10, %v2567_v46, %v2563_v52  ;;  %4556 = vrcp.f32 %v7966_v26  ;;  %v7991_v57 = vmul.f32 -1.442695, %v323_v47  ;;  %v2642_v5 = vor.u32 1.1754944e-38, %v2641_v40  ;;  %v3322_v52 = vpop.permute.xlu1 %3321 }
 0x207   : > { %v4547_v61 = vpop.eup %4546  ;;  %3481 = vperm.xlu0 %4067, %v2568_v56   ;;  %v7987_v14 = vadd.f32 1.0, %v4545_v54  ;;  %vm2620_vm14 = vweird.f32 %v7964_v60  ;;  %v2626_v59 = vand.u32 2147483648, %v7964_v60  ;;  %v2609_v8 = vand.u32 2147483647, %v7966_v26 }
 0x208   : > { %v4549_v35 = vpop.eup %4548  ;;  %v7989_v30 = vadd.f32 1.0, %v4547_v61  ;;  %vm2605_vm12 = vweird.f32 %v7966_v26  ;;  %v2611_v12 = vand.u32 2147483648, %v7966_v26  ;;  %4558 = vpow2.f32 %v4035_v58  ;;  %v3317_v58 = vpop.permute.xlu0 %3316 }
 0x209   : > { %v4551_v62 = vpop.eup %4550  ;;  %vm7999_vm6 = vcmp.eq.f32.partialorder %v2624_v4, 8.507059e+37  ;;  %4560 = vrcp.f32 %v7987_v14  ;;  %v8004_v22 = vadd.f32 1.0, %v4549_v35  ;;  %v2684_v11 = vand.u32 2147483647, %v7987_v14 }
 0x20a   : > { %v2631_v7 = vmul.f32 %v4551_v62, %v7948_v44  ;;  %v4553_v6 = vpop.eup %4552  ;;  %vm2636_vm0 = vweird.f32 %v4551_v62  ;;  %v2686_v46 = vand.u32 2147483648, %v7987_v14  ;;  %4562 = vrcp.f32 %v7989_v30 }
 0x20b   : > { %v4555_v1 = vpop.eup %4554  ;;  %v2627_v63 = vor.u32 1.1754944e-38, %v2626_v59  ;;  %vm8010_vm15 = vcmp.eq.f32.partialorder %v2609_v8, 8.507059e+37  ;;  %v2669_v20 = vand.u32 2147483647, %v7989_v30  ;;  %v2612_v16 = vor.u32 1.1754944e-38, %v2611_v12  ;;  %vm8020_vm5 = vmor %vm2635_vm11, %vm2636_vm0 }
 0x20c   : > { %v2632_v9 = vsub.f32 1.0, %v2631_v7  ;;  %v4557_v50 = vpop.eup %4556  ;;  %v2616_v10 = vmul.f32 %v4555_v1, %v7964_v60  ;;  %vm2680_vm1 = vweird.f32 %v7987_v14  ;;  %vm2621_vm2 = vweird.f32 %v4555_v1 }
 0x20d   : > { %v2601_v51 = vmul.f32 %v4557_v50, %v7966_v26  ;;  %vm2665_vm3 = vweird.f32 %v7989_v30  ;;  %4564 = vrcp.f32 %v8004_v22  ;;  %vm2606_vm8 = vweird.f32 %v4557_v50  ;;  %vm8043_vm11 = vmor %vm2620_vm14, %vm2621_vm2  ;;  %v3372_v26 = vpop.permute.xlu2 %3371 }
 0x20e   : > { %v2633_v36 = vmul.f32 %v4551_v62, %v2632_v9  ;;  %v2617_v48 = vsub.f32 1.0, %v2616_v10  ;;  %v4559_v17 = vpop.eup %4558  ;;  %vm8026_vm7 = vcmp.eq.f32.partialorder %v2684_v11, 8.507059e+37  ;;  %v2687_v31 = vor.u32 1.1754944e-38, %v2686_v46  ;;  %vm8054_vm0 = vmor %vm2605_vm12, %vm2606_vm8  ;;  %v2862_v11 = vld [vmem:[%s5383_s20 + $0x290] sm:$0xff]  ;;  %v2861_v46 = vld [vmem:[%s5383_s20 + $0x288] sm:$0xff] }
 0x20f   : > { %v2602_v15 = vsub.f32 1.0, %v2601_v51  ;;  %v4561_v37 = vpop.eup %4560  ;;  %vm8030_vm9 = vcmp.eq.f32.partialorder %v2669_v20, 8.507059e+37  ;;  %v2671_v38 = vand.u32 2147483648, %v7989_v30  ;;  %vm2650_vm10 = vweird.f32 %v8004_v22  ;;  %v327_v51 = vld [vmem:[%s4650_s17 + $0x3f8] sm:$0xff] }
 0x210   : > { %v2634_v23 = vadd.f32 %v4551_v62, %v2633_v36  ;;  %v2618_v32 = vmul.f32 %v4555_v1, %v2617_v48  ;;  %v8036_v19 = vadd.f32 1.0, %v4553_v6  ;;  %v4563_v24 = vpop.eup %4562  ;;  %v2676_v33 = vmul.f32 %v4561_v37, %v7987_v14  ;;  %v328_v36 = vld [vmem:[%s4650_s17 + $0x400] sm:$0xff] }
 0x211   : > { %v2603_v0 = vmul.f32 %v4557_v50, %v2602_v15  ;;  %v2654_v44 = vand.u32 2147483647, %v8004_v22  ;;  %v2661_v28 = vmul.f32 %v4563_v24, %v7989_v30  ;;  %v2656_v3 = vand.u32 2147483648, %v8004_v22  ;;  %v2872_v30 = vld [vmem:[%s5383_s20 + $0x2e0] sm:$0xff] }
 0x212   : > { %v2638_v43 = vsel %vm8020_vm5, %v4551_v62, %v2634_v23  ;;  %v2619_v27 = vadd.f32 %v4555_v1, %v2618_v32  ;;  %v2677_v25 = vsub.f32 1.0, %v2676_v33  ;;  %vm2681_vm14 = vweird.f32 %v4561_v37  ;;  %v2865_v33 = vld [vmem:[%s5383_s20 + $0x2a8] sm:$0xff] }
 0x213   : > { %v2643_v45 = vsel %vm7983_vm13, %v2642_v5, %v2638_v43  ;;  %v2604_v41 = vadd.f32 %v4557_v50, %v2603_v0  ;;  %v8060_v29 = vadd.f32 1.0, %v4559_v17  ;;  %v4565_v39 = vpop.eup %4564  ;;  %v2662_v60 = vsub.f32 1.0, %v2661_v28  ;;  %vm8075_vm12 = vmor %vm2680_vm1, %vm2681_vm14 }
 0x214   : > { %3506 = vperm.xlu2 %4069, %v2643_v45   ;;  %v2623_v42 = vsel %vm8043_vm11, %v4555_v1, %v2619_v27  ;;  %vm2666_vm13 = vweird.f32 %v4563_v24  ;;  %4566 = vrcp.f32 %v8036_v19  ;;  %v2678_v54 = vmul.f32 %v4561_v37, %v2677_v25  ;;  %v2864_v45 = vld [vmem:[%s5383_s20 + $0x2a0] sm:$0xff] }
 0x215   : > { %v2628_v40 = vsel %vm7999_vm6, %v2627_v63, %v2623_v42  ;;  %v2608_v47 = vsel %vm8054_vm0, %v4557_v50, %v2604_v41  ;;  %v2646_v56 = vmul.f32 %v4565_v39, %v8004_v22  ;;  %v2663_v35 = vmul.f32 %v4563_v24, %v2662_v60  ;;  %vm8082_vm5 = vmor %vm2665_vm3, %vm2666_vm13  ;;  %v326_v22 = vld [vmem:[%s4650_s17 + $0x3f0] sm:$0xff]  ;;  %v3387_v0 = vpop.permute.xlu2 %3386 }
 0x216   : > { %3501 = vperm.xlu1 %4068, %v2628_v40   ;;  %v2613_v61 = vsel %vm8010_vm15, %v2612_v16, %v2608_v47  ;;  %v2672_v13 = vor.u32 1.1754944e-38, %v2671_v38  ;;  %vm2651_vm6 = vweird.f32 %v4565_v39  ;;  %v2679_v62 = vadd.f32 %v4561_v37, %v2678_v54 }
 0x217   : > { %3496 = vperm.xlu0 %4067, %v2613_v61   ;;  %v2647_v59 = vsub.f32 1.0, %v2646_v56  ;;  %v2731_v14 = vand.u32 2147483648, %v8036_v19  ;;  %4568 = vrcp.f32 %v8060_v29  ;;  %v2664_v8 = vadd.f32 %v4563_v24, %v2663_v35  ;;  %vm8107_vm2 = vmor %vm2650_vm10, %vm2651_vm6  ;;  %v2868_v61 = vld [vmem:[%s5383_s20 + $0x2c0] sm:$0xff] }
 0x218   : > { %vm8088_vm15 = vcmp.eq.f32.partialorder %v2654_v44, 8.507059e+37  ;;  %v2657_v12 = vor.u32 1.1754944e-38, %v2656_v3  ;;  %vm2725_vm1 = vweird.f32 %v8036_v19  ;;  %v2683_v6 = vsel %vm8075_vm12, %v4561_v37, %v2679_v62  ;;  %v3337_v44 = vpop.permute.xlu1 %3336  ;;  %v3332_v3 = vpop.permute.xlu0 %3331 }
 0x219   : > { %v2648_v55 = vmul.f32 %v4565_v39, %v2647_v59  ;;  %v2729_v1 = vand.u32 2147483647, %v8036_v19  ;;  %v2714_v9 = vand.u32 2147483647, %v8060_v29  ;;  %v2688_v10 = vsel %vm8026_vm7, %v2687_v31, %v2683_v6  ;;  %v2867_v6 = vld [vmem:[%s5383_s20 + $0x2b8] sm:$0xff] }
 0x21a   : > { %v4567_v50 = vpop.eup %4566  ;;  %v2668_v63 = vsel %vm8082_vm5, %v4563_v24, %v2664_v8  ;;  %v2732_v20 = vor.u32 1.1754944e-38, %v2731_v14  ;;  %4570 = vpow2.f32 %v7991_v57  ;;  %v2716_v17 = vand.u32 2147483648, %v8060_v29 }
 0x21b   : > { %v2673_v16 = vsel %vm8030_vm9, %v2672_v13, %v2668_v63  ;;  %v2649_v21 = vadd.f32 %v4565_v39, %v2648_v55  ;;  %v2721_v48 = vmul.f32 %v4567_v50, %v8036_v19  ;;  %vm2726_vm3 = vweird.f32 %v4567_v50  ;;  %v2881_v63 = vld [vmem:[%s5383_s20 + $0x328] sm:$0xff] }
 0x21c   : > { %3521 = vperm.xlu2 %4069, %v2688_v10   ;;  %v3646_v23 = vmul.f32 %v3372_v26, %v2872_v30  ;;  %v3636_v15 = vmul.f32 %v3322_v52, %v2862_v11  ;;  %v3635_v18 = vmul.f32 %v3317_v58, %v2861_v46  ;;  %v4039_v32 = vmul.f32 -1.442695, %v328_v36  ;;  %vm8135_vm7 = vmor %vm2725_vm1, %vm2726_vm3  ;;  %v2878_v58 = vld [vmem:[%s5383_s20 + $0x310] sm:$0xff] }
 0x21d   : > { %v4569_v57 = vpop.eup %4568  ;;  %v2653_v31 = vsel %vm8107_vm2, %v4565_v39, %v2649_v21  ;;  %v2722_v37 = vsub.f32 1.0, %v2721_v48  ;;  %v4038_v2 = vmul.f32 -1.442695, %v327_v51  ;;  %vm2710_vm8 = vweird.f32 %v8060_v29  ;;  %v3402_v5 = vpop.permute.xlu2 %3401  ;;  %v2871_v21 = vld [vmem:[%s5383_s20 + $0x2d8] sm:$0xff] }
 0x21e   : > { %3516 = vperm.xlu1 %4068, %v2673_v16   ;;  %v2658_v38 = vsel %vm8088_vm15, %v2657_v12, %v2653_v31  ;;  %v2706_v24 = vmul.f32 %v4569_v57, %v8060_v29  ;;  %3776 = vst.msk [vmem:[%s5432_s23 + $0x2e0] sm:$0xff] %vm3683_vm4, %v3646_v23  ;;  %v4037_v43 = vmul.f32 -1.442695, %v326_v22  ;;  %4572 = vpow2.f32 %v4039_v32 }
 0x21f   : > { %3511 = vperm.xlu0 %4067, %v2658_v38   ;;  %v2723_v27 = vmul.f32 %v4567_v50, %v2722_v37  ;;  %3766 = vst.msk [vmem:[%s5432_s23 + $0x290] sm:$0xff] %vm3683_vm4, %v3636_v15  ;;  %v3649_v53 = vmul.f32 %v3387_v0, %v2875_v49  ;;  %v3639_v28 = vmul.f32 %v3337_v44, %v2865_v33  ;;  %vm2711_vm9 = vweird.f32 %v4569_v57 }
 0x220   : > { %v4571_v41 = vpop.eup %4570  ;;  %v2707_v39 = vsub.f32 1.0, %v2706_v24  ;;  %3765 = vst.msk [vmem:[%s5432_s23 + $0x288] sm:$0xff] %vm3683_vm4, %v3635_v18  ;;  %4574 = vpow2.f32 %v4038_v2  ;;  %v3638_v42 = vmul.f32 %v3332_v3, %v2864_v45  ;;  %vm2730_vm10 = vcmp.eq.f32.partialorder %v2729_v1, 8.507059e+37  ;;  %vm8149_vm11 = vmor %vm2710_vm8, %vm2711_vm9  ;;  %v3352_v59 = vpop.permute.xlu1 %3351 }
 0x221   : > { %v2724_v60 = vadd.f32 %v4567_v50, %v2723_v27  ;;  %v839_v26 = vadd.f32 1.0, %v4571_v41  ;;  %3779 = vst.msk [vmem:[%s5432_s23 + $0x2f8] sm:$0xff] %vm3683_vm4, %v3649_v53  ;;  %4576 = vpow2.f32 %v4037_v43  ;;  %v2717_v47 = vor.u32 1.1754944e-38, %v2716_v17  ;;  %v3347_v12 = vpop.permute.xlu0 %3346  ;;  %v2870_v17 = vld [vmem:[%s5383_s20 + $0x2d0] sm:$0xff] }
 0x222   : > { %v2708_v52 = vmul.f32 %v4569_v57, %v2707_v39  ;;  %3769 = vst.msk [vmem:[%s5432_s23 + $0x2a8] sm:$0xff] %vm3683_vm4, %v3639_v28  ;;  %vm2715_vm0 = vcmp.eq.f32.partialorder %v2714_v9, 8.507059e+37  ;;  %v3652_v29 = vmul.f32 %v3402_v5, %v2878_v58  ;;  %v3642_v7 = vmul.f32 %v3352_v59, %v2868_v61 }
 0x223   : > { %v2728_v19 = vsel %vm8135_vm7, %v4567_v50, %v2724_v60  ;;  %4578 = vrcp.f32 %v839_v26  ;;  %3768 = vst.msk [vmem:[%s5432_s23 + $0x2a0] sm:$0xff] %vm3683_vm4, %v3638_v42  ;;  %v2699_v9 = vand.u32 2147483647, %v839_v26  ;;  %v2701_v11 = vand.u32 2147483648, %v839_v26  ;;  %v2884_v60 = vld [vmem:[%s5383_s20 + $0x340] sm:$0xff] }
 0x224   : > { %v2733_v54 = vsel %vm2730_vm10, %v2732_v20, %v2728_v19  ;;  %v2709_v56 = vadd.f32 %v4569_v57, %v2708_v52  ;;  %v4573_v4 = vpop.eup %4572  ;;  %3782 = vst.msk [vmem:[%s5432_s23 + $0x310] sm:$0xff] %vm3683_vm4, %v3652_v29  ;;  %v3641_v50 = vmul.f32 %v3347_v12, %v2867_v6  ;;  %vm2695_vm14 = vweird.f32 %v839_v26  ;;  %v2899_v19 = vld [vmem:[%s5383_s20 + $0x3b8] sm:$0xff] }
 0x225   : > { %3536 = vperm.xlu2 %4069, %v2733_v54   ;;  %v8161_v62 = vadd.f32 1.0, %v4573_v4  ;;  %3772 = vst.msk [vmem:[%s5432_s23 + $0x2c0] sm:$0xff] %vm3683_vm4, %v3642_v7  ;;  %vm8178_vm12 = vcmp.eq.f32.partialorder %v2699_v9, 8.507059e+37  ;;  %v2702_v51 = vor.u32 1.1754944e-38, %v2701_v11  ;;  %v3417_v16 = vpop.permute.xlu2 %3416  ;;  %v2873_v54 = vld [vmem:[%s5383_s20 + $0x2e8] sm:$0xff] }
 0x226   : > { %v4575_v35 = vpop.eup %4574  ;;  %v2713_v13 = vsel %vm8149_vm11, %v4569_v57, %v2709_v56  ;;  %3771 = vst.msk [vmem:[%s5432_s23 + $0x2b8] sm:$0xff] %vm3683_vm4, %v3641_v50  ;;  %v3655_v24 = vmul.f32 %v3417_v16, %v2881_v63  ;;  %v2877_v9 = vld [vmem:[%s5383_s20 + $0x308] sm:$0xff]  ;;  %v2880_v16 = vld [vmem:[%s5383_s20 + $0x320] sm:$0xff] }
 0x227   : > { %v2718_v14 = vsel %vm2715_vm0, %v2717_v47, %v2713_v13  ;;  %v8163_v8 = vadd.f32 1.0, %v4575_v35  ;;  %v4577_v30 = vpop.eup %4576  ;;  %4580 = vrcp.f32 %v8161_v62  ;;  %vm2770_vm6 = vweird.f32 %v8161_v62 }
 0x228   : > { %3531 = vperm.xlu1 %4068, %v2718_v14   ;;  %v8172_v46 = vadd.f32 1.0, %v4577_v30  ;;  %v3367_v48 = vpop.permute.xlu1 %3366  ;;  %v2774_v18 = vand.u32 2147483647, %v8161_v62  ;;  %v2776_v57 = vand.u32 2147483648, %v8161_v62  ;;  %3785 = vst.msk [vmem:[%s5432_s23 + $0x328] sm:$0xff] %vm3683_vm4, %v3655_v24 }
 0x229   : > { %v4579_v55 = vpop.eup %4578  ;;  %4582 = vrcp.f32 %v8163_v8  ;;  %v2759_v31 = vand.u32 2147483647, %v8163_v8  ;;  %v3362_v37 = vpop.permute.xlu0 %3361  ;;  %v2761_v38 = vand.u32 2147483648, %v8163_v8  ;;  %v3645_v49 = vmul.f32 %v3367_v48, %v2871_v21  ;;  %v2879_v21 = vld [vmem:[%s5383_s20 + $0x318] sm:$0xff] }
 0x22a   : > { %v2691_v1 = vmul.f32 %v4579_v55, %v839_v26  ;;  %vm2696_vm13 = vweird.f32 %v4579_v55  ;;  %4584 = vrcp.f32 %v8172_v46  ;;  %v3644_v0 = vmul.f32 %v3362_v37, %v2870_v17  ;;  %v2874_v26 = vld [vmem:[%s5383_s20 + $0x2f0] sm:$0xff] }
 0x22b   : > { %vm8186_vm5 = vmor %vm2695_vm14, %vm2696_vm13  ;;  %vm2755_vm1 = vweird.f32 %v8163_v8  ;;  %vm8203_vm3 = vcmp.eq.f32.partialorder %v2774_v18, 8.507059e+37  ;;  %3775 = vst.msk [vmem:[%s5432_s23 + $0x2d8] sm:$0xff] %vm3683_vm4, %v3645_v49  ;;  %v2777_v41 = vor.u32 1.1754944e-38, %v2776_v57  ;;  %vm8215_vm7 = vcmp.eq.f32.partialorder %v2759_v31, 8.507059e+37  ;;  %v2883_v57 = vld [vmem:[%s5383_s20 + $0x338] sm:$0xff]  ;;  %v2882_v31 = vld [vmem:[%s5383_s20 + $0x330] sm:$0xff] }
 0x22c   : > { %v2692_v10 = vsub.f32 1.0, %v2691_v1  ;;  %3774 = vst.msk [vmem:[%s5432_s23 + $0x2d0] sm:$0xff] %vm3683_vm4, %v3644_v0  ;;  %v2762_v40 = vor.u32 1.1754944e-38, %v2761_v38  ;;  %vm2740_vm10 = vweird.f32 %v8172_v46  ;;  %v2746_v47 = vand.u32 2147483648, %v8172_v46  ;;  %v2887_v1 = vld [vmem:[%s5383_s20 + $0x358] sm:$0xff]  ;;  %v2893_v38 = vld [vmem:[%s5383_s20 + $0x388] sm:$0xff] }
 0x22d   : > { %v4581_v34 = vpop.eup %4580  ;;  %v2744_v61 = vand.u32 2147483647, %v8172_v46  ;;  %v3432_v4 = vpop.permute.xlu2 %3431  ;;  %v2886_v0 = vld [vmem:[%s5383_s20 + $0x350] sm:$0xff] }
 0x22e   : > { %v2693_v20 = vmul.f32 %v4579_v55, %v2692_v10  ;;  %v2766_v15 = vmul.f32 %v4581_v34, %v8161_v62  ;;  %vm2771_vm15 = vweird.f32 %v4581_v34  ;;  %v3658_v62 = vmul.f32 %v3432_v4, %v2884_v60  ;;  %v2888_v60 = vld [vmem:[%s5383_s20 + $0x360] sm:$0xff] }
 0x22f   : > { %v4583_v22 = vpop.eup %4582  ;;  %vm8211_vm8 = vmor %vm2770_vm6, %vm2771_vm15  ;;  %v2747_v30 = vor.u32 1.1754944e-38, %v2746_v47  ;;  %vm2745_vm14 = vcmp.eq.f32.partialorder %v2744_v61, 8.507059e+37  ;;  %v2891_v47 = vld [vmem:[%s5383_s20 + $0x378] sm:$0xff] }
 0x230   : > { %v2694_v32 = vadd.f32 %v4579_v55, %v2693_v20  ;;  %v2751_v2 = vmul.f32 %v4583_v22, %v8163_v8  ;;  %v2767_v43 = vsub.f32 1.0, %v2766_v15  ;;  %vm2756_vm2 = vweird.f32 %v4583_v22  ;;  %v4585_v45 = vpop.eup %4584  ;;  %v3382_v35 = vpop.permute.xlu1 %3381  ;;  %3788 = vst.msk [vmem:[%s5432_s23 + $0x340] sm:$0xff] %vm3683_vm4, %v3658_v62  ;;  %v2895_v62 = vld [vmem:[%s5383_s20 + $0x398] sm:$0xff] }
 0x231   : > { %v2736_v42 = vmul.f32 %v4585_v45, %v8172_v46  ;;  %vm8227_vm9 = vmor %vm2755_vm1, %vm2756_vm2  ;;  %vm2741_vm11 = vweird.f32 %v4585_v45  ;;  %v3648_v5 = vmul.f32 %v3382_v35, %v2874_v26  ;;  %v3377_v59 = vpop.permute.xlu0 %3376  ;;  %v2876_v46 = vld [vmem:[%s5383_s20 + $0x300] sm:$0xff] }
 0x232   : > { %v2698_v33 = vsel %vm8186_vm5, %v4579_v55, %v2694_v32  ;;  %v2752_v44 = vsub.f32 1.0, %v2751_v2  ;;  %v2768_v53 = vmul.f32 %v4581_v34, %v2767_v43  ;;  %v3647_v7 = vmul.f32 %v3377_v59, %v2873_v54  ;;  %vm2742_vm0 = vmor %vm2740_vm10, %vm2741_vm11 }
 0x233   : > { %v2703_v27 = vsel %vm8178_vm12, %v2702_v51, %v2698_v33  ;;  %v2737_v58 = vsub.f32 1.0, %v2736_v42  ;;  %3778 = vst.msk [vmem:[%s5432_s23 + $0x2f0] sm:$0xff] %vm3683_vm4, %v3648_v5  ;;  %v2890_v51 = vld [vmem:[%s5383_s20 + $0x370] sm:$0xff]  ;;  %v2885_v33 = vld [vmem:[%s5383_s20 + $0x348] sm:$0xff] }
 0x234   : > { %3526 = vperm.xlu0 %4067, %v2703_v27   ;;  %v2753_v25 = vmul.f32 %v4583_v22, %v2752_v44  ;;  %v2769_v52 = vadd.f32 %v4581_v34, %v2768_v53  ;;  %3777 = vst.msk [vmem:[%s5432_s23 + $0x2e8] sm:$0xff] %vm3683_vm4, %v3647_v7  ;;  %v2896_v53 = vld [vmem:[%s5383_s20 + $0x3a0] sm:$0xff] }
 0x235   : > { %v2738_v29 = vmul.f32 %v4585_v45, %v2737_v58 }
 0x236   : > { %v2754_v56 = vadd.f32 %v4583_v22, %v2753_v25  ;;  %v2773_v13 = vsel %vm8211_vm8, %v4581_v34, %v2769_v52  ;;  %v3447_v50 = vpop.permute.xlu2 %3446  ;;  %v2889_v25 = vld [vmem:[%s5383_s20 + $0x368] sm:$0xff] }
 0x237   : > { %v2778_v14 = vsel %vm8203_vm3, %v2777_v41, %v2773_v13  ;;  %v2739_v6 = vadd.f32 %v4585_v45, %v2738_v29  ;;  %v3661_v63 = vmul.f32 %v3447_v50, %v2887_v1  ;;  %v2902_v13 = vld [vmem:[%s5383_s20 + $0x3d0] sm:$0xff] }
 0x238   : > { %v2758_v8 = vsel %vm8227_vm9, %v4583_v22, %v2754_v56  ;;  %3551 = vperm.xlu2 %4069, %v2778_v14   ;;  %v3397_v10 = vpop.permute.xlu1 %3396  ;;  %v2894_v29 = vld [vmem:[%s5383_s20 + $0x390] sm:$0xff] }
 0x239   : > { %v2763_v12 = vsel %vm8215_vm7, %v2762_v40, %v2758_v8  ;;  %v2743_v55 = vsel %vm2742_vm0, %v4585_v45, %v2739_v6  ;;  %v3651_v34 = vmul.f32 %v3397_v10, %v2877_v9  ;;  %v3392_v20 = vpop.permute.xlu0 %3391  ;;  %3791 = vst.msk [vmem:[%s5432_s23 + $0x358] sm:$0xff] %vm3683_vm4, %v3661_v63  ;;  %v2892_v40 = vld [vmem:[%s5383_s20 + $0x380] sm:$0xff]  ;;  %v2898_v1 = vld [vmem:[%s5383_s20 + $0x3b0] sm:$0xff]  ;;  %v2897_v9 = vld [vmem:[%s5383_s20 + $0x3a8] sm:$0xff] }
 0x23a   : > { %3546 = vperm.xlu1 %4068, %v2763_v12   ;;  %v2748_v11 = vsel %vm2745_vm14, %v2747_v30, %v2743_v55  ;;  %v3650_v36 = vmul.f32 %v3392_v20, %v2876_v46  ;;  %v2905_v30 = vld [vmem:[%s5383_s20 + $0x3e8] sm:$0xff] }
 0x23b   : > { %3781 = vst.msk [vmem:[%s5432_s23 + $0x308] sm:$0xff] %vm3683_vm4, %v3651_v34  ;;  %v2901_v63 = vld [vmem:[%s5383_s20 + $0x3c8] sm:$0xff]  ;;  %v2900_v34 = vld [vmem:[%s5383_s20 + $0x3c0] sm:$0xff] }
 0x23c   : > { %3541 = vperm.xlu0 %4067, %v2748_v11   ;;  %3780 = vst.msk [vmem:[%s5432_s23 + $0x300] sm:$0xff] %vm3683_vm4, %v3650_v36  ;;  %v2908_v36 = vld [vmem:[%s5383_s20 + $0x400] sm:$0xff] }
 0x23e   : > { %v3462_v48 = vpop.permute.xlu2 %3461 }
 0x23f   : > { %v3664_v22 = vmul.f32 %v3462_v48, %v2890_v51 }
 0x240   : > { %v3412_v17 = vpop.permute.xlu1 %3411 }
 0x241   : > { %v3654_v23 = vmul.f32 %v3412_v17, %v2880_v16  ;;  %v3407_v15 = vpop.permute.xlu0 %3406  ;;  %3794 = vst.msk [vmem:[%s5432_s23 + $0x370] sm:$0xff] %vm3683_vm4, %v3664_v22  ;;  %v2904_v22 = vld [vmem:[%s5383_s20 + $0x3e0] sm:$0xff] }
 0x242   : > { %v3653_v18 = vmul.f32 %v3407_v15, %v2879_v21 }
 0x243   : > { %3784 = vst.msk [vmem:[%s5432_s23 + $0x320] sm:$0xff] %vm3683_vm4, %v3654_v23 }
 0x244   : > { %3783 = vst.msk [vmem:[%s5432_s23 + $0x318] sm:$0xff] %vm3683_vm4, %v3653_v18  ;;  %v2903_v18 = vld [vmem:[%s5383_s20 + $0x3d8] sm:$0xff] }
 0x24b   : > { %v3427_v37 = vpop.permute.xlu1 %3426 }
 0x24c   : > { %v3657_v32 = vmul.f32 %v3427_v37, %v2883_v57  ;;  %v3422_v2 = vpop.permute.xlu0 %3421  ;;  %v2907_v37 = vld [vmem:[%s5383_s20 + $0x3f8] sm:$0xff] }
 0x24d   : > { %v3656_v24 = vmul.f32 %v3422_v2, %v2882_v31 }
 0x24e   : > { %3787 = vst.msk [vmem:[%s5432_s23 + $0x338] sm:$0xff] %vm3683_vm4, %v3657_v32 }
 0x24f   : > { %3786 = vst.msk [vmem:[%s5432_s23 + $0x330] sm:$0xff] %vm3683_vm4, %v3656_v24 }
 0x252   : > { %v3477_v43 = vpop.permute.xlu2 %3476 }
 0x253   : > { %v3667_v49 = vmul.f32 %v3477_v43, %v2893_v38  ;;  %v3442_v44 = vpop.permute.xlu1 %3441  ;;  %v2906_v38 = vld [vmem:[%s5383_s20 + $0x3f0] sm:$0xff] }
 0x254   : > { %v3660_v45 = vmul.f32 %v3442_v44, %v2886_v0  ;;  %v3437_v27 = vpop.permute.xlu0 %3436 }
 0x255   : > { %3797 = vst.msk [vmem:[%s5432_s23 + $0x388] sm:$0xff] %vm3683_vm4, %v3667_v49  ;;  %v3659_v28 = vmul.f32 %v3437_v27, %v2885_v33 }
 0x256   : > { %3790 = vst.msk [vmem:[%s5432_s23 + $0x350] sm:$0xff] %vm3683_vm4, %v3660_v45 }
 0x257   : > { %3789 = vst.msk [vmem:[%s5432_s23 + $0x348] sm:$0xff] %vm3683_vm4, %v3659_v28 }
 0x25b   : > { %v3492_v3 = vpop.permute.xlu2 %3491 }
 0x25c   : > { %v3670_v41 = vmul.f32 %v3492_v3, %v2896_v53 }
 0x25d   : > { %v3457_v39 = vpop.permute.xlu1 %3456 }
 0x25e   : > { %3800 = vst.msk [vmem:[%s5432_s23 + $0x3a0] sm:$0xff] %vm3683_vm4, %v3670_v41  ;;  %v3663_v42 = vmul.f32 %v3457_v39, %v2889_v25 }
 0x260   : > { %3793 = vst.msk [vmem:[%s5432_s23 + $0x368] sm:$0xff] %vm3683_vm4, %v3663_v42 }
 0x262   : > { %v3452_v26 = vpop.permute.xlu0 %3451 }
 0x263   : > { %v3662_v52 = vmul.f32 %v3452_v26, %v2888_v60 }
 0x265   : > { %3792 = vst.msk [vmem:[%s5432_s23 + $0x360] sm:$0xff] %vm3683_vm4, %v3662_v52 }
 0x26d   : > { %v3472_v56 = vpop.permute.xlu1 %3471 }
 0x26e   : > { %v3507_v54 = vpop.permute.xlu2 %3506  ;;  %v3666_v61 = vmul.f32 %v3472_v56, %v2892_v40  ;;  %v3467_v4 = vpop.permute.xlu0 %3466 }
 0x26f   : > { %v3673_v58 = vmul.f32 %v3507_v54, %v2899_v19  ;;  %v3665_v35 = vmul.f32 %v3467_v4, %v2891_v47 }
 0x270   : > { %3796 = vst.msk [vmem:[%s5432_s23 + $0x380] sm:$0xff] %vm3683_vm4, %v3666_v61 }
 0x271   : > { %3803 = vst.msk [vmem:[%s5432_s23 + $0x3b8] sm:$0xff] %vm3683_vm4, %v3673_v58 }
 0x272   : > { %3795 = vst.msk [vmem:[%s5432_s23 + $0x378] sm:$0xff] %vm3683_vm4, %v3665_v35 }
 0x275   : > { %v3487_v59 = vpop.permute.xlu1 %3486 }
 0x276   : > { %v3522_v5 = vpop.permute.xlu2 %3521  ;;  %v3669_v8 = vmul.f32 %v3487_v59, %v2895_v62 }
 0x277   : > { %v3676_v14 = vmul.f32 %v3522_v5, %v2902_v13 }
 0x278   : > { %3799 = vst.msk [vmem:[%s5432_s23 + $0x398] sm:$0xff] %vm3683_vm4, %v3669_v8 }
 0x279   : > { %3806 = vst.msk [vmem:[%s5432_s23 + $0x3d0] sm:$0xff] %vm3683_vm4, %v3676_v14  ;;  %v3482_v7 = vpop.permute.xlu0 %3481 }
 0x27a   : > { %v3668_v12 = vmul.f32 %v3482_v7, %v2894_v29 }
 0x27c   : > { %3798 = vst.msk [vmem:[%s5432_s23 + $0x390] sm:$0xff] %vm3683_vm4, %v3668_v12 }
 0x27f   : > { %v3537_v6 = vpop.permute.xlu2 %3536 }
 0x280   : > { %v3679_v55 = vmul.f32 %v3537_v6, %v2905_v30 }
 0x282   : > { %3809 = vst.msk [vmem:[%s5432_s23 + $0x3e8] sm:$0xff] %vm3683_vm4, %v3679_v55 }
 0x288   : > { %v3502_v11 = vpop.permute.xlu1 %3501 }
 0x289   : > { %v3672_v46 = vmul.f32 %v3502_v11, %v2898_v1  ;;  %v3497_v50 = vpop.permute.xlu0 %3496 }
 0x28a   : > { %v3671_v10 = vmul.f32 %v3497_v50, %v2897_v9 }
 0x28b   : > { %3802 = vst.msk [vmem:[%s5432_s23 + $0x3b0] sm:$0xff] %vm3683_vm4, %v3672_v46 }
 0x28c   : > { %3801 = vst.msk [vmem:[%s5432_s23 + $0x3a8] sm:$0xff] %vm3683_vm4, %v3671_v10 }
 0x290   : > { %v3517_v20 = vpop.permute.xlu1 %3516 }
 0x291   : > { %v3675_v51 = vmul.f32 %v3517_v20, %v2901_v63  ;;  %v3512_v16 = vpop.permute.xlu0 %3511 }
 0x292   : > { %v3674_v21 = vmul.f32 %v3512_v16, %v2900_v34  ;;  %v3552_v48 = vpop.permute.xlu2 %3551 }
 0x293   : > { %3805 = vst.msk [vmem:[%s5432_s23 + $0x3c8] sm:$0xff] %vm3683_vm4, %v3675_v51  ;;  %v3682_v17 = vmul.f32 %v3552_v48, %v2908_v36 }
 0x294   : > { %3804 = vst.msk [vmem:[%s5432_s23 + $0x3c0] sm:$0xff] %vm3683_vm4, %v3674_v21 }
 0x295   : > { %3812 = vst.msk [vmem:[%s5432_s23 + $0x400] sm:$0xff] %vm3683_vm4, %v3682_v17 }
 0x29a   : > { %v3532_v23 = vpop.permute.xlu1 %3531 }
 0x29b   : > { %v3678_v15 = vmul.f32 %v3532_v23, %v2904_v22 }
 0x29d   : > { %3808 = vst.msk [vmem:[%s5432_s23 + $0x3e0] sm:$0xff] %vm3683_vm4, %v3678_v15 }
 0x2a6   : > { %v3527_v57 = vpop.permute.xlu0 %3526 }
 0x2a7   : > { %v3677_v31 = vmul.f32 %v3527_v57, %v2903_v18 }
 0x2a9   : > { %3807 = vst.msk [vmem:[%s5432_s23 + $0x3d8] sm:$0xff] %vm3683_vm4, %v3677_v31 }
 0x2ac   : > { %v3547_v32 = vpop.permute.xlu1 %3546 }
 0x2ad   : > { %v3681_v2 = vmul.f32 %v3547_v32, %v2907_v37 }
 0x2ae   : > { %v3542_v24 = vpop.permute.xlu0 %3541 }
 0x2af   : > { %3811 = vst.msk [vmem:[%s5432_s23 + $0x3f8] sm:$0xff] %vm3683_vm4, %v3681_v2  ;;  %v3680_v43 = vmul.f32 %v3542_v24, %v2906_v38 }
 0x2b1   : > { %3810 = vst.msk [vmem:[%s5432_s23 + $0x3f0] sm:$0xff] %vm3683_vm4, %v3680_v43 }
 0x2b2 PF: > { %s12_s11 = sadd.s32 1, %s4608_s11   ;;  %s8853_s9 = smov %s4604_s10 }
 0x2b3   : > { %p9_p5 = scmp.ge.s32.totalorder %s12_s11, 4   ;;  %s8854_s10 = smov %s8856_s12 }
 0x2b5   :  { %11 = sbr.rel (!%p9_p5) target bundleno = 2 (0x2), region = 61 }

</bundles_post_ra>
